<compile_context>
chip_gen: v6e
topology: v6e:2x2x1
jax: 0.10.0
libtpu: 0.0.40
codegen_flags: <defaults>
</compile_context>

<pallas_src>
import functools
import math

import jax
import jax.numpy as jnp
from jax.experimental import pallas as pl
from jax.experimental.pallas import tpu as pltpu

_F32 = jnp.float32
_BF16 = jnp.bfloat16


# ----------------------------------------------------------------------------
# In-kernel math helpers (operate on loaded arrays / refs inside kernel bodies)
# ----------------------------------------------------------------------------

def _bf16_dot(x, w_bf16, b_f32):
    """y = x @ w + b with bf16 MXU operands and f32 accumulation."""
    y = jnp.dot(x.astype(_BF16), w_bf16, preferred_element_type=_F32)
    return y + b_f32


def _softmax_rows(s):
    """Numerically-stable, exact softmax over the last axis (f32)."""
    s = s - jnp.max(s, axis=-1, keepdims=True)
    p = jnp.exp(s)
    return p / jnp.sum(p, axis=-1, keepdims=True)


def _layernorm(x, g, b, eps):
    mean = jnp.mean(x, axis=-1, keepdims=True)
    var = jnp.mean(jnp.square(x - mean), axis=-1, keepdims=True)
    return (x - mean) * jax.lax.rsqrt(var + eps) * g + b


def _mha(qkv, num_heads):
    """Multi-head attention from fused (S, 3E) qkv; q rows are pre-scaled.

    TODO(synk): at deployment sizes batch the heads into one dot_general
    (weights pre-grouped head-major); kept as a static per-head unroll here
    because the attention sequence lengths in this module are tiny (hw / b)
    and the unrolled lane slices are the proven-to-lower path.
    """
    S, threeE = qkv.shape
    E = threeE // 3
    D = E // num_heads
    outs = []
    for h in range(num_heads):
        q = qkv[:, h * D:(h + 1) * D].astype(_BF16)
        k = qkv[:, E + h * D:E + (h + 1) * D].astype(_BF16)
        v = qkv[:, 2 * E + h * D:2 * E + (h + 1) * D]
        s = jax.lax.dot_general(q, k, (((1,), (1,)), ((), ())),
                                preferred_element_type=_F32)        # (S, S)
        p = _softmax_rows(s)
        outs.append(jnp.dot(p, v, preferred_element_type=_F32))     # tiny, f32
    return jnp.concatenate(outs, axis=-1)                           # (S, E)


def _mha_query_mean(qkv, num_heads):
    """mean over queries of MHA(x,x,x) == (mean_q softmax(QK^T)) @ V per head."""
    S, threeE = qkv.shape
    E = threeE // 3
    D = E // num_heads
    inv_s = 1.0 / S
    outs = []
    for h in range(num_heads):
        q = qkv[:, h * D:(h + 1) * D].astype(_BF16)
        k = qkv[:, E + h * D:E + (h + 1) * D].astype(_BF16)
        v = qkv[:, 2 * E + h * D:2 * E + (h + 1) * D]
        s = jax.lax.dot_general(q, k, (((1,), (1,)), ((), ())),
                                preferred_element_type=_F32)        # (S, S)
        p = _softmax_rows(s)
        pmean = jnp.sum(p, axis=0, keepdims=True) * inv_s           # (1, S)
        outs.append(jnp.dot(pmean, v, preferred_element_type=_F32))  # (1, D)
    return jnp.concatenate(outs, axis=-1)                           # (1, E)


def _encoder_layer_math(x, wqkv_ref, bqkv_ref, wout_ref, bout_ref,
                        ln1g_ref, ln1b_ref, w1_ref, b1_ref, w2_ref, b2_ref,
                        ln2g_ref, ln2b_ref, *, num_heads, eps, ffn_chunk):
    """Post-norm nn.TransformerEncoderLayer (ReLU, eval), fully VMEM-resident."""
    qkv = _bf16_dot(x, wqkv_ref[...], bqkv_ref[...])                # (S, 3E)
    attn = _mha(qkv, num_heads)                                     # (S, E)
    attn = _bf16_dot(attn, wout_ref[...], bout_ref[...])
    x = _layernorm(x + attn, ln1g_ref[...], ln1b_ref[...], eps)
    # Feed-forward chunked over the hidden dim: exact (relu is pointwise) and
    # never materializes the full (S, 2E) f32 intermediate (v7x VMEM cap).
    hid = w1_ref.shape[-1]
    step = min(ffn_chunk, hid)
    xb = x.astype(_BF16)
    ff = jnp.zeros(x.shape, _F32)
    for c0 in range(0, hid, step):
        c1 = min(c0 + step, hid)
        hcol = (jnp.dot(xb, w1_ref[:, c0:c1], preferred_element_type=_F32)
                + b1_ref[:, c0:c1])
        hcol = jnp.maximum(hcol, 0.0).astype(_BF16)
        ff = ff + jnp.dot(hcol, w2_ref[c0:c1, :], preferred_element_type=_F32)
    return _layernorm(x + ff + b2_ref[...], ln2g_ref[...], ln2b_ref[...], eps)


# ----------------------------------------------------------------------------
# Fused Pallas kernels
# ----------------------------------------------------------------------------

def _pooling_kernel(x_ref, posqkv_ref, wqkv_ref, wout_ref, bout_ref, o_ref,
                    *, num_heads, batch):
    """Per frame: QKV proj (pos folded into the bias table) + MHA pooled over
    the hw tokens (mean taken before PV / out-proj) + out-proj."""
    posqkv = posqkv_ref[...]                       # (hw, 3E) = pos @ Wqkv + b
    wqkv = wqkv_ref[...]                           # (E, 3E) bf16, q pre-scaled
    rows = []
    for bi in range(batch):                        # static; b is small
        xb = x_ref[bi].astype(_BF16)               # (c, hw) native channel-major
        # Contract over c (dim 0 of both operands) == x^T @ Wqkv; the layout
        # swap therefore never materializes in HBM or VMEM.
        qkv = jax.lax.dot_general(xb, wqkv, (((0,), (0,)), ((), ())),
                                  preferred_element_type=_F32) + posqkv
        rows.append(_mha_query_mean(qkv, num_heads))               # (1, E)
    pooled = jnp.concatenate(rows, axis=0)                         # (b, E)
    # Out-projection on the pooled vectors only (linearity of the mean).
    o_ref[...] = _bf16_dot(pooled, wout_ref[...], bout_ref[...]).astype(o_ref.dtype)


def _encoder_layer_kernel(x_ref, wqkv_ref, bqkv_ref, wout_ref, bout_ref,
                          ln1g_ref, ln1b_ref, w1_ref, b1_ref, w2_ref, b2_ref,
                          ln2g_ref, ln2b_ref, o_ref,
                          *, num_heads, eps, ffn_chunk):
    y = _encoder_layer_math(x_ref[...], wqkv_ref, bqkv_ref, wout_ref, bout_ref,
                            ln1g_ref, ln1b_ref, w1_ref, b1_ref, w2_ref, b2_ref,
                            ln2g_ref, ln2b_ref, num_heads=num_heads, eps=eps,
                            ffn_chunk=ffn_chunk)
    o_ref[...] = y.astype(o_ref.dtype)


def _encoder_layer_latent_kernel(x_ref, wqkv_ref, bqkv_ref, wout_ref, bout_ref,
                                 ln1g_ref, ln1b_ref, w1_ref, b1_ref, w2_ref,
                                 b2_ref, ln2g_ref, ln2b_ref, headw_ref,
                                 headb_ref, mu_ref, lv_ref, acc_ref,
                                 *, num_heads, eps, ffn_chunk, inv_t):
    """Last encoder layer fused with the time-mean and (mu||log_var) head."""
    ti = pl.program_id(0)
    y = _encoder_layer_math(x_ref[...], wqkv_ref, bqkv_ref, wout_ref, bout_ref,
                            ln1g_ref, ln1b_ref, w1_ref, b1_ref, w2_ref, b2_ref,
                            ln2g_ref, ln2b_ref, num_heads=num_heads, eps=eps,
                            ffn_chunk=ffn_chunk)

    @pl.when(ti == 0)
    def _init():
        acc_ref[...] = jnp.zeros_like(acc_ref)

    acc_ref[...] += y * inv_t                                  # running time-mean

    @pl.when(ti == pl.num_programs(0) - 1)
    def _finalize():
        z = _bf16_dot(acc_ref[...], headw_ref[...], headb_ref[...])   # (b, 2E)
        E = mu_ref.shape[-1]
        mu_ref[...] = z[:, :E].astype(mu_ref.dtype)
        lv_ref[...] = z[:, E:].astype(lv_ref.dtype)


def _latent_head_kernel(x_ref, w_ref, b_ref, mu_ref, lv_ref, *, inv_t):
    """Fallback (num_layers == 0): time-mean + fused (mu||log_var) projection."""
    xm = jnp.sum(x_ref[...], axis=0) * inv_t                   # (b, E)
    y = _bf16_dot(xm, w_ref[...], b_ref[...])                  # (b, 2E)
    E = mu_ref.shape[-1]
    mu_ref[...] = y[:, :E].astype(mu_ref.dtype)
    lv_ref[...] = y[:, E:].astype(lv_ref.dtype)


# ----------------------------------------------------------------------------
# pallas_call wrappers
# ----------------------------------------------------------------------------

def _const_spec(arr):
    """Full-array block whose index never changes with the grid step.

    Requested single-buffered (pl.Buffered(1)) when the installed Pallas
    supports per-operand pipeline_mode: constant weights do not need double
    buffering, and at deployment hiddim the duplicate buffers alone would blow
    v7x's 64 MiB VMEM."""
    nd = arr.ndim
    idx = lambda *args, _nd=nd: (0,) * _nd
    if hasattr(pl, "Buffered"):
        try:
            return pl.BlockSpec(arr.shape, idx, pipeline_mode=pl.Buffered(1))
        except TypeError:              # BlockSpec without pipeline_mode support
            pass
    return pl.BlockSpec(arr.shape, idx)


def _nbytes(*arrays):
    return sum(int(a.size) * a.dtype.itemsize for a in arrays)


def _vmem_limit(block_bytes, const_bytes, intermediate_bytes=0):
    """Explicit scoped-VMEM budget: 2x (double-buffered) grid blocks, 2x the
    constants (conservative in case single-buffering is unavailable), plus the
    in-kernel f32 intermediates and headroom.  Clamped to sane bounds."""
    need = 2 * block_bytes + 2 * const_bytes + intermediate_bytes
    need = int(need * 1.25) + (4 << 20)
    return int(min(max(need, 32 << 20), 96 << 20))


def _layer_weights(layer):
    return (layer["wqkv"], layer["bqkv"], layer["wout"], layer["bout"],
            layer["ln1_g"], layer["ln1_b"], layer["w1"], layer["b1"],
            layer["w2"], layer["b2"], layer["ln2_g"], layer["ln2_b"])


def pooling_stage(frames, pos_qkv, params, num_heads):
    """frames: (b, t, c, hw) channel-major -> pooled tokens (t, b, c)."""
    b, t, c, hw = frames.shape
    kern = functools.partial(_pooling_kernel, num_heads=num_heads, batch=b)
    consts = (pos_qkv, params["pool_wqkv"], params["pool_wout"],
              params["pool_bout"])
    blk = b * c * hw * 4 + b * c * 4
    interm = 4 * 4 * (hw * 3 * c + hw * hw + b * c)
    return pl.pallas_call(
        kern,
        grid=(t,),
        in_specs=[pl.BlockSpec((b, None, c, hw), lambda i: (0, i, 0, 0))]
                 + [_const_spec(a) for a in consts],
        out_specs=pl.BlockSpec((None, b, c), lambda i: (i, 0, 0)),
        out_shape=jax.ShapeDtypeStruct((t, b, c), jnp.float32),
        compiler_params=pltpu.CompilerParams(
            dimension_semantics=("parallel",),          # t >= 2: v7x megacore
            vmem_limit_bytes=_vmem_limit(blk, _nbytes(*consts), interm)),
    )(frames, *consts)


def encoder_layer(x, layer, num_heads, ffn_chunk):
    """x: (t, b, E).  Attention mixes the b rows of each time slice — exactly
    what PyTorch does here, since encode_video receives a (b, t, E) tensor but
    was built with the default batch_first=False (seq axis = b, batch = t)."""
    t, b, E = x.shape
    kern = functools.partial(_encoder_layer_kernel, num_heads=num_heads,
                             eps=1e-5, ffn_chunk=ffn_chunk)
    consts = _layer_weights(layer)
    blk = 2 * b * E * 4
    interm = 4 * 4 * (b * 3 * E + b * b + b * min(ffn_chunk, 2 * E) + b * E)
    return pl.pallas_call(
        kern,
        grid=(t,),
        in_specs=[pl.BlockSpec((None, b, E), lambda i: (i, 0, 0))]
                 + [_const_spec(a) for a in consts],
        out_specs=pl.BlockSpec((None, b, E), lambda i: (i, 0, 0)),
        out_shape=jax.ShapeDtypeStruct((t, b, E), jnp.float32),
        compiler_params=pltpu.CompilerParams(
            dimension_semantics=("parallel",),
            vmem_limit_bytes=_vmem_limit(blk, _nbytes(*consts), interm)),
    )(x, *consts)


def encoder_layer_with_latent(x, layer, head_w, head_b, num_heads, ffn_chunk):
    """Last encoder layer + time-mean + (mu||log_var) projection in ONE call:
    the mean accumulates in VMEM scratch across the (sequential) t grid and the
    tiny head projection rides free on the final step — no (t,b,E) writeback."""
    t, b, E = x.shape
    kern = functools.partial(_encoder_layer_latent_kernel, num_heads=num_heads,
                             eps=1e-5, ffn_chunk=ffn_chunk, inv_t=1.0 / t)
    consts = _layer_weights(layer) + (head_w, head_b)
    blk = b * E * 4 + 2 * b * E * 4
    interm = 4 * 4 * (b * 3 * E + b * b + b * min(ffn_chunk, 2 * E) + b * E)
    return pl.pallas_call(
        kern,
        grid=(t,),
        in_specs=[pl.BlockSpec((None, b, E), lambda i: (i, 0, 0))]
                 + [_const_spec(a) for a in consts],
        out_specs=(pl.BlockSpec((b, E), lambda i: (0, 0)),
                   pl.BlockSpec((b, E), lambda i: (0, 0))),
        out_shape=(jax.ShapeDtypeStruct((b, E), jnp.float32),
                   jax.ShapeDtypeStruct((b, E), jnp.float32)),
        scratch_shapes=[pltpu.VMEM((b, E), jnp.float32)],
        compiler_params=pltpu.CompilerParams(
            dimension_semantics=("arbitrary",),         # sequential: accumulator
            vmem_limit_bytes=_vmem_limit(blk, _nbytes(*consts), interm)),
    )(x, *consts)


def latent_head(x, head_w, head_b):
    """Standalone fallback when there are no encoder layers."""
    t, b, E = x.shape
    kern = functools.partial(_latent_head_kernel, inv_t=1.0 / t)
    consts = (head_w, head_b)
    blk = t * b * E * 4 + 2 * b * E * 4
    return pl.pallas_call(
        kern,
        grid=(1,),
        in_specs=[_const_spec(x)] + [_const_spec(a) for a in consts],
        out_specs=(pl.BlockSpec((b, E), lambda i: (0, 0)),
                   pl.BlockSpec((b, E), lambda i: (0, 0))),
        out_shape=(jax.ShapeDtypeStruct((b, E), jnp.float32),
                   jax.ShapeDtypeStruct((b, E), jnp.float32)),
        compiler_params=pltpu.CompilerParams(
            dimension_semantics=("arbitrary",),
            vmem_limit_bytes=_vmem_limit(blk, _nbytes(*consts))),
    )(x, *consts)


# ----------------------------------------------------------------------------
# Forward pass
# ----------------------------------------------------------------------------

def video_encoder_forward(images, params, num_heads, ffn_chunk=512):
    """images: (b, t, c, h, w) with c == hiddim. Returns {'mu','log_var','z'}."""
    b, t, c, h, w = images.shape
    hw = h * w
    if hw > params["pos_qkv"].shape[0]:
        raise ValueError("h*w exceeds the 14*14 positional-bias table")
    # Only a free trailing-dim merge here; the channel->feature layout swap is
    # done inside the pooling kernel (QKV contracted over c), so no full-tensor
    # HBM transpose is ever materialized.
    frames = images.reshape(b, t, c, hw)
    pos_qkv = params["pos_qkv"][:hw]                                  # (hw, 3E)

    x = pooling_stage(frames, pos_qkv, params, num_heads)             # (t, b, c)
    layers = params["layers"]
    if layers:
        for layer in layers[:-1]:
            x = encoder_layer(x, layer, num_heads, ffn_chunk)         # (t, b, c)
        mu, log_var = encoder_layer_with_latent(
            x, layers[-1], params["head_w"], params["head_b"],
            num_heads, ffn_chunk)                                     # (b, c) x2
    else:
        mu, log_var = latent_head(x, params["head_w"], params["head_b"])

    # TODO(synk): training-mode reparameterization (randn_like) not emitted.
    return {"mu": mu, "log_var": log_var, "z": mu}                    # eval: z == mu


# ----------------------------------------------------------------------------
# Parameters: PyTorch-layout init, then one-time preprocessing (hoisted
# transposes, bf16 cast, attention-scale folding, pos_bias folding, mu/log_var
# fusion) — all outside the hot path.
# ----------------------------------------------------------------------------

def init_params(key, hiddim, num_layers):
    keys = iter(jax.random.split(key, 10 + 8 * num_layers))

    def w(shape, scale=0.02):
        return jax.random.normal(next(keys), shape, jnp.float32) * scale

    params = {
        "pos_bias": jax.random.uniform(next(keys), (1, 14 * 14, hiddim),
                                       jnp.float32) * 0.01,
        "pool_in_w": w((3 * hiddim, hiddim)),        # PyTorch (out, in) layout
        "pool_in_b": w((3 * hiddim,), 0.01),
        "pool_out_w": w((hiddim, hiddim)),
        "pool_out_b": w((hiddim,), 0.01),
        "mu_w": w((hiddim, hiddim)),
        "mu_b": w((hiddim,), 0.01),
        "lv_w": w((hiddim, hiddim)),
        "lv_b": w((hiddim,), 0.01),
        "layers": [],
    }
    for _ in range(num_layers):
        params["layers"].append({
            "attn_in_w": w((3 * hiddim, hiddim)),
            "attn_in_b": w((3 * hiddim,), 0.01),
            "attn_out_w": w((hiddim, hiddim)),
            "attn_out_b": w((hiddim,), 0.01),
            "lin1_w": w((2 * hiddim, hiddim)),
            "lin1_b": w((2 * hiddim,), 0.01),
            "lin2_w": w((hiddim, 2 * hiddim)),
            "lin2_b": w((hiddim,), 0.01),
            "ln1_g": jnp.ones((hiddim,), jnp.float32),
            "ln1_b": jnp.zeros((hiddim,), jnp.float32),
            "ln2_g": jnp.ones((hiddim,), jnp.float32),
            "ln2_b": jnp.zeros((hiddim,), jnp.float32),
        })
    return params


def prepare_params(raw, hiddim, num_heads):
    """One-time prep: nn.Linear (N,K) -> bf16 (K,N), fold 1/sqrt(head_dim) into
    the q rows, fold pos_bias through the pooling QKV projection, fuse the
    mu/log_var projections into one (E, 2E) weight."""
    E = hiddim
    scale = 1.0 / math.sqrt(E // num_heads)

    def lin(wt, bias):        # torch (N, K) -> bf16 (K, N); bias -> (1, N) f32
        return (jnp.transpose(wt).astype(jnp.bfloat16),
                bias.reshape(1, -1).astype(jnp.float32))

    def scale_q(wt, bias):    # fold attention scale into q rows / bias
        return wt.at[:E].multiply(scale), bias.at[:E].multiply(scale)

    pw, pb = scale_q(raw["pool_in_w"], raw["pool_in_b"])
    pool_wqkv_f32 = jnp.transpose(pw)                                  # (E, 3E)
    pos_qkv = (raw["pos_bias"][0].astype(jnp.float32) @ pool_wqkv_f32
               + pb.reshape(1, -1))                                    # (196, 3E)
    pool_wout, pool_bout = lin(raw["pool_out_w"], raw["pool_out_b"])
    head_w, head_b = lin(jnp.concatenate([raw["mu_w"], raw["lv_w"]], axis=0),
                         jnp.concatenate([raw["mu_b"], raw["lv_b"]], axis=0))

    prepared = {
        "pos_qkv": pos_qkv.astype(jnp.float32),
        "pool_wqkv": pool_wqkv_f32.astype(jnp.bfloat16),
        "pool_wout": pool_wout, "pool_bout": pool_bout,
        "head_w": head_w, "head_b": head_b,
        "layers": [],
    }
    for lp in raw["layers"]:
        lw, lb = scale_q(lp["attn_in_w"], lp["attn_in_b"])
        wqkv, bqkv = lin(lw, lb)
        wout, bout = lin(lp["attn_out_w"], lp["attn_out_b"])
        w1, b1 = lin(lp["lin1_w"], lp["lin1_b"])
        w2, b2 = lin(lp["lin2_w"], lp["lin2_b"])
        prepared["layers"].append({
            "wqkv": wqkv, "bqkv": bqkv, "wout": wout, "bout": bout,
            "w1": w1, "b1": b1, "w2": w2, "b2": b2,
            "ln1_g": lp["ln1_g"].reshape(1, E).astype(jnp.float32),
            "ln1_b": lp["ln1_b"].reshape(1, E).astype(jnp.float32),
            "ln2_g": lp["ln2_g"].reshape(1, E).astype(jnp.float32),
            "ln2_b": lp["ln2_b"].reshape(1, E).astype(jnp.float32),
        })
    return prepared


# ----------------------------------------------------------------------------
# Main (toy shapes — deployment sizes should pad E / head_dim to 128 lanes)
# ----------------------------------------------------------------------------

if __name__ == "__main__":
    hiddim = 32
    num_heads = 4          # hiddim must be divisible by num_heads
    num_layers = 2
    b, t, h, w = 2, 4, 4, 4

    key = jax.random.PRNGKey(0)
    pkey, xkey = jax.random.split(key)
    raw_params = init_params(pkey, hiddim, num_layers)
    params = prepare_params(raw_params, hiddim, num_heads)   # hoisted prep
    images = jax.random.normal(xkey, (b, t, hiddim, h, w), jnp.float32)

    fwd = jax.jit(functools.partial(video_encoder_forward, num_heads=num_heads))
    out = fwd(images, params)
    jax.block_until_ready(out)

    assert out["mu"].shape == (b, hiddim)
    assert out["log_var"].shape == (b, hiddim)
    assert out["z"].shape == (b, hiddim)
    assert bool(jnp.isfinite(out["mu"]).all())
    assert bool(jnp.isfinite(out["log_var"]).all())
    print("KERNEL_OK")
</pallas_src>

<mosaic_0001>
module attributes {stable_mosaic.version = 11 : i64} {
  func.func @_encoder_layer_kernel(%arg0: i32, %arg1: memref<1x2x32xf32, #tpu.memory_space<vmem>>, %arg2: memref<32x96xbf16, #tpu.memory_space<vmem>>, %arg3: memref<1x96xf32, #tpu.memory_space<vmem>>, %arg4: memref<32x32xbf16, #tpu.memory_space<vmem>>, %arg5: memref<1x32xf32, #tpu.memory_space<vmem>>, %arg6: memref<1x32xf32, #tpu.memory_space<vmem>>, %arg7: memref<1x32xf32, #tpu.memory_space<vmem>>, %arg8: memref<32x64xbf16, #tpu.memory_space<vmem>>, %arg9: memref<1x64xf32, #tpu.memory_space<vmem>>, %arg10: memref<64x32xbf16, #tpu.memory_space<vmem>>, %arg11: memref<1x32xf32, #tpu.memory_space<vmem>>, %arg12: memref<1x32xf32, #tpu.memory_space<vmem>>, %arg13: memref<1x32xf32, #tpu.memory_space<vmem>>, %arg14: memref<1x2x32xf32, #tpu.memory_space<vmem>>) attributes {dimension_semantics = [#tpu.dimension_semantics<parallel>], iteration_bounds = array<i64: 4>, scalar_prefetch = 0 : i64, scratch_operands = 0 : i64, tpu.core_type = #tpu.core_type<tc>, window_params = [{transform_indices = @transform_0, window_bounds = array<i64: 1, 2, 32>}, {pipeline_mode = #tpu.pipeline_mode<synchronous>, transform_indices = @transform_1, window_bounds = array<i64: 32, 96>}, {pipeline_mode = #tpu.pipeline_mode<synchronous>, transform_indices = @transform_2, window_bounds = array<i64: 1, 96>}, {pipeline_mode = #tpu.pipeline_mode<synchronous>, transform_indices = @transform_3, window_bounds = array<i64: 32, 32>}, {pipeline_mode = #tpu.pipeline_mode<synchronous>, transform_indices = @transform_4, window_bounds = array<i64: 1, 32>}, {pipeline_mode = #tpu.pipeline_mode<synchronous>, transform_indices = @transform_5, window_bounds = array<i64: 1, 32>}, {pipeline_mode = #tpu.pipeline_mode<synchronous>, transform_indices = @transform_6, window_bounds = array<i64: 1, 32>}, {pipeline_mode = #tpu.pipeline_mode<synchronous>, transform_indices = @transform_7, window_bounds = array<i64: 32, 64>}, {pipeline_mode = #tpu.pipeline_mode<synchronous>, transform_indices = @transform_8, window_bounds = array<i64: 1, 64>}, {pipeline_mode = #tpu.pipeline_mode<synchronous>, transform_indices = @transform_9, window_bounds = array<i64: 64, 32>}, {pipeline_mode = #tpu.pipeline_mode<synchronous>, transform_indices = @transform_10, window_bounds = array<i64: 1, 32>}, {pipeline_mode = #tpu.pipeline_mode<synchronous>, transform_indices = @transform_11, window_bounds = array<i64: 1, 32>}, {pipeline_mode = #tpu.pipeline_mode<synchronous>, transform_indices = @transform_12, window_bounds = array<i64: 1, 32>}, {transform_indices = @transform_13, window_bounds = array<i64: 1, 2, 32>}]} {
    %c0 = arith.constant 0 : index
    %c0_0 = arith.constant 0 : index
    %c0_1 = arith.constant 0 : index
    %0 = vector.load %arg1[%c0, %c0_0, %c0_1] : memref<1x2x32xf32, #tpu.memory_space<vmem>>, vector<1x2x32xf32>
    %1 = vector.shape_cast %0 : vector<1x2x32xf32> to vector<2x32xf32>
    %c0_2 = arith.constant 0 : index
    %c0_3 = arith.constant 0 : index
    %2 = vector.load %arg2[%c0_2, %c0_3] : memref<32x96xbf16, #tpu.memory_space<vmem>>, vector<32x96xbf16>
    %c0_4 = arith.constant 0 : index
    %c0_5 = arith.constant 0 : index
    %3 = vector.load %arg3[%c0_4, %c0_5] : memref<1x96xf32, #tpu.memory_space<vmem>>, vector<1x96xf32>
    %4 = arith.truncf %1 : vector<2x32xf32> to vector<2x32xbf16>
    %cst = arith.constant dense<0.000000e+00> : vector<2x96xf32>
    %5 = tpu.matmul %4, %2, %cst {dimension_numbers = #tpu.dot_dimension_numbers<[1], [0], [0], [1], [0, 0, 1, 1], [], []>} : vector<2x32xbf16>, vector<32x96xbf16>, vector<2x96xf32> -> vector<2x96xf32>
    %6 = vector.broadcast %3 : vector<1x96xf32> to vector<2x96xf32>
    %7 = arith.addf %5, %6 : vector<2x96xf32>
    %8 = vector.extract_strided_slice %7 {offsets = [0, 0], sizes = [2, 8], strides = [1, 1]} : vector<2x96xf32> to vector<2x8xf32>
    %9 = arith.truncf %8 : vector<2x8xf32> to vector<2x8xbf16>
    %10 = vector.extract_strided_slice %7 {offsets = [0, 32], sizes = [2, 8], strides = [1, 1]} : vector<2x96xf32> to vector<2x8xf32>
    %11 = arith.truncf %10 : vector<2x8xf32> to vector<2x8xbf16>
    %12 = vector.extract_strided_slice %7 {offsets = [0, 64], sizes = [2, 8], strides = [1, 1]} : vector<2x96xf32> to vector<2x8xf32>
    %cst_6 = arith.constant dense<0.000000e+00> : vector<2x2xf32>
    %13 = tpu.matmul %9, %11, %cst_6 {dimension_numbers = #tpu.dot_dimension_numbers<[1], [1], [0], [0], [0, 0, 1, 0], [], []>} : vector<2x8xbf16>, vector<2x8xbf16>, vector<2x2xf32> -> vector<2x2xf32>
    %cst_7 = arith.constant dense<0xFF800000> : vector<2xf32>
    %14 = vector.multi_reduction <maximumf>, %13, %cst_7 [1] : vector<2x2xf32> to vector<2xf32>
    %15 = vector.shape_cast %14 : vector<2xf32> to vector<2x1xf32>
    %16 = vector.broadcast %15 : vector<2x1xf32> to vector<2x2xf32>
    %17 = arith.subf %13, %16 : vector<2x2xf32>
    %18 = math.exp %17 : vector<2x2xf32>
    %cst_8 = arith.constant dense<0.000000e+00> : vector<2xf32>
    %19 = vector.multi_reduction <add>, %18, %cst_8 [1] : vector<2x2xf32> to vector<2xf32>
    %20 = vector.shape_cast %19 : vector<2xf32> to vector<2x1xf32>
    %21 = vector.broadcast %20 : vector<2x1xf32> to vector<2x2xf32>
    %22 = arith.divf %18, %21 : vector<2x2xf32>
    %cst_9 = arith.constant dense<0.000000e+00> : vector<2x8xf32>
    %23 = tpu.matmul %22, %12, %cst_9 {dimension_numbers = #tpu.dot_dimension_numbers<[1], [0], [0], [1], [0, 0, 1, 1], [], []>} : vector<2x2xf32>, vector<2x8xf32>, vector<2x8xf32> -> vector<2x8xf32>
    %24 = vector.extract_strided_slice %7 {offsets = [0, 8], sizes = [2, 8], strides = [1, 1]} : vector<2x96xf32> to vector<2x8xf32>
    %25 = arith.truncf %24 : vector<2x8xf32> to vector<2x8xbf16>
    %26 = vector.extract_strided_slice %7 {offsets = [0, 40], sizes = [2, 8], strides = [1, 1]} : vector<2x96xf32> to vector<2x8xf32>
    %27 = arith.truncf %26 : vector<2x8xf32> to vector<2x8xbf16>
    %28 = vector.extract_strided_slice %7 {offsets = [0, 72], sizes = [2, 8], strides = [1, 1]} : vector<2x96xf32> to vector<2x8xf32>
    %cst_10 = arith.constant dense<0.000000e+00> : vector<2x2xf32>
    %29 = tpu.matmul %25, %27, %cst_10 {dimension_numbers = #tpu.dot_dimension_numbers<[1], [1], [0], [0], [0, 0, 1, 0], [], []>} : vector<2x8xbf16>, vector<2x8xbf16>, vector<2x2xf32> -> vector<2x2xf32>
    %cst_11 = arith.constant dense<0xFF800000> : vector<2xf32>
    %30 = vector.multi_reduction <maximumf>, %29, %cst_11 [1] : vector<2x2xf32> to vector<2xf32>
    %31 = vector.shape_cast %30 : vector<2xf32> to vector<2x1xf32>
    %32 = vector.broadcast %31 : vector<2x1xf32> to vector<2x2xf32>
    %33 = arith.subf %29, %32 : vector<2x2xf32>
    %34 = math.exp %33 : vector<2x2xf32>
    %cst_12 = arith.constant dense<0.000000e+00> : vector<2xf32>
    %35 = vector.multi_reduction <add>, %34, %cst_12 [1] : vector<2x2xf32> to vector<2xf32>
    %36 = vector.shape_cast %35 : vector<2xf32> to vector<2x1xf32>
    %37 = vector.broadcast %36 : vector<2x1xf32> to vector<2x2xf32>
    %38 = arith.divf %34, %37 : vector<2x2xf32>
    %cst_13 = arith.constant dense<0.000000e+00> : vector<2x8xf32>
    %39 = tpu.matmul %38, %28, %cst_13 {dimension_numbers = #tpu.dot_dimension_numbers<[1], [0], [0], [1], [0, 0, 1, 1], [], []>} : vector<2x2xf32>, vector<2x8xf32>, vector<2x8xf32> -> vector<2x8xf32>
    %40 = vector.extract_strided_slice %7 {offsets = [0, 16], sizes = [2, 8], strides = [1, 1]} : vector<2x96xf32> to vector<2x8xf32>
    %41 = arith.truncf %40 : vector<2x8xf32> to vector<2x8xbf16>
    %42 = vector.extract_strided_slice %7 {offsets = [0, 48], sizes = [2, 8], strides = [1, 1]} : vector<2x96xf32> to vector<2x8xf32>
    %43 = arith.truncf %42 : vector<2x8xf32> to vector<2x8xbf16>
    %44 = vector.extract_strided_slice %7 {offsets = [0, 80], sizes = [2, 8], strides = [1, 1]} : vector<2x96xf32> to vector<2x8xf32>
    %cst_14 = arith.constant dense<0.000000e+00> : vector<2x2xf32>
    %45 = tpu.matmul %41, %43, %cst_14 {dimension_numbers = #tpu.dot_dimension_numbers<[1], [1], [0], [0], [0, 0, 1, 0], [], []>} : vector<2x8xbf16>, vector<2x8xbf16>, vector<2x2xf32> -> vector<2x2xf32>
    %cst_15 = arith.constant dense<0xFF800000> : vector<2xf32>
    %46 = vector.multi_reduction <maximumf>, %45, %cst_15 [1] : vector<2x2xf32> to vector<2xf32>
    %47 = vector.shape_cast %46 : vector<2xf32> to vector<2x1xf32>
    %48 = vector.broadcast %47 : vector<2x1xf32> to vector<2x2xf32>
    %49 = arith.subf %45, %48 : vector<2x2xf32>
    %50 = math.exp %49 : vector<2x2xf32>
    %cst_16 = arith.constant dense<0.000000e+00> : vector<2xf32>
    %51 = vector.multi_reduction <add>, %50, %cst_16 [1] : vector<2x2xf32> to vector<2xf32>
    %52 = vector.shape_cast %51 : vector<2xf32> to vector<2x1xf32>
    %53 = vector.broadcast %52 : vector<2x1xf32> to vector<2x2xf32>
    %54 = arith.divf %50, %53 : vector<2x2xf32>
    %cst_17 = arith.constant dense<0.000000e+00> : vector<2x8xf32>
    %55 = tpu.matmul %54, %44, %cst_17 {dimension_numbers = #tpu.dot_dimension_numbers<[1], [0], [0], [1], [0, 0, 1, 1], [], []>} : vector<2x2xf32>, vector<2x8xf32>, vector<2x8xf32> -> vector<2x8xf32>
    %56 = vector.extract_strided_slice %7 {offsets = [0, 24], sizes = [2, 8], strides = [1, 1]} : vector<2x96xf32> to vector<2x8xf32>
    %57 = arith.truncf %56 : vector<2x8xf32> to vector<2x8xbf16>
    %58 = vector.extract_strided_slice %7 {offsets = [0, 56], sizes = [2, 8], strides = [1, 1]} : vector<2x96xf32> to vector<2x8xf32>
    %59 = arith.truncf %58 : vector<2x8xf32> to vector<2x8xbf16>
    %60 = vector.extract_strided_slice %7 {offsets = [0, 88], sizes = [2, 8], strides = [1, 1]} : vector<2x96xf32> to vector<2x8xf32>
    %cst_18 = arith.constant dense<0.000000e+00> : vector<2x2xf32>
    %61 = tpu.matmul %57, %59, %cst_18 {dimension_numbers = #tpu.dot_dimension_numbers<[1], [1], [0], [0], [0, 0, 1, 0], [], []>} : vector<2x8xbf16>, vector<2x8xbf16>, vector<2x2xf32> -> vector<2x2xf32>
    %cst_19 = arith.constant dense<0xFF800000> : vector<2xf32>
    %62 = vector.multi_reduction <maximumf>, %61, %cst_19 [1] : vector<2x2xf32> to vector<2xf32>
    %63 = vector.shape_cast %62 : vector<2xf32> to vector<2x1xf32>
    %64 = vector.broadcast %63 : vector<2x1xf32> to vector<2x2xf32>
    %65 = arith.subf %61, %64 : vector<2x2xf32>
    %66 = math.exp %65 : vector<2x2xf32>
    %cst_20 = arith.constant dense<0.000000e+00> : vector<2xf32>
    %67 = vector.multi_reduction <add>, %66, %cst_20 [1] : vector<2x2xf32> to vector<2xf32>
    %68 = vector.shape_cast %67 : vector<2xf32> to vector<2x1xf32>
    %69 = vector.broadcast %68 : vector<2x1xf32> to vector<2x2xf32>
    %70 = arith.divf %66, %69 : vector<2x2xf32>
    %cst_21 = arith.constant dense<0.000000e+00> : vector<2x8xf32>
    %71 = tpu.matmul %70, %60, %cst_21 {dimension_numbers = #tpu.dot_dimension_numbers<[1], [0], [0], [1], [0, 0, 1, 1], [], []>} : vector<2x2xf32>, vector<2x8xf32>, vector<2x8xf32> -> vector<2x8xf32>
    %72 = tpu.concatenate %23, %39, %55, %71 in 1 : vector<2x8xf32>, vector<2x8xf32>, vector<2x8xf32>, vector<2x8xf32> -> vector<2x32xf32>
    %c0_22 = arith.constant 0 : index
    %c0_23 = arith.constant 0 : index
    %73 = vector.load %arg4[%c0_22, %c0_23] : memref<32x32xbf16, #tpu.memory_space<vmem>>, vector<32x32xbf16>
    %c0_24 = arith.constant 0 : index
    %c0_25 = arith.constant 0 : index
    %74 = vector.load %arg5[%c0_24, %c0_25] : memref<1x32xf32, #tpu.memory_space<vmem>>, vector<1x32xf32>
    %75 = arith.truncf %72 : vector<2x32xf32> to vector<2x32xbf16>
    %cst_26 = arith.constant dense<0.000000e+00> : vector<2x32xf32>
    %76 = tpu.matmul %75, %73, %cst_26 {dimension_numbers = #tpu.dot_dimension_numbers<[1], [0], [0], [1], [0, 0, 1, 1], [], []>} : vector<2x32xbf16>, vector<32x32xbf16>, vector<2x32xf32> -> vector<2x32xf32>
    %77 = vector.broadcast %74 : vector<1x32xf32> to vector<2x32xf32>
    %78 = arith.addf %76, %77 : vector<2x32xf32>
    %79 = arith.addf %1, %78 : vector<2x32xf32>
    %c0_27 = arith.constant 0 : index
    %c0_28 = arith.constant 0 : index
    %80 = vector.load %arg6[%c0_27, %c0_28] : memref<1x32xf32, #tpu.memory_space<vmem>>, vector<1x32xf32>
    %c0_29 = arith.constant 0 : index
    %c0_30 = arith.constant 0 : index
    %81 = vector.load %arg7[%c0_29, %c0_30] : memref<1x32xf32, #tpu.memory_space<vmem>>, vector<1x32xf32>
    %cst_31 = arith.constant dense<0.000000e+00> : vector<2xf32>
    %82 = vector.multi_reduction <add>, %79, %cst_31 [1] : vector<2x32xf32> to vector<2xf32>
    %83 = vector.shape_cast %82 : vector<2xf32> to vector<2x1xf32>
    %cst_32 = arith.constant 3.200000e+01 : f32
    %84 = vector.broadcast %cst_32 : f32 to vector<2x1xf32>
    %85 = arith.divf %83, %84 : vector<2x1xf32>
    %86 = vector.broadcast %85 : vector<2x1xf32> to vector<2x32xf32>
    %87 = arith.subf %79, %86 : vector<2x32xf32>
    %88 = arith.mulf %87, %87 : vector<2x32xf32>
    %cst_33 = arith.constant dense<0.000000e+00> : vector<2xf32>
    %89 = vector.multi_reduction <add>, %88, %cst_33 [1] : vector<2x32xf32> to vector<2xf32>
    %90 = vector.shape_cast %89 : vector<2xf32> to vector<2x1xf32>
    %cst_34 = arith.constant 3.200000e+01 : f32
    %91 = vector.broadcast %cst_34 : f32 to vector<2x1xf32>
    %92 = arith.divf %90, %91 : vector<2x1xf32>
    %93 = vector.broadcast %85 : vector<2x1xf32> to vector<2x32xf32>
    %94 = arith.subf %79, %93 : vector<2x32xf32>
    %cst_35 = arith.constant 9.99999974E-6 : f32
    %95 = vector.broadcast %cst_35 : f32 to vector<2x1xf32>
    %96 = arith.addf %92, %95 : vector<2x1xf32>
    %97 = math.rsqrt %96 : vector<2x1xf32>
    %98 = vector.broadcast %97 : vector<2x1xf32> to vector<2x32xf32>
    %99 = arith.mulf %94, %98 : vector<2x32xf32>
    %100 = vector.broadcast %80 : vector<1x32xf32> to vector<2x32xf32>
    %101 = arith.mulf %99, %100 : vector<2x32xf32>
    %102 = vector.broadcast %81 : vector<1x32xf32> to vector<2x32xf32>
    %103 = arith.addf %101, %102 : vector<2x32xf32>
    %104 = arith.truncf %103 : vector<2x32xf32> to vector<2x32xbf16>
    %cst_36 = arith.constant 0.000000e+00 : f32
    %105 = vector.broadcast %cst_36 : f32 to vector<2x32xf32>
    %c0_37 = arith.constant 0 : index
    %c0_38 = arith.constant 0 : index
    %106 = vector.load %arg8[%c0_37, %c0_38] : memref<32x64xbf16, #tpu.memory_space<vmem>>, vector<32x64xbf16>
    %cst_39 = arith.constant dense<0.000000e+00> : vector<2x64xf32>
    %107 = tpu.matmul %104, %106, %cst_39 {dimension_numbers = #tpu.dot_dimension_numbers<[1], [0], [0], [1], [0, 0, 1, 1], [], []>} : vector<2x32xbf16>, vector<32x64xbf16>, vector<2x64xf32> -> vector<2x64xf32>
    %c0_40 = arith.constant 0 : index
    %c0_41 = arith.constant 0 : index
    %108 = vector.load %arg9[%c0_40, %c0_41] : memref<1x64xf32, #tpu.memory_space<vmem>>, vector<1x64xf32>
    %109 = vector.broadcast %108 : vector<1x64xf32> to vector<2x64xf32>
    %110 = arith.addf %107, %109 : vector<2x64xf32>
    %cst_42 = arith.constant 0.000000e+00 : f32
    %111 = vector.broadcast %cst_42 : f32 to vector<2x64xf32>
    %112 = arith.maximumf %110, %111 : vector<2x64xf32>
    %113 = arith.truncf %112 : vector<2x64xf32> to vector<2x64xbf16>
    %c0_43 = arith.constant 0 : index
    %c0_44 = arith.constant 0 : index
    %114 = vector.load %arg10[%c0_43, %c0_44] : memref<64x32xbf16, #tpu.memory_space<vmem>>, vector<64x32xbf16>
    %cst_45 = arith.constant dense<0.000000e+00> : vector<2x32xf32>
    %115 = tpu.matmul %113, %114, %cst_45 {dimension_numbers = #tpu.dot_dimension_numbers<[1], [0], [0], [1], [0, 0, 1, 1], [], []>} : vector<2x64xbf16>, vector<64x32xbf16>, vector<2x32xf32> -> vector<2x32xf32>
    %116 = arith.addf %105, %115 : vector<2x32xf32>
    %117 = arith.addf %103, %116 : vector<2x32xf32>
    %c0_46 = arith.constant 0 : index
    %c0_47 = arith.constant 0 : index
    %118 = vector.load %arg11[%c0_46, %c0_47] : memref<1x32xf32, #tpu.memory_space<vmem>>, vector<1x32xf32>
    %119 = vector.broadcast %118 : vector<1x32xf32> to vector<2x32xf32>
    %120 = arith.addf %117, %119 : vector<2x32xf32>
    %c0_48 = arith.constant 0 : index
    %c0_49 = arith.constant 0 : index
    %121 = vector.load %arg12[%c0_48, %c0_49] : memref<1x32xf32, #tpu.memory_space<vmem>>, vector<1x32xf32>
    %c0_50 = arith.constant 0 : index
    %c0_51 = arith.constant 0 : index
    %122 = vector.load %arg13[%c0_50, %c0_51] : memref<1x32xf32, #tpu.memory_space<vmem>>, vector<1x32xf32>
    %cst_52 = arith.constant dense<0.000000e+00> : vector<2xf32>
    %123 = vector.multi_reduction <add>, %120, %cst_52 [1] : vector<2x32xf32> to vector<2xf32>
    %124 = vector.shape_cast %123 : vector<2xf32> to vector<2x1xf32>
    %cst_53 = arith.constant 3.200000e+01 : f32
    %125 = vector.broadcast %cst_53 : f32 to vector<2x1xf32>
    %126 = arith.divf %124, %125 : vector<2x1xf32>
    %127 = vector.broadcast %126 : vector<2x1xf32> to vector<2x32xf32>
    %128 = arith.subf %120, %127 : vector<2x32xf32>
    %129 = arith.mulf %128, %128 : vector<2x32xf32>
    %cst_54 = arith.constant dense<0.000000e+00> : vector<2xf32>
    %130 = vector.multi_reduction <add>, %129, %cst_54 [1] : vector<2x32xf32> to vector<2xf32>
    %131 = vector.shape_cast %130 : vector<2xf32> to vector<2x1xf32>
    %cst_55 = arith.constant 3.200000e+01 : f32
    %132 = vector.broadcast %cst_55 : f32 to vector<2x1xf32>
    %133 = arith.divf %131, %132 : vector<2x1xf32>
    %134 = vector.broadcast %126 : vector<2x1xf32> to vector<2x32xf32>
    %135 = arith.subf %120, %134 : vector<2x32xf32>
    %cst_56 = arith.constant 9.99999974E-6 : f32
    %136 = vector.broadcast %cst_56 : f32 to vector<2x1xf32>
    %137 = arith.addf %133, %136 : vector<2x1xf32>
    %138 = math.rsqrt %137 : vector<2x1xf32>
    %139 = vector.broadcast %138 : vector<2x1xf32> to vector<2x32xf32>
    %140 = arith.mulf %135, %139 : vector<2x32xf32>
    %141 = vector.broadcast %121 : vector<1x32xf32> to vector<2x32xf32>
    %142 = arith.mulf %140, %141 : vector<2x32xf32>
    %143 = vector.broadcast %122 : vector<1x32xf32> to vector<2x32xf32>
    %144 = arith.addf %142, %143 : vector<2x32xf32>
    %c0_57 = arith.constant 0 : index
    %c0_58 = arith.constant 0 : index
    %c0_59 = arith.constant 0 : index
    %145 = vector.load %arg14[%c0_57, %c0_58, %c0_59] : memref<1x2x32xf32, #tpu.memory_space<vmem>>, vector<1x2x32xf32>
    %146 = vector.shape_cast %145 : vector<1x2x32xf32> to vector<2x32xf32>
    %147 = vector.shape_cast %144 : vector<2x32xf32> to vector<1x2x32xf32>
    tpu.vector_store %arg14[%c0_57, %c0_58, %c0_59], %147 {strides = array<i32>} : memref<1x2x32xf32, #tpu.memory_space<vmem>>, vector<1x2x32xf32>,
    return
  }
  func.func @transform_0(%arg0: i32) -> (i32, i32, i32) {
    %c0_i32 = arith.constant 0 : i32
    %c0_i32_0 = arith.constant 0 : i32
    %c0_i32_1 = arith.constant 0 : i32
    return %arg0, %c0_i32, %c0_i32_0 : i32, i32, i32
  }
  func.func @transform_1(%arg0: i32) -> (i32, i32) {
    %c0_i32 = arith.constant 0 : i32
    %c0_i32_0 = arith.constant 0 : i32
    %c0_i32_1 = arith.constant 0 : i32
    return %c0_i32, %c0_i32_0 : i32, i32
  }
  func.func @transform_2(%arg0: i32) -> (i32, i32) {
    %c0_i32 = arith.constant 0 : i32
    %c0_i32_0 = arith.constant 0 : i32
    %c0_i32_1 = arith.constant 0 : i32
    return %c0_i32, %c0_i32_0 : i32, i32
  }
  func.func @transform_3(%arg0: i32) -> (i32, i32) {
    %c0_i32 = arith.constant 0 : i32
    %c0_i32_0 = arith.constant 0 : i32
    %c0_i32_1 = arith.constant 0 : i32
    return %c0_i32, %c0_i32_0 : i32, i32
  }
  func.func @transform_4(%arg0: i32) -> (i32, i32) {
    %c0_i32 = arith.constant 0 : i32
    %c0_i32_0 = arith.constant 0 : i32
    %c0_i32_1 = arith.constant 0 : i32
    return %c0_i32, %c0_i32_0 : i32, i32
  }
  func.func @transform_5(%arg0: i32) -> (i32, i32) {
    %c0_i32 = arith.constant 0 : i32
    %c0_i32_0 = arith.constant 0 : i32
    %c0_i32_1 = arith.constant 0 : i32
    return %c0_i32, %c0_i32_0 : i32, i32
  }
  func.func @transform_6(%arg0: i32) -> (i32, i32) {
    %c0_i32 = arith.constant 0 : i32
    %c0_i32_0 = arith.constant 0 : i32
    %c0_i32_1 = arith.constant 0 : i32
    return %c0_i32, %c0_i32_0 : i32, i32
  }
  func.func @transform_7(%arg0: i32) -> (i32, i32) {
    %c0_i32 = arith.constant 0 : i32
    %c0_i32_0 = arith.constant 0 : i32
    %c0_i32_1 = arith.constant 0 : i32
    return %c0_i32, %c0_i32_0 : i32, i32
  }
  func.func @transform_8(%arg0: i32) -> (i32, i32) {
    %c0_i32 = arith.constant 0 : i32
    %c0_i32_0 = arith.constant 0 : i32
    %c0_i32_1 = arith.constant 0 : i32
    return %c0_i32, %c0_i32_0 : i32, i32
  }
  func.func @transform_9(%arg0: i32) -> (i32, i32) {
    %c0_i32 = arith.constant 0 : i32
    %c0_i32_0 = arith.constant 0 : i32
    %c0_i32_1 = arith.constant 0 : i32
    return %c0_i32, %c0_i32_0 : i32, i32
  }
  func.func @transform_10(%arg0: i32) -> (i32, i32) {
    %c0_i32 = arith.constant 0 : i32
    %c0_i32_0 = arith.constant 0 : i32
    %c0_i32_1 = arith.constant 0 : i32
    return %c0_i32, %c0_i32_0 : i32, i32
  }
  func.func @transform_11(%arg0: i32) -> (i32, i32) {
    %c0_i32 = arith.constant 0 : i32
    %c0_i32_0 = arith.constant 0 : i32
    %c0_i32_1 = arith.constant 0 : i32
    return %c0_i32, %c0_i32_0 : i32, i32
  }
  func.func @transform_12(%arg0: i32) -> (i32, i32) {
    %c0_i32 = arith.constant 0 : i32
    %c0_i32_0 = arith.constant 0 : i32
    %c0_i32_1 = arith.constant 0 : i32
    return %c0_i32, %c0_i32_0 : i32, i32
  }
  func.func @transform_13(%arg0: i32) -> (i32, i32, i32) {
    %c0_i32 = arith.constant 0 : i32
    %c0_i32_0 = arith.constant 0 : i32
    %c0_i32_1 = arith.constant 0 : i32
    return %arg0, %c0_i32, %c0_i32_0 : i32, i32, i32
  }
}

module attributes {stable_mosaic.version = 11 : i64} {
  func.func @_pooling_kernel(%arg0: i32, %arg1: memref<2x1x32x16xf32, #tpu.memory_space<vmem>>, %arg2: memref<16x96xf32, #tpu.memory_space<vmem>>, %arg3: memref<32x96xbf16, #tpu.memory_space<vmem>>, %arg4: memref<32x32xbf16, #tpu.memory_space<vmem>>, %arg5: memref<1x32xf32, #tpu.memory_space<vmem>>, %arg6: memref<1x2x32xf32, #tpu.memory_space<vmem>>) attributes {dimension_semantics = [#tpu.dimension_semantics<parallel>], iteration_bounds = array<i64: 4>, scalar_prefetch = 0 : i64, scratch_operands = 0 : i64, tpu.core_type = #tpu.core_type<tc>, window_params = [{transform_indices = @transform_0, window_bounds = array<i64: 2, 1, 32, 16>}, {pipeline_mode = #tpu.pipeline_mode<synchronous>, transform_indices = @transform_1, window_bounds = array<i64: 16, 96>}, {pipeline_mode = #tpu.pipeline_mode<synchronous>, transform_indices = @transform_2, window_bounds = array<i64: 32, 96>}, {pipeline_mode = #tpu.pipeline_mode<synchronous>, transform_indices = @transform_3, window_bounds = array<i64: 32, 32>}, {pipeline_mode = #tpu.pipeline_mode<synchronous>, transform_indices = @transform_4, window_bounds = array<i64: 1, 32>}, {transform_indices = @transform_5, window_bounds = array<i64: 1, 2, 32>}]} {
    %c0 = arith.constant 0 : index
    %c0_0 = arith.constant 0 : index
    %0 = vector.load %arg2[%c0, %c0_0] : memref<16x96xf32, #tpu.memory_space<vmem>>, vector<16x96xf32>
    %c0_1 = arith.constant 0 : index
    %c0_2 = arith.constant 0 : index
    %1 = vector.load %arg3[%c0_1, %c0_2] : memref<32x96xbf16, #tpu.memory_space<vmem>>, vector<32x96xbf16>
    %c0_3 = arith.constant 0 : index
    %c0_4 = arith.constant 0 : index
    %c0_5 = arith.constant 0 : index
    %c0_6 = arith.constant 0 : index
    %2 = vector.load %arg1[%c0_3, %c0_4, %c0_5, %c0_6] : memref<2x1x32x16xf32, #tpu.memory_space<vmem>>, vector<1x1x32x16xf32>
    %3 = vector.shape_cast %2 : vector<1x1x32x16xf32> to vector<32x16xf32>
    %4 = arith.truncf %3 : vector<32x16xf32> to vector<32x16xbf16>
    %cst = arith.constant dense<0.000000e+00> : vector<16x96xf32>
    %5 = tpu.matmul %4, %1, %cst {dimension_numbers = #tpu.dot_dimension_numbers<[0], [0], [1], [1], [0, 1, 1, 1], [], []>} : vector<32x16xbf16>, vector<32x96xbf16>, vector<16x96xf32> -> vector<16x96xf32>
    %6 = arith.addf %5, %0 : vector<16x96xf32>
    %7 = vector.extract_strided_slice %6 {offsets = [0, 0], sizes = [16, 8], strides = [1, 1]} : vector<16x96xf32> to vector<16x8xf32>
    %8 = arith.truncf %7 : vector<16x8xf32> to vector<16x8xbf16>
    %9 = vector.extract_strided_slice %6 {offsets = [0, 32], sizes = [16, 8], strides = [1, 1]} : vector<16x96xf32> to vector<16x8xf32>
    %10 = arith.truncf %9 : vector<16x8xf32> to vector<16x8xbf16>
    %11 = vector.extract_strided_slice %6 {offsets = [0, 64], sizes = [16, 8], strides = [1, 1]} : vector<16x96xf32> to vector<16x8xf32>
    %cst_7 = arith.constant dense<0.000000e+00> : vector<16x16xf32>
    %12 = tpu.matmul %8, %10, %cst_7 {dimension_numbers = #tpu.dot_dimension_numbers<[1], [1], [0], [0], [0, 0, 1, 0], [], []>} : vector<16x8xbf16>, vector<16x8xbf16>, vector<16x16xf32> -> vector<16x16xf32>
    %cst_8 = arith.constant dense<0xFF800000> : vector<16xf32>
    %13 = vector.multi_reduction <maximumf>, %12, %cst_8 [1] : vector<16x16xf32> to vector<16xf32>
    %14 = vector.shape_cast %13 : vector<16xf32> to vector<16x1xf32>
    %15 = vector.broadcast %14 : vector<16x1xf32> to vector<16x16xf32>
    %16 = arith.subf %12, %15 : vector<16x16xf32>
    %17 = math.exp %16 : vector<16x16xf32>
    %cst_9 = arith.constant dense<0.000000e+00> : vector<16xf32>
    %18 = vector.multi_reduction <add>, %17, %cst_9 [1] : vector<16x16xf32> to vector<16xf32>
    %19 = vector.shape_cast %18 : vector<16xf32> to vector<16x1xf32>
    %20 = vector.broadcast %19 : vector<16x1xf32> to vector<16x16xf32>
    %21 = arith.divf %17, %20 : vector<16x16xf32>
    %cst_10 = arith.constant dense<0.000000e+00> : vector<16xf32>
    %22 = vector.multi_reduction <add>, %21, %cst_10 [0] : vector<16x16xf32> to vector<16xf32>
    %23 = vector.shape_cast %22 : vector<16xf32> to vector<1x16xf32>
    %cst_11 = arith.constant 6.250000e-02 : f32
    %24 = vector.broadcast %cst_11 : f32 to vector<1x16xf32>
    %25 = arith.mulf %23, %24 : vector<1x16xf32>
    %cst_12 = arith.constant dense<0.000000e+00> : vector<1x8xf32>
    %26 = tpu.matmul %25, %11, %cst_12 {dimension_numbers = #tpu.dot_dimension_numbers<[1], [0], [0], [1], [0, 0, 1, 1], [], []>} : vector<1x16xf32>, vector<16x8xf32>, vector<1x8xf32> -> vector<1x8xf32>
    %27 = vector.extract_strided_slice %6 {offsets = [0, 8], sizes = [16, 8], strides = [1, 1]} : vector<16x96xf32> to vector<16x8xf32>
    %28 = arith.truncf %27 : vector<16x8xf32> to vector<16x8xbf16>
    %29 = vector.extract_strided_slice %6 {offsets = [0, 40], sizes = [16, 8], strides = [1, 1]} : vector<16x96xf32> to vector<16x8xf32>
    %30 = arith.truncf %29 : vector<16x8xf32> to vector<16x8xbf16>
    %31 = vector.extract_strided_slice %6 {offsets = [0, 72], sizes = [16, 8], strides = [1, 1]} : vector<16x96xf32> to vector<16x8xf32>
    %cst_13 = arith.constant dense<0.000000e+00> : vector<16x16xf32>
    %32 = tpu.matmul %28, %30, %cst_13 {dimension_numbers = #tpu.dot_dimension_numbers<[1], [1], [0], [0], [0, 0, 1, 0], [], []>} : vector<16x8xbf16>, vector<16x8xbf16>, vector<16x16xf32> -> vector<16x16xf32>
    %cst_14 = arith.constant dense<0xFF800000> : vector<16xf32>
    %33 = vector.multi_reduction <maximumf>, %32, %cst_14 [1] : vector<16x16xf32> to vector<16xf32>
    %34 = vector.shape_cast %33 : vector<16xf32> to vector<16x1xf32>
    %35 = vector.broadcast %34 : vector<16x1xf32> to vector<16x16xf32>
    %36 = arith.subf %32, %35 : vector<16x16xf32>
    %37 = math.exp %36 : vector<16x16xf32>
    %cst_15 = arith.constant dense<0.000000e+00> : vector<16xf32>
    %38 = vector.multi_reduction <add>, %37, %cst_15 [1] : vector<16x16xf32> to vector<16xf32>
    %39 = vector.shape_cast %38 : vector<16xf32> to vector<16x1xf32>
    %40 = vector.broadcast %39 : vector<16x1xf32> to vector<16x16xf32>
    %41 = arith.divf %37, %40 : vector<16x16xf32>
    %cst_16 = arith.constant dense<0.000000e+00> : vector<16xf32>
    %42 = vector.multi_reduction <add>, %41, %cst_16 [0] : vector<16x16xf32> to vector<16xf32>
    %43 = vector.shape_cast %42 : vector<16xf32> to vector<1x16xf32>
    %cst_17 = arith.constant 6.250000e-02 : f32
    %44 = vector.broadcast %cst_17 : f32 to vector<1x16xf32>
    %45 = arith.mulf %43, %44 : vector<1x16xf32>
    %cst_18 = arith.constant dense<0.000000e+00> : vector<1x8xf32>
    %46 = tpu.matmul %45, %31, %cst_18 {dimension_numbers = #tpu.dot_dimension_numbers<[1], [0], [0], [1], [0, 0, 1, 1], [], []>} : vector<1x16xf32>, vector<16x8xf32>, vector<1x8xf32> -> vector<1x8xf32>
    %47 = vector.extract_strided_slice %6 {offsets = [0, 16], sizes = [16, 8], strides = [1, 1]} : vector<16x96xf32> to vector<16x8xf32>
    %48 = arith.truncf %47 : vector<16x8xf32> to vector<16x8xbf16>
    %49 = vector.extract_strided_slice %6 {offsets = [0, 48], sizes = [16, 8], strides = [1, 1]} : vector<16x96xf32> to vector<16x8xf32>
    %50 = arith.truncf %49 : vector<16x8xf32> to vector<16x8xbf16>
    %51 = vector.extract_strided_slice %6 {offsets = [0, 80], sizes = [16, 8], strides = [1, 1]} : vector<16x96xf32> to vector<16x8xf32>
    %cst_19 = arith.constant dense<0.000000e+00> : vector<16x16xf32>
    %52 = tpu.matmul %48, %50, %cst_19 {dimension_numbers = #tpu.dot_dimension_numbers<[1], [1], [0], [0], [0, 0, 1, 0], [], []>} : vector<16x8xbf16>, vector<16x8xbf16>, vector<16x16xf32> -> vector<16x16xf32>
    %cst_20 = arith.constant dense<0xFF800000> : vector<16xf32>
    %53 = vector.multi_reduction <maximumf>, %52, %cst_20 [1] : vector<16x16xf32> to vector<16xf32>
    %54 = vector.shape_cast %53 : vector<16xf32> to vector<16x1xf32>
    %55 = vector.broadcast %54 : vector<16x1xf32> to vector<16x16xf32>
    %56 = arith.subf %52, %55 : vector<16x16xf32>
    %57 = math.exp %56 : vector<16x16xf32>
    %cst_21 = arith.constant dense<0.000000e+00> : vector<16xf32>
    %58 = vector.multi_reduction <add>, %57, %cst_21 [1] : vector<16x16xf32> to vector<16xf32>
    %59 = vector.shape_cast %58 : vector<16xf32> to vector<16x1xf32>
    %60 = vector.broadcast %59 : vector<16x1xf32> to vector<16x16xf32>
    %61 = arith.divf %57, %60 : vector<16x16xf32>
    %cst_22 = arith.constant dense<0.000000e+00> : vector<16xf32>
    %62 = vector.multi_reduction <add>, %61, %cst_22 [0] : vector<16x16xf32> to vector<16xf32>
    %63 = vector.shape_cast %62 : vector<16xf32> to vector<1x16xf32>
    %cst_23 = arith.constant 6.250000e-02 : f32
    %64 = vector.broadcast %cst_23 : f32 to vector<1x16xf32>
    %65 = arith.mulf %63, %64 : vector<1x16xf32>
    %cst_24 = arith.constant dense<0.000000e+00> : vector<1x8xf32>
    %66 = tpu.matmul %65, %51, %cst_24 {dimension_numbers = #tpu.dot_dimension_numbers<[1], [0], [0], [1], [0, 0, 1, 1], [], []>} : vector<1x16xf32>, vector<16x8xf32>, vector<1x8xf32> -> vector<1x8xf32>
    %67 = vector.extract_strided_slice %6 {offsets = [0, 24], sizes = [16, 8], strides = [1, 1]} : vector<16x96xf32> to vector<16x8xf32>
    %68 = arith.truncf %67 : vector<16x8xf32> to vector<16x8xbf16>
    %69 = vector.extract_strided_slice %6 {offsets = [0, 56], sizes = [16, 8], strides = [1, 1]} : vector<16x96xf32> to vector<16x8xf32>
    %70 = arith.truncf %69 : vector<16x8xf32> to vector<16x8xbf16>
    %71 = vector.extract_strided_slice %6 {offsets = [0, 88], sizes = [16, 8], strides = [1, 1]} : vector<16x96xf32> to vector<16x8xf32>
    %cst_25 = arith.constant dense<0.000000e+00> : vector<16x16xf32>
    %72 = tpu.matmul %68, %70, %cst_25 {dimension_numbers = #tpu.dot_dimension_numbers<[1], [1], [0], [0], [0, 0, 1, 0], [], []>} : vector<16x8xbf16>, vector<16x8xbf16>, vector<16x16xf32> -> vector<16x16xf32>
    %cst_26 = arith.constant dense<0xFF800000> : vector<16xf32>
    %73 = vector.multi_reduction <maximumf>, %72, %cst_26 [1] : vector<16x16xf32> to vector<16xf32>
    %74 = vector.shape_cast %73 : vector<16xf32> to vector<16x1xf32>
    %75 = vector.broadcast %74 : vector<16x1xf32> to vector<16x16xf32>
    %76 = arith.subf %72, %75 : vector<16x16xf32>
    %77 = math.exp %76 : vector<16x16xf32>
    %cst_27 = arith.constant dense<0.000000e+00> : vector<16xf32>
    %78 = vector.multi_reduction <add>, %77, %cst_27 [1] : vector<16x16xf32> to vector<16xf32>
    %79 = vector.shape_cast %78 : vector<16xf32> to vector<16x1xf32>
    %80 = vector.broadcast %79 : vector<16x1xf32> to vector<16x16xf32>
    %81 = arith.divf %77, %80 : vector<16x16xf32>
    %cst_28 = arith.constant dense<0.000000e+00> : vector<16xf32>
    %82 = vector.multi_reduction <add>, %81, %cst_28 [0] : vector<16x16xf32> to vector<16xf32>
    %83 = vector.shape_cast %82 : vector<16xf32> to vector<1x16xf32>
    %cst_29 = arith.constant 6.250000e-02 : f32
    %84 = vector.broadcast %cst_29 : f32 to vector<1x16xf32>
    %85 = arith.mulf %83, %84 : vector<1x16xf32>
    %cst_30 = arith.constant dense<0.000000e+00> : vector<1x8xf32>
    %86 = tpu.matmul %85, %71, %cst_30 {dimension_numbers = #tpu.dot_dimension_numbers<[1], [0], [0], [1], [0, 0, 1, 1], [], []>} : vector<1x16xf32>, vector<16x8xf32>, vector<1x8xf32> -> vector<1x8xf32>
    %87 = tpu.concatenate %26, %46, %66, %86 in 1 : vector<1x8xf32>, vector<1x8xf32>, vector<1x8xf32>, vector<1x8xf32> -> vector<1x32xf32>
    %c1 = arith.constant 1 : index
    %c0_31 = arith.constant 0 : index
    %c0_32 = arith.constant 0 : index
    %c0_33 = arith.constant 0 : index
    %88 = vector.load %arg1[%c1, %c0_31, %c0_32, %c0_33] : memref<2x1x32x16xf32, #tpu.memory_space<vmem>>, vector<1x1x32x16xf32>
    %89 = vector.shape_cast %88 : vector<1x1x32x16xf32> to vector<32x16xf32>
    %90 = arith.truncf %89 : vector<32x16xf32> to vector<32x16xbf16>
    %cst_34 = arith.constant dense<0.000000e+00> : vector<16x96xf32>
    %91 = tpu.matmul %90, %1, %cst_34 {dimension_numbers = #tpu.dot_dimension_numbers<[0], [0], [1], [1], [0, 1, 1, 1], [], []>} : vector<32x16xbf16>, vector<32x96xbf16>, vector<16x96xf32> -> vector<16x96xf32>
    %92 = arith.addf %91, %0 : vector<16x96xf32>
    %93 = vector.extract_strided_slice %92 {offsets = [0, 0], sizes = [16, 8], strides = [1, 1]} : vector<16x96xf32> to vector<16x8xf32>
    %94 = arith.truncf %93 : vector<16x8xf32> to vector<16x8xbf16>
    %95 = vector.extract_strided_slice %92 {offsets = [0, 32], sizes = [16, 8], strides = [1, 1]} : vector<16x96xf32> to vector<16x8xf32>
    %96 = arith.truncf %95 : vector<16x8xf32> to vector<16x8xbf16>
    %97 = vector.extract_strided_slice %92 {offsets = [0, 64], sizes = [16, 8], strides = [1, 1]} : vector<16x96xf32> to vector<16x8xf32>
    %cst_35 = arith.constant dense<0.000000e+00> : vector<16x16xf32>
    %98 = tpu.matmul %94, %96, %cst_35 {dimension_numbers = #tpu.dot_dimension_numbers<[1], [1], [0], [0], [0, 0, 1, 0], [], []>} : vector<16x8xbf16>, vector<16x8xbf16>, vector<16x16xf32> -> vector<16x16xf32>
    %cst_36 = arith.constant dense<0xFF800000> : vector<16xf32>
    %99 = vector.multi_reduction <maximumf>, %98, %cst_36 [1] : vector<16x16xf32> to vector<16xf32>
    %100 = vector.shape_cast %99 : vector<16xf32> to vector<16x1xf32>
    %101 = vector.broadcast %100 : vector<16x1xf32> to vector<16x16xf32>
    %102 = arith.subf %98, %101 : vector<16x16xf32>
    %103 = math.exp %102 : vector<16x16xf32>
    %cst_37 = arith.constant dense<0.000000e+00> : vector<16xf32>
    %104 = vector.multi_reduction <add>, %103, %cst_37 [1] : vector<16x16xf32> to vector<16xf32>
    %105 = vector.shape_cast %104 : vector<16xf32> to vector<16x1xf32>
    %106 = vector.broadcast %105 : vector<16x1xf32> to vector<16x16xf32>
    %107 = arith.divf %103, %106 : vector<16x16xf32>
    %cst_38 = arith.constant dense<0.000000e+00> : vector<16xf32>
    %108 = vector.multi_reduction <add>, %107, %cst_38 [0] : vector<16x16xf32> to vector<16xf32>
    %109 = vector.shape_cast %108 : vector<16xf32> to vector<1x16xf32>
    %cst_39 = arith.constant 6.250000e-02 : f32
    %110 = vector.broadcast %cst_39 : f32 to vector<1x16xf32>
    %111 = arith.mulf %109, %110 : vector<1x16xf32>
    %cst_40 = arith.constant dense<0.000000e+00> : vector<1x8xf32>
    %112 = tpu.matmul %111, %97, %cst_40 {dimension_numbers = #tpu.dot_dimension_numbers<[1], [0], [0], [1], [0, 0, 1, 1], [], []>} : vector<1x16xf32>, vector<16x8xf32>, vector<1x8xf32> -> vector<1x8xf32>
    %113 = vector.extract_strided_slice %92 {offsets = [0, 8], sizes = [16, 8], strides = [1, 1]} : vector<16x96xf32> to vector<16x8xf32>
    %114 = arith.truncf %113 : vector<16x8xf32> to vector<16x8xbf16>
    %115 = vector.extract_strided_slice %92 {offsets = [0, 40], sizes = [16, 8], strides = [1, 1]} : vector<16x96xf32> to vector<16x8xf32>
    %116 = arith.truncf %115 : vector<16x8xf32> to vector<16x8xbf16>
    %117 = vector.extract_strided_slice %92 {offsets = [0, 72], sizes = [16, 8], strides = [1, 1]} : vector<16x96xf32> to vector<16x8xf32>
    %cst_41 = arith.constant dense<0.000000e+00> : vector<16x16xf32>
    %118 = tpu.matmul %114, %116, %cst_41 {dimension_numbers = #tpu.dot_dimension_numbers<[1], [1], [0], [0], [0, 0, 1, 0], [], []>} : vector<16x8xbf16>, vector<16x8xbf16>, vector<16x16xf32> -> vector<16x16xf32>
    %cst_42 = arith.constant dense<0xFF800000> : vector<16xf32>
    %119 = vector.multi_reduction <maximumf>, %118, %cst_42 [1] : vector<16x16xf32> to vector<16xf32>
    %120 = vector.shape_cast %119 : vector<16xf32> to vector<16x1xf32>
    %121 = vector.broadcast %120 : vector<16x1xf32> to vector<16x16xf32>
    %122 = arith.subf %118, %121 : vector<16x16xf32>
    %123 = math.exp %122 : vector<16x16xf32>
    %cst_43 = arith.constant dense<0.000000e+00> : vector<16xf32>
    %124 = vector.multi_reduction <add>, %123, %cst_43 [1] : vector<16x16xf32> to vector<16xf32>
    %125 = vector.shape_cast %124 : vector<16xf32> to vector<16x1xf32>
    %126 = vector.broadcast %125 : vector<16x1xf32> to vector<16x16xf32>
    %127 = arith.divf %123, %126 : vector<16x16xf32>
    %cst_44 = arith.constant dense<0.000000e+00> : vector<16xf32>
    %128 = vector.multi_reduction <add>, %127, %cst_44 [0] : vector<16x16xf32> to vector<16xf32>
    %129 = vector.shape_cast %128 : vector<16xf32> to vector<1x16xf32>
    %cst_45 = arith.constant 6.250000e-02 : f32
    %130 = vector.broadcast %cst_45 : f32 to vector<1x16xf32>
    %131 = arith.mulf %129, %130 : vector<1x16xf32>
    %cst_46 = arith.constant dense<0.000000e+00> : vector<1x8xf32>
    %132 = tpu.matmul %131, %117, %cst_46 {dimension_numbers = #tpu.dot_dimension_numbers<[1], [0], [0], [1], [0, 0, 1, 1], [], []>} : vector<1x16xf32>, vector<16x8xf32>, vector<1x8xf32> -> vector<1x8xf32>
    %133 = vector.extract_strided_slice %92 {offsets = [0, 16], sizes = [16, 8], strides = [1, 1]} : vector<16x96xf32> to vector<16x8xf32>
    %134 = arith.truncf %133 : vector<16x8xf32> to vector<16x8xbf16>
    %135 = vector.extract_strided_slice %92 {offsets = [0, 48], sizes = [16, 8], strides = [1, 1]} : vector<16x96xf32> to vector<16x8xf32>
    %136 = arith.truncf %135 : vector<16x8xf32> to vector<16x8xbf16>
    %137 = vector.extract_strided_slice %92 {offsets = [0, 80], sizes = [16, 8], strides = [1, 1]} : vector<16x96xf32> to vector<16x8xf32>
    %cst_47 = arith.constant dense<0.000000e+00> : vector<16x16xf32>
    %138 = tpu.matmul %134, %136, %cst_47 {dimension_numbers = #tpu.dot_dimension_numbers<[1], [1], [0], [0], [0, 0, 1, 0], [], []>} : vector<16x8xbf16>, vector<16x8xbf16>, vector<16x16xf32> -> vector<16x16xf32>
    %cst_48 = arith.constant dense<0xFF800000> : vector<16xf32>
    %139 = vector.multi_reduction <maximumf>, %138, %cst_48 [1] : vector<16x16xf32> to vector<16xf32>
    %140 = vector.shape_cast %139 : vector<16xf32> to vector<16x1xf32>
    %141 = vector.broadcast %140 : vector<16x1xf32> to vector<16x16xf32>
    %142 = arith.subf %138, %141 : vector<16x16xf32>
    %143 = math.exp %142 : vector<16x16xf32>
    %cst_49 = arith.constant dense<0.000000e+00> : vector<16xf32>
    %144 = vector.multi_reduction <add>, %143, %cst_49 [1] : vector<16x16xf32> to vector<16xf32>
    %145 = vector.shape_cast %144 : vector<16xf32> to vector<16x1xf32>
    %146 = vector.broadcast %145 : vector<16x1xf32> to vector<16x16xf32>
    %147 = arith.divf %143, %146 : vector<16x16xf32>
    %cst_50 = arith.constant dense<0.000000e+00> : vector<16xf32>
    %148 = vector.multi_reduction <add>, %147, %cst_50 [0] : vector<16x16xf32> to vector<16xf32>
    %149 = vector.shape_cast %148 : vector<16xf32> to vector<1x16xf32>
    %cst_51 = arith.constant 6.250000e-02 : f32
    %150 = vector.broadcast %cst_51 : f32 to vector<1x16xf32>
    %151 = arith.mulf %149, %150 : vector<1x16xf32>
    %cst_52 = arith.constant dense<0.000000e+00> : vector<1x8xf32>
    %152 = tpu.matmul %151, %137, %cst_52 {dimension_numbers = #tpu.dot_dimension_numbers<[1], [0], [0], [1], [0, 0, 1, 1], [], []>} : vector<1x16xf32>, vector<16x8xf32>, vector<1x8xf32> -> vector<1x8xf32>
    %153 = vector.extract_strided_slice %92 {offsets = [0, 24], sizes = [16, 8], strides = [1, 1]} : vector<16x96xf32> to vector<16x8xf32>
    %154 = arith.truncf %153 : vector<16x8xf32> to vector<16x8xbf16>
    %155 = vector.extract_strided_slice %92 {offsets = [0, 56], sizes = [16, 8], strides = [1, 1]} : vector<16x96xf32> to vector<16x8xf32>
    %156 = arith.truncf %155 : vector<16x8xf32> to vector<16x8xbf16>
    %157 = vector.extract_strided_slice %92 {offsets = [0, 88], sizes = [16, 8], strides = [1, 1]} : vector<16x96xf32> to vector<16x8xf32>
    %cst_53 = arith.constant dense<0.000000e+00> : vector<16x16xf32>
    %158 = tpu.matmul %154, %156, %cst_53 {dimension_numbers = #tpu.dot_dimension_numbers<[1], [1], [0], [0], [0, 0, 1, 0], [], []>} : vector<16x8xbf16>, vector<16x8xbf16>, vector<16x16xf32> -> vector<16x16xf32>
    %cst_54 = arith.constant dense<0xFF800000> : vector<16xf32>
    %159 = vector.multi_reduction <maximumf>, %158, %cst_54 [1] : vector<16x16xf32> to vector<16xf32>
    %160 = vector.shape_cast %159 : vector<16xf32> to vector<16x1xf32>
    %161 = vector.broadcast %160 : vector<16x1xf32> to vector<16x16xf32>
    %162 = arith.subf %158, %161 : vector<16x16xf32>
    %163 = math.exp %162 : vector<16x16xf32>
    %cst_55 = arith.constant dense<0.000000e+00> : vector<16xf32>
    %164 = vector.multi_reduction <add>, %163, %cst_55 [1] : vector<16x16xf32> to vector<16xf32>
    %165 = vector.shape_cast %164 : vector<16xf32> to vector<16x1xf32>
    %166 = vector.broadcast %165 : vector<16x1xf32> to vector<16x16xf32>
    %167 = arith.divf %163, %166 : vector<16x16xf32>
    %cst_56 = arith.constant dense<0.000000e+00> : vector<16xf32>
    %168 = vector.multi_reduction <add>, %167, %cst_56 [0] : vector<16x16xf32> to vector<16xf32>
    %169 = vector.shape_cast %168 : vector<16xf32> to vector<1x16xf32>
    %cst_57 = arith.constant 6.250000e-02 : f32
    %170 = vector.broadcast %cst_57 : f32 to vector<1x16xf32>
    %171 = arith.mulf %169, %170 : vector<1x16xf32>
    %cst_58 = arith.constant dense<0.000000e+00> : vector<1x8xf32>
    %172 = tpu.matmul %171, %157, %cst_58 {dimension_numbers = #tpu.dot_dimension_numbers<[1], [0], [0], [1], [0, 0, 1, 1], [], []>} : vector<1x16xf32>, vector<16x8xf32>, vector<1x8xf32> -> vector<1x8xf32>
    %173 = tpu.concatenate %112, %132, %152, %172 in 1 : vector<1x8xf32>, vector<1x8xf32>, vector<1x8xf32>, vector<1x8xf32> -> vector<1x32xf32>
    %174 = tpu.concatenate %87, %173 in 0 : vector<1x32xf32>, vector<1x32xf32> -> vector<2x32xf32>
    %c0_59 = arith.constant 0 : index
    %c0_60 = arith.constant 0 : index
    %175 = vector.load %arg4[%c0_59, %c0_60] : memref<32x32xbf16, #tpu.memory_space<vmem>>, vector<32x32xbf16>
    %c0_61 = arith.constant 0 : index
    %c0_62 = arith.constant 0 : index
    %176 = vector.load %arg5[%c0_61, %c0_62] : memref<1x32xf32, #tpu.memory_space<vmem>>, vector<1x32xf32>
    %177 = arith.truncf %174 : vector<2x32xf32> to vector<2x32xbf16>
    %cst_63 = arith.constant dense<0.000000e+00> : vector<2x32xf32>
    %178 = tpu.matmul %177, %175, %cst_63 {dimension_numbers = #tpu.dot_dimension_numbers<[1], [0], [0], [1], [0, 0, 1, 1], [], []>} : vector<2x32xbf16>, vector<32x32xbf16>, vector<2x32xf32> -> vector<2x32xf32>
    %179 = vector.broadcast %176 : vector<1x32xf32> to vector<2x32xf32>
    %180 = arith.addf %178, %179 : vector<2x32xf32>
    %c0_64 = arith.constant 0 : index
    %c0_65 = arith.constant 0 : index
    %c0_66 = arith.constant 0 : index
    %181 = vector.load %arg6[%c0_64, %c0_65, %c0_66] : memref<1x2x32xf32, #tpu.memory_space<vmem>>, vector<1x2x32xf32>
    %182 = vector.shape_cast %181 : vector<1x2x32xf32> to vector<2x32xf32>
    %183 = vector.shape_cast %180 : vector<2x32xf32> to vector<1x2x32xf32>
    tpu.vector_store %arg6[%c0_64, %c0_65, %c0_66], %183 {strides = array<i32>} : memref<1x2x32xf32, #tpu.memory_space<vmem>>, vector<1x2x32xf32>,
    return
  }
  func.func @transform_0(%arg0: i32) -> (i32, i32, i32, i32) {
    %c0_i32 = arith.constant 0 : i32
    %c0_i32_0 = arith.constant 0 : i32
    %c0_i32_1 = arith.constant 0 : i32
    %c0_i32_2 = arith.constant 0 : i32
    return %c0_i32, %arg0, %c0_i32_0, %c0_i32_1 : i32, i32, i32, i32
  }
  func.func @transform_1(%arg0: i32) -> (i32, i32) {
    %c0_i32 = arith.constant 0 : i32
    %c0_i32_0 = arith.constant 0 : i32
    %c0_i32_1 = arith.constant 0 : i32
    return %c0_i32, %c0_i32_0 : i32, i32
  }
  func.func @transform_2(%arg0: i32) -> (i32, i32) {
    %c0_i32 = arith.constant 0 : i32
    %c0_i32_0 = arith.constant 0 : i32
    %c0_i32_1 = arith.constant 0 : i32
    return %c0_i32, %c0_i32_0 : i32, i32
  }
  func.func @transform_3(%arg0: i32) -> (i32, i32) {
    %c0_i32 = arith.constant 0 : i32
    %c0_i32_0 = arith.constant 0 : i32
    %c0_i32_1 = arith.constant 0 : i32
    return %c0_i32, %c0_i32_0 : i32, i32
  }
  func.func @transform_4(%arg0: i32) -> (i32, i32) {
    %c0_i32 = arith.constant 0 : i32
    %c0_i32_0 = arith.constant 0 : i32
    %c0_i32_1 = arith.constant 0 : i32
    return %c0_i32, %c0_i32_0 : i32, i32
  }
  func.func @transform_5(%arg0: i32) -> (i32, i32, i32) {
    %c0_i32 = arith.constant 0 : i32
    %c0_i32_0 = arith.constant 0 : i32
    %c0_i32_1 = arith.constant 0 : i32
    return %arg0, %c0_i32, %c0_i32_0 : i32, i32, i32
  }
}

module attributes {stable_mosaic.version = 11 : i64} {
  func.func @_encoder_layer_latent_kernel(%arg0: i32, %arg1: memref<1x2x32xf32, #tpu.memory_space<vmem>>, %arg2: memref<32x96xbf16, #tpu.memory_space<vmem>>, %arg3: memref<1x96xf32, #tpu.memory_space<vmem>>, %arg4: memref<32x32xbf16, #tpu.memory_space<vmem>>, %arg5: memref<1x32xf32, #tpu.memory_space<vmem>>, %arg6: memref<1x32xf32, #tpu.memory_space<vmem>>, %arg7: memref<1x32xf32, #tpu.memory_space<vmem>>, %arg8: memref<32x64xbf16, #tpu.memory_space<vmem>>, %arg9: memref<1x64xf32, #tpu.memory_space<vmem>>, %arg10: memref<64x32xbf16, #tpu.memory_space<vmem>>, %arg11: memref<1x32xf32, #tpu.memory_space<vmem>>, %arg12: memref<1x32xf32, #tpu.memory_space<vmem>>, %arg13: memref<1x32xf32, #tpu.memory_space<vmem>>, %arg14: memref<32x64xbf16, #tpu.memory_space<vmem>>, %arg15: memref<1x64xf32, #tpu.memory_space<vmem>>, %arg16: memref<2x32xf32, #tpu.memory_space<vmem>>, %arg17: memref<2x32xf32, #tpu.memory_space<vmem>>, %arg18: memref<2x32xf32, #tpu.memory_space<vmem>>) attributes {dimension_semantics = [#tpu.dimension_semantics<arbitrary>], iteration_bounds = array<i64: 4>, scalar_prefetch = 0 : i64, scratch_operands = 1 : i64, tpu.core_type = #tpu.core_type<tc>, window_params = [{transform_indices = @transform_0, window_bounds = array<i64: 1, 2, 32>}, {pipeline_mode = #tpu.pipeline_mode<synchronous>, transform_indices = @transform_1, window_bounds = array<i64: 32, 96>}, {pipeline_mode = #tpu.pipeline_mode<synchronous>, transform_indices = @transform_2, window_bounds = array<i64: 1, 96>}, {pipeline_mode = #tpu.pipeline_mode<synchronous>, transform_indices = @transform_3, window_bounds = array<i64: 32, 32>}, {pipeline_mode = #tpu.pipeline_mode<synchronous>, transform_indices = @transform_4, window_bounds = array<i64: 1, 32>}, {pipeline_mode = #tpu.pipeline_mode<synchronous>, transform_indices = @transform_5, window_bounds = array<i64: 1, 32>}, {pipeline_mode = #tpu.pipeline_mode<synchronous>, transform_indices = @transform_6, window_bounds = array<i64: 1, 32>}, {pipeline_mode = #tpu.pipeline_mode<synchronous>, transform_indices = @transform_7, window_bounds = array<i64: 32, 64>}, {pipeline_mode = #tpu.pipeline_mode<synchronous>, transform_indices = @transform_8, window_bounds = array<i64: 1, 64>}, {pipeline_mode = #tpu.pipeline_mode<synchronous>, transform_indices = @transform_9, window_bounds = array<i64: 64, 32>}, {pipeline_mode = #tpu.pipeline_mode<synchronous>, transform_indices = @transform_10, window_bounds = array<i64: 1, 32>}, {pipeline_mode = #tpu.pipeline_mode<synchronous>, transform_indices = @transform_11, window_bounds = array<i64: 1, 32>}, {pipeline_mode = #tpu.pipeline_mode<synchronous>, transform_indices = @transform_12, window_bounds = array<i64: 1, 32>}, {pipeline_mode = #tpu.pipeline_mode<synchronous>, transform_indices = @transform_13, window_bounds = array<i64: 32, 64>}, {pipeline_mode = #tpu.pipeline_mode<synchronous>, transform_indices = @transform_14, window_bounds = array<i64: 1, 64>}, {pipeline_mode = #tpu.pipeline_mode<synchronous>, transform_indices = @transform_15, window_bounds = array<i64: 2, 32>}, {pipeline_mode = #tpu.pipeline_mode<synchronous>, transform_indices = @transform_16, window_bounds = array<i64: 2, 32>}]} {
    %c0 = arith.constant 0 : index
    %c0_0 = arith.constant 0 : index
    %c0_1 = arith.constant 0 : index
    %0 = vector.load %arg1[%c0, %c0_0, %c0_1] : memref<1x2x32xf32, #tpu.memory_space<vmem>>, vector<1x2x32xf32>
    %1 = vector.shape_cast %0 : vector<1x2x32xf32> to vector<2x32xf32>
    %c0_2 = arith.constant 0 : index
    %c0_3 = arith.constant 0 : index
    %2 = vector.load %arg2[%c0_2, %c0_3] : memref<32x96xbf16, #tpu.memory_space<vmem>>, vector<32x96xbf16>
    %c0_4 = arith.constant 0 : index
    %c0_5 = arith.constant 0 : index
    %3 = vector.load %arg3[%c0_4, %c0_5] : memref<1x96xf32, #tpu.memory_space<vmem>>, vector<1x96xf32>
    %4 = arith.truncf %1 : vector<2x32xf32> to vector<2x32xbf16>
    %cst = arith.constant dense<0.000000e+00> : vector<2x96xf32>
    %5 = tpu.matmul %4, %2, %cst {dimension_numbers = #tpu.dot_dimension_numbers<[1], [0], [0], [1], [0, 0, 1, 1], [], []>} : vector<2x32xbf16>, vector<32x96xbf16>, vector<2x96xf32> -> vector<2x96xf32>
    %6 = vector.broadcast %3 : vector<1x96xf32> to vector<2x96xf32>
    %7 = arith.addf %5, %6 : vector<2x96xf32>
    %8 = vector.extract_strided_slice %7 {offsets = [0, 0], sizes = [2, 8], strides = [1, 1]} : vector<2x96xf32> to vector<2x8xf32>
    %9 = arith.truncf %8 : vector<2x8xf32> to vector<2x8xbf16>
    %10 = vector.extract_strided_slice %7 {offsets = [0, 32], sizes = [2, 8], strides = [1, 1]} : vector<2x96xf32> to vector<2x8xf32>
    %11 = arith.truncf %10 : vector<2x8xf32> to vector<2x8xbf16>
    %12 = vector.extract_strided_slice %7 {offsets = [0, 64], sizes = [2, 8], strides = [1, 1]} : vector<2x96xf32> to vector<2x8xf32>
    %cst_6 = arith.constant dense<0.000000e+00> : vector<2x2xf32>
    %13 = tpu.matmul %9, %11, %cst_6 {dimension_numbers = #tpu.dot_dimension_numbers<[1], [1], [0], [0], [0, 0, 1, 0], [], []>} : vector<2x8xbf16>, vector<2x8xbf16>, vector<2x2xf32> -> vector<2x2xf32>
    %cst_7 = arith.constant dense<0xFF800000> : vector<2xf32>
    %14 = vector.multi_reduction <maximumf>, %13, %cst_7 [1] : vector<2x2xf32> to vector<2xf32>
    %15 = vector.shape_cast %14 : vector<2xf32> to vector<2x1xf32>
    %16 = vector.broadcast %15 : vector<2x1xf32> to vector<2x2xf32>
    %17 = arith.subf %13, %16 : vector<2x2xf32>
    %18 = math.exp %17 : vector<2x2xf32>
    %cst_8 = arith.constant dense<0.000000e+00> : vector<2xf32>
    %19 = vector.multi_reduction <add>, %18, %cst_8 [1] : vector<2x2xf32> to vector<2xf32>
    %20 = vector.shape_cast %19 : vector<2xf32> to vector<2x1xf32>
    %21 = vector.broadcast %20 : vector<2x1xf32> to vector<2x2xf32>
    %22 = arith.divf %18, %21 : vector<2x2xf32>
    %cst_9 = arith.constant dense<0.000000e+00> : vector<2x8xf32>
    %23 = tpu.matmul %22, %12, %cst_9 {dimension_numbers = #tpu.dot_dimension_numbers<[1], [0], [0], [1], [0, 0, 1, 1], [], []>} : vector<2x2xf32>, vector<2x8xf32>, vector<2x8xf32> -> vector<2x8xf32>
    %24 = vector.extract_strided_slice %7 {offsets = [0, 8], sizes = [2, 8], strides = [1, 1]} : vector<2x96xf32> to vector<2x8xf32>
    %25 = arith.truncf %24 : vector<2x8xf32> to vector<2x8xbf16>
    %26 = vector.extract_strided_slice %7 {offsets = [0, 40], sizes = [2, 8], strides = [1, 1]} : vector<2x96xf32> to vector<2x8xf32>
    %27 = arith.truncf %26 : vector<2x8xf32> to vector<2x8xbf16>
    %28 = vector.extract_strided_slice %7 {offsets = [0, 72], sizes = [2, 8], strides = [1, 1]} : vector<2x96xf32> to vector<2x8xf32>
    %cst_10 = arith.constant dense<0.000000e+00> : vector<2x2xf32>
    %29 = tpu.matmul %25, %27, %cst_10 {dimension_numbers = #tpu.dot_dimension_numbers<[1], [1], [0], [0], [0, 0, 1, 0], [], []>} : vector<2x8xbf16>, vector<2x8xbf16>, vector<2x2xf32> -> vector<2x2xf32>
    %cst_11 = arith.constant dense<0xFF800000> : vector<2xf32>
    %30 = vector.multi_reduction <maximumf>, %29, %cst_11 [1] : vector<2x2xf32> to vector<2xf32>
    %31 = vector.shape_cast %30 : vector<2xf32> to vector<2x1xf32>
    %32 = vector.broadcast %31 : vector<2x1xf32> to vector<2x2xf32>
    %33 = arith.subf %29, %32 : vector<2x2xf32>
    %34 = math.exp %33 : vector<2x2xf32>
    %cst_12 = arith.constant dense<0.000000e+00> : vector<2xf32>
    %35 = vector.multi_reduction <add>, %34, %cst_12 [1] : vector<2x2xf32> to vector<2xf32>
    %36 = vector.shape_cast %35 : vector<2xf32> to vector<2x1xf32>
    %37 = vector.broadcast %36 : vector<2x1xf32> to vector<2x2xf32>
    %38 = arith.divf %34, %37 : vector<2x2xf32>
    %cst_13 = arith.constant dense<0.000000e+00> : vector<2x8xf32>
    %39 = tpu.matmul %38, %28, %cst_13 {dimension_numbers = #tpu.dot_dimension_numbers<[1], [0], [0], [1], [0, 0, 1, 1], [], []>} : vector<2x2xf32>, vector<2x8xf32>, vector<2x8xf32> -> vector<2x8xf32>
    %40 = vector.extract_strided_slice %7 {offsets = [0, 16], sizes = [2, 8], strides = [1, 1]} : vector<2x96xf32> to vector<2x8xf32>
    %41 = arith.truncf %40 : vector<2x8xf32> to vector<2x8xbf16>
    %42 = vector.extract_strided_slice %7 {offsets = [0, 48], sizes = [2, 8], strides = [1, 1]} : vector<2x96xf32> to vector<2x8xf32>
    %43 = arith.truncf %42 : vector<2x8xf32> to vector<2x8xbf16>
    %44 = vector.extract_strided_slice %7 {offsets = [0, 80], sizes = [2, 8], strides = [1, 1]} : vector<2x96xf32> to vector<2x8xf32>
    %cst_14 = arith.constant dense<0.000000e+00> : vector<2x2xf32>
    %45 = tpu.matmul %41, %43, %cst_14 {dimension_numbers = #tpu.dot_dimension_numbers<[1], [1], [0], [0], [0, 0, 1, 0], [], []>} : vector<2x8xbf16>, vector<2x8xbf16>, vector<2x2xf32> -> vector<2x2xf32>
    %cst_15 = arith.constant dense<0xFF800000> : vector<2xf32>
    %46 = vector.multi_reduction <maximumf>, %45, %cst_15 [1] : vector<2x2xf32> to vector<2xf32>
    %47 = vector.shape_cast %46 : vector<2xf32> to vector<2x1xf32>
    %48 = vector.broadcast %47 : vector<2x1xf32> to vector<2x2xf32>
    %49 = arith.subf %45, %48 : vector<2x2xf32>
    %50 = math.exp %49 : vector<2x2xf32>
    %cst_16 = arith.constant dense<0.000000e+00> : vector<2xf32>
    %51 = vector.multi_reduction <add>, %50, %cst_16 [1] : vector<2x2xf32> to vector<2xf32>
    %52 = vector.shape_cast %51 : vector<2xf32> to vector<2x1xf32>
    %53 = vector.broadcast %52 : vector<2x1xf32> to vector<2x2xf32>
    %54 = arith.divf %50, %53 : vector<2x2xf32>
    %cst_17 = arith.constant dense<0.000000e+00> : vector<2x8xf32>
    %55 = tpu.matmul %54, %44, %cst_17 {dimension_numbers = #tpu.dot_dimension_numbers<[1], [0], [0], [1], [0, 0, 1, 1], [], []>} : vector<2x2xf32>, vector<2x8xf32>, vector<2x8xf32> -> vector<2x8xf32>
    %56 = vector.extract_strided_slice %7 {offsets = [0, 24], sizes = [2, 8], strides = [1, 1]} : vector<2x96xf32> to vector<2x8xf32>
    %57 = arith.truncf %56 : vector<2x8xf32> to vector<2x8xbf16>
    %58 = vector.extract_strided_slice %7 {offsets = [0, 56], sizes = [2, 8], strides = [1, 1]} : vector<2x96xf32> to vector<2x8xf32>
    %59 = arith.truncf %58 : vector<2x8xf32> to vector<2x8xbf16>
    %60 = vector.extract_strided_slice %7 {offsets = [0, 88], sizes = [2, 8], strides = [1, 1]} : vector<2x96xf32> to vector<2x8xf32>
    %cst_18 = arith.constant dense<0.000000e+00> : vector<2x2xf32>
    %61 = tpu.matmul %57, %59, %cst_18 {dimension_numbers = #tpu.dot_dimension_numbers<[1], [1], [0], [0], [0, 0, 1, 0], [], []>} : vector<2x8xbf16>, vector<2x8xbf16>, vector<2x2xf32> -> vector<2x2xf32>
    %cst_19 = arith.constant dense<0xFF800000> : vector<2xf32>
    %62 = vector.multi_reduction <maximumf>, %61, %cst_19 [1] : vector<2x2xf32> to vector<2xf32>
    %63 = vector.shape_cast %62 : vector<2xf32> to vector<2x1xf32>
    %64 = vector.broadcast %63 : vector<2x1xf32> to vector<2x2xf32>
    %65 = arith.subf %61, %64 : vector<2x2xf32>
    %66 = math.exp %65 : vector<2x2xf32>
    %cst_20 = arith.constant dense<0.000000e+00> : vector<2xf32>
    %67 = vector.multi_reduction <add>, %66, %cst_20 [1] : vector<2x2xf32> to vector<2xf32>
    %68 = vector.shape_cast %67 : vector<2xf32> to vector<2x1xf32>
    %69 = vector.broadcast %68 : vector<2x1xf32> to vector<2x2xf32>
    %70 = arith.divf %66, %69 : vector<2x2xf32>
    %cst_21 = arith.constant dense<0.000000e+00> : vector<2x8xf32>
    %71 = tpu.matmul %70, %60, %cst_21 {dimension_numbers = #tpu.dot_dimension_numbers<[1], [0], [0], [1], [0, 0, 1, 1], [], []>} : vector<2x2xf32>, vector<2x8xf32>, vector<2x8xf32> -> vector<2x8xf32>
    %72 = tpu.concatenate %23, %39, %55, %71 in 1 : vector<2x8xf32>, vector<2x8xf32>, vector<2x8xf32>, vector<2x8xf32> -> vector<2x32xf32>
    %c0_22 = arith.constant 0 : index
    %c0_23 = arith.constant 0 : index
    %73 = vector.load %arg4[%c0_22, %c0_23] : memref<32x32xbf16, #tpu.memory_space<vmem>>, vector<32x32xbf16>
    %c0_24 = arith.constant 0 : index
    %c0_25 = arith.constant 0 : index
    %74 = vector.load %arg5[%c0_24, %c0_25] : memref<1x32xf32, #tpu.memory_space<vmem>>, vector<1x32xf32>
    %75 = arith.truncf %72 : vector<2x32xf32> to vector<2x32xbf16>
    %cst_26 = arith.constant dense<0.000000e+00> : vector<2x32xf32>
    %76 = tpu.matmul %75, %73, %cst_26 {dimension_numbers = #tpu.dot_dimension_numbers<[1], [0], [0], [1], [0, 0, 1, 1], [], []>} : vector<2x32xbf16>, vector<32x32xbf16>, vector<2x32xf32> -> vector<2x32xf32>
    %77 = vector.broadcast %74 : vector<1x32xf32> to vector<2x32xf32>
    %78 = arith.addf %76, %77 : vector<2x32xf32>
    %79 = arith.addf %1, %78 : vector<2x32xf32>
    %c0_27 = arith.constant 0 : index
    %c0_28 = arith.constant 0 : index
    %80 = vector.load %arg6[%c0_27, %c0_28] : memref<1x32xf32, #tpu.memory_space<vmem>>, vector<1x32xf32>
    %c0_29 = arith.constant 0 : index
    %c0_30 = arith.constant 0 : index
    %81 = vector.load %arg7[%c0_29, %c0_30] : memref<1x32xf32, #tpu.memory_space<vmem>>, vector<1x32xf32>
    %cst_31 = arith.constant dense<0.000000e+00> : vector<2xf32>
    %82 = vector.multi_reduction <add>, %79, %cst_31 [1] : vector<2x32xf32> to vector<2xf32>
    %83 = vector.shape_cast %82 : vector<2xf32> to vector<2x1xf32>
    %cst_32 = arith.constant 3.200000e+01 : f32
    %84 = vector.broadcast %cst_32 : f32 to vector<2x1xf32>
    %85 = arith.divf %83, %84 : vector<2x1xf32>
    %86 = vector.broadcast %85 : vector<2x1xf32> to vector<2x32xf32>
    %87 = arith.subf %79, %86 : vector<2x32xf32>
    %88 = arith.mulf %87, %87 : vector<2x32xf32>
    %cst_33 = arith.constant dense<0.000000e+00> : vector<2xf32>
    %89 = vector.multi_reduction <add>, %88, %cst_33 [1] : vector<2x32xf32> to vector<2xf32>
    %90 = vector.shape_cast %89 : vector<2xf32> to vector<2x1xf32>
    %cst_34 = arith.constant 3.200000e+01 : f32
    %91 = vector.broadcast %cst_34 : f32 to vector<2x1xf32>
    %92 = arith.divf %90, %91 : vector<2x1xf32>
    %93 = vector.broadcast %85 : vector<2x1xf32> to vector<2x32xf32>
    %94 = arith.subf %79, %93 : vector<2x32xf32>
    %cst_35 = arith.constant 9.99999974E-6 : f32
    %95 = vector.broadcast %cst_35 : f32 to vector<2x1xf32>
    %96 = arith.addf %92, %95 : vector<2x1xf32>
    %97 = math.rsqrt %96 : vector<2x1xf32>
    %98 = vector.broadcast %97 : vector<2x1xf32> to vector<2x32xf32>
    %99 = arith.mulf %94, %98 : vector<2x32xf32>
    %100 = vector.broadcast %80 : vector<1x32xf32> to vector<2x32xf32>
    %101 = arith.mulf %99, %100 : vector<2x32xf32>
    %102 = vector.broadcast %81 : vector<1x32xf32> to vector<2x32xf32>
    %103 = arith.addf %101, %102 : vector<2x32xf32>
    %104 = arith.truncf %103 : vector<2x32xf32> to vector<2x32xbf16>
    %cst_36 = arith.constant 0.000000e+00 : f32
    %105 = vector.broadcast %cst_36 : f32 to vector<2x32xf32>
    %c0_37 = arith.constant 0 : index
    %c0_38 = arith.constant 0 : index
    %106 = vector.load %arg8[%c0_37, %c0_38] : memref<32x64xbf16, #tpu.memory_space<vmem>>, vector<32x64xbf16>
    %cst_39 = arith.constant dense<0.000000e+00> : vector<2x64xf32>
    %107 = tpu.matmul %104, %106, %cst_39 {dimension_numbers = #tpu.dot_dimension_numbers<[1], [0], [0], [1], [0, 0, 1, 1], [], []>} : vector<2x32xbf16>, vector<32x64xbf16>, vector<2x64xf32> -> vector<2x64xf32>
    %c0_40 = arith.constant 0 : index
    %c0_41 = arith.constant 0 : index
    %108 = vector.load %arg9[%c0_40, %c0_41] : memref<1x64xf32, #tpu.memory_space<vmem>>, vector<1x64xf32>
    %109 = vector.broadcast %108 : vector<1x64xf32> to vector<2x64xf32>
    %110 = arith.addf %107, %109 : vector<2x64xf32>
    %cst_42 = arith.constant 0.000000e+00 : f32
    %111 = vector.broadcast %cst_42 : f32 to vector<2x64xf32>
    %112 = arith.maximumf %110, %111 : vector<2x64xf32>
    %113 = arith.truncf %112 : vector<2x64xf32> to vector<2x64xbf16>
    %c0_43 = arith.constant 0 : index
    %c0_44 = arith.constant 0 : index
    %114 = vector.load %arg10[%c0_43, %c0_44] : memref<64x32xbf16, #tpu.memory_space<vmem>>, vector<64x32xbf16>
    %cst_45 = arith.constant dense<0.000000e+00> : vector<2x32xf32>
    %115 = tpu.matmul %113, %114, %cst_45 {dimension_numbers = #tpu.dot_dimension_numbers<[1], [0], [0], [1], [0, 0, 1, 1], [], []>} : vector<2x64xbf16>, vector<64x32xbf16>, vector<2x32xf32> -> vector<2x32xf32>
    %116 = arith.addf %105, %115 : vector<2x32xf32>
    %117 = arith.addf %103, %116 : vector<2x32xf32>
    %c0_46 = arith.constant 0 : index
    %c0_47 = arith.constant 0 : index
    %118 = vector.load %arg11[%c0_46, %c0_47] : memref<1x32xf32, #tpu.memory_space<vmem>>, vector<1x32xf32>
    %119 = vector.broadcast %118 : vector<1x32xf32> to vector<2x32xf32>
    %120 = arith.addf %117, %119 : vector<2x32xf32>
    %c0_48 = arith.constant 0 : index
    %c0_49 = arith.constant 0 : index
    %121 = vector.load %arg12[%c0_48, %c0_49] : memref<1x32xf32, #tpu.memory_space<vmem>>, vector<1x32xf32>
    %c0_50 = arith.constant 0 : index
    %c0_51 = arith.constant 0 : index
    %122 = vector.load %arg13[%c0_50, %c0_51] : memref<1x32xf32, #tpu.memory_space<vmem>>, vector<1x32xf32>
    %cst_52 = arith.constant dense<0.000000e+00> : vector<2xf32>
    %123 = vector.multi_reduction <add>, %120, %cst_52 [1] : vector<2x32xf32> to vector<2xf32>
    %124 = vector.shape_cast %123 : vector<2xf32> to vector<2x1xf32>
    %cst_53 = arith.constant 3.200000e+01 : f32
    %125 = vector.broadcast %cst_53 : f32 to vector<2x1xf32>
    %126 = arith.divf %124, %125 : vector<2x1xf32>
    %127 = vector.broadcast %126 : vector<2x1xf32> to vector<2x32xf32>
    %128 = arith.subf %120, %127 : vector<2x32xf32>
    %129 = arith.mulf %128, %128 : vector<2x32xf32>
    %cst_54 = arith.constant dense<0.000000e+00> : vector<2xf32>
    %130 = vector.multi_reduction <add>, %129, %cst_54 [1] : vector<2x32xf32> to vector<2xf32>
    %131 = vector.shape_cast %130 : vector<2xf32> to vector<2x1xf32>
    %cst_55 = arith.constant 3.200000e+01 : f32
    %132 = vector.broadcast %cst_55 : f32 to vector<2x1xf32>
    %133 = arith.divf %131, %132 : vector<2x1xf32>
    %134 = vector.broadcast %126 : vector<2x1xf32> to vector<2x32xf32>
    %135 = arith.subf %120, %134 : vector<2x32xf32>
    %cst_56 = arith.constant 9.99999974E-6 : f32
    %136 = vector.broadcast %cst_56 : f32 to vector<2x1xf32>
    %137 = arith.addf %133, %136 : vector<2x1xf32>
    %138 = math.rsqrt %137 : vector<2x1xf32>
    %139 = vector.broadcast %138 : vector<2x1xf32> to vector<2x32xf32>
    %140 = arith.mulf %135, %139 : vector<2x32xf32>
    %141 = vector.broadcast %121 : vector<1x32xf32> to vector<2x32xf32>
    %142 = arith.mulf %140, %141 : vector<2x32xf32>
    %143 = vector.broadcast %122 : vector<1x32xf32> to vector<2x32xf32>
    %144 = arith.addf %142, %143 : vector<2x32xf32>
    %c0_i32 = arith.constant 0 : i32
    %145 = arith.cmpi eq, %arg0, %c0_i32 : i32
    %146 = arith.extui %145 : i1 to i32
    %c0_i32_57 = arith.constant 0 : i32
    %147 = arith.cmpi ne, %146, %c0_i32_57 : i32
    scf.if %147 {
      %cst_64 = arith.constant 0.000000e+00 : f32
      %156 = vector.broadcast %cst_64 : f32 to vector<2x32xf32>
      %c0_65 = arith.constant 0 : index
      %c0_66 = arith.constant 0 : index
      %157 = vector.load %arg18[%c0_65, %c0_66] : memref<2x32xf32, #tpu.memory_space<vmem>>, vector<2x32xf32>
      tpu.vector_store %arg18[%c0_65, %c0_66], %156 {strides = array<i32>} : memref<2x32xf32, #tpu.memory_space<vmem>>, vector<2x32xf32>,
    } else {
    }
    %c0_58 = arith.constant 0 : index
    %c0_59 = arith.constant 0 : index
    %148 = vector.load %arg18[%c0_58, %c0_59] : memref<2x32xf32, #tpu.memory_space<vmem>>, vector<2x32xf32>
    %cst_60 = arith.constant 2.500000e-01 : f32
    %149 = vector.broadcast %cst_60 : f32 to vector<2x32xf32>
    %150 = arith.mulf %144, %149 : vector<2x32xf32>
    %151 = arith.addf %148, %150 : vector<2x32xf32>
    %c0_61 = arith.constant 0 : index
    %c0_62 = arith.constant 0 : index
    %152 = vector.load %arg18[%c0_61, %c0_62] : memref<2x32xf32, #tpu.memory_space<vmem>>, vector<2x32xf32>
    tpu.vector_store %arg18[%c0_61, %c0_62], %151 {strides = array<i32>} : memref<2x32xf32, #tpu.memory_space<vmem>>, vector<2x32xf32>,
    %c3_i32 = arith.constant 3 : i32
    %153 = arith.cmpi eq, %arg0, %c3_i32 : i32
    %154 = arith.extui %153 : i1 to i32
    %c0_i32_63 = arith.constant 0 : i32
    %155 = arith.cmpi ne, %154, %c0_i32_63 : i32
    scf.if %155 {
      %c0_64 = arith.constant 0 : index
      %c0_65 = arith.constant 0 : index
      %156 = vector.load %arg18[%c0_64, %c0_65] : memref<2x32xf32, #tpu.memory_space<vmem>>, vector<2x32xf32>
      %c0_66 = arith.constant 0 : index
      %c0_67 = arith.constant 0 : index
      %157 = vector.load %arg14[%c0_66, %c0_67] : memref<32x64xbf16, #tpu.memory_space<vmem>>, vector<32x64xbf16>
      %c0_68 = arith.constant 0 : index
      %c0_69 = arith.constant 0 : index
      %158 = vector.load %arg15[%c0_68, %c0_69] : memref<1x64xf32, #tpu.memory_space<vmem>>, vector<1x64xf32>
      %159 = arith.truncf %156 : vector<2x32xf32> to vector<2x32xbf16>
      %cst_70 = arith.constant dense<0.000000e+00> : vector<2x64xf32>
      %160 = tpu.matmul %159, %157, %cst_70 {dimension_numbers = #tpu.dot_dimension_numbers<[1], [0], [0], [1], [0, 0, 1, 1], [], []>} : vector<2x32xbf16>, vector<32x64xbf16>, vector<2x64xf32> -> vector<2x64xf32>
      %161 = vector.broadcast %158 : vector<1x64xf32> to vector<2x64xf32>
      %162 = arith.addf %160, %161 : vector<2x64xf32>
      %163 = vector.extract_strided_slice %162 {offsets = [0, 0], sizes = [2, 32], strides = [1, 1]} : vector<2x64xf32> to vector<2x32xf32>
      %c0_71 = arith.constant 0 : index
      %c0_72 = arith.constant 0 : index
      %164 = vector.load %arg16[%c0_71, %c0_72] : memref<2x32xf32, #tpu.memory_space<vmem>>, vector<2x32xf32>
      tpu.vector_store %arg16[%c0_71, %c0_72], %163 {strides = array<i32>} : memref<2x32xf32, #tpu.memory_space<vmem>>, vector<2x32xf32>,
      %165 = vector.extract_strided_slice %162 {offsets = [0, 32], sizes = [2, 32], strides = [1, 1]} : vector<2x64xf32> to vector<2x32xf32>
      %c0_73 = arith.constant 0 : index
      %c0_74 = arith.constant 0 : index
      %166 = vector.load %arg17[%c0_73, %c0_74] : memref<2x32xf32, #tpu.memory_space<vmem>>, vector<2x32xf32>
      tpu.vector_store %arg17[%c0_73, %c0_74], %165 {strides = array<i32>} : memref<2x32xf32, #tpu.memory_space<vmem>>, vector<2x32xf32>,
    } else {
    }
    return
  }
  func.func @transform_0(%arg0: i32) -> (i32, i32, i32) {
    %c0_i32 = arith.constant 0 : i32
    %c0_i32_0 = arith.constant 0 : i32
    %c0_i32_1 = arith.constant 0 : i32
    return %arg0, %c0_i32, %c0_i32_0 : i32, i32, i32
  }
  func.func @transform_1(%arg0: i32) -> (i32, i32) {
    %c0_i32 = arith.constant 0 : i32
    %c0_i32_0 = arith.constant 0 : i32
    %c0_i32_1 = arith.constant 0 : i32
    return %c0_i32, %c0_i32_0 : i32, i32
  }
  func.func @transform_2(%arg0: i32) -> (i32, i32) {
    %c0_i32 = arith.constant 0 : i32
    %c0_i32_0 = arith.constant 0 : i32
    %c0_i32_1 = arith.constant 0 : i32
    return %c0_i32, %c0_i32_0 : i32, i32
  }
  func.func @transform_3(%arg0: i32) -> (i32, i32) {
    %c0_i32 = arith.constant 0 : i32
    %c0_i32_0 = arith.constant 0 : i32
    %c0_i32_1 = arith.constant 0 : i32
    return %c0_i32, %c0_i32_0 : i32, i32
  }
  func.func @transform_4(%arg0: i32) -> (i32, i32) {
    %c0_i32 = arith.constant 0 : i32
    %c0_i32_0 = arith.constant 0 : i32
    %c0_i32_1 = arith.constant 0 : i32
    return %c0_i32, %c0_i32_0 : i32, i32
  }
  func.func @transform_5(%arg0: i32) -> (i32, i32) {
    %c0_i32 = arith.constant 0 : i32
    %c0_i32_0 = arith.constant 0 : i32
    %c0_i32_1 = arith.constant 0 : i32
    return %c0_i32, %c0_i32_0 : i32, i32
  }
  func.func @transform_6(%arg0: i32) -> (i32, i32) {
    %c0_i32 = arith.constant 0 : i32
    %c0_i32_0 = arith.constant 0 : i32
    %c0_i32_1 = arith.constant 0 : i32
    return %c0_i32, %c0_i32_0 : i32, i32
  }
  func.func @transform_7(%arg0: i32) -> (i32, i32) {
    %c0_i32 = arith.constant 0 : i32
    %c0_i32_0 = arith.constant 0 : i32
    %c0_i32_1 = arith.constant 0 : i32
    return %c0_i32, %c0_i32_0 : i32, i32
  }
  func.func @transform_8(%arg0: i32) -> (i32, i32) {
    %c0_i32 = arith.constant 0 : i32
    %c0_i32_0 = arith.constant 0 : i32
    %c0_i32_1 = arith.constant 0 : i32
    return %c0_i32, %c0_i32_0 : i32, i32
  }
  func.func @transform_9(%arg0: i32) -> (i32, i32) {
    %c0_i32 = arith.constant 0 : i32
    %c0_i32_0 = arith.constant 0 : i32
    %c0_i32_1 = arith.constant 0 : i32
    return %c0_i32, %c0_i32_0 : i32, i32
  }
  func.func @transform_10(%arg0: i32) -> (i32, i32) {
    %c0_i32 = arith.constant 0 : i32
    %c0_i32_0 = arith.constant 0 : i32
    %c0_i32_1 = arith.constant 0 : i32
    return %c0_i32, %c0_i32_0 : i32, i32
  }
  func.func @transform_11(%arg0: i32) -> (i32, i32) {
    %c0_i32 = arith.constant 0 : i32
    %c0_i32_0 = arith.constant 0 : i32
    %c0_i32_1 = arith.constant 0 : i32
    return %c0_i32, %c0_i32_0 : i32, i32
  }
  func.func @transform_12(%arg0: i32) -> (i32, i32) {
    %c0_i32 = arith.constant 0 : i32
    %c0_i32_0 = arith.constant 0 : i32
    %c0_i32_1 = arith.constant 0 : i32
    return %c0_i32, %c0_i32_0 : i32, i32
  }
  func.func @transform_13(%arg0: i32) -> (i32, i32) {
    %c0_i32 = arith.constant 0 : i32
    %c0_i32_0 = arith.constant 0 : i32
    %c0_i32_1 = arith.constant 0 : i32
    return %c0_i32, %c0_i32_0 : i32, i32
  }
  func.func @transform_14(%arg0: i32) -> (i32, i32) {
    %c0_i32 = arith.constant 0 : i32
    %c0_i32_0 = arith.constant 0 : i32
    %c0_i32_1 = arith.constant 0 : i32
    return %c0_i32, %c0_i32_0 : i32, i32
  }
  func.func @transform_15(%arg0: i32) -> (i32, i32) {
    %c0_i32 = arith.constant 0 : i32
    %c0_i32_0 = arith.constant 0 : i32
    %c0_i32_1 = arith.constant 0 : i32
    return %c0_i32, %c0_i32_0 : i32, i32
  }
  func.func @transform_16(%arg0: i32) -> (i32, i32) {
    %c0_i32 = arith.constant 0 : i32
    %c0_i32_0 = arith.constant 0 : i32
    %c0_i32_1 = arith.constant 0 : i32
    return %c0_i32, %c0_i32_0 : i32, i32
  }
}

</mosaic_0001>

<bundles_post_ra>
// kernel: video_encoder_forward.4
= control target key start
LH: loop header
LB: loop body
LE: loop exit
PB: predicated region body
PF: predicated region fallthrough
CT: control target
= control target key end

     0   :  { %s1717_s25 = smov 0   ;;  %s1893_s0 = inlined_call_operand.vmem [shape: f32[4,2,32], index: 0, kind: input, shape index: {}]   ;;  %s1894_s1 = inlined_call_operand.vmem [shape: bf16[32,96], index: 1, kind: input, shape index: {}]   ;;  %s1895_s2 = inlined_call_operand.vmem [shape: f32[1,96], index: 2, kind: input, shape index: {}]   ;;  %s1896_s3 = inlined_call_operand.vmem [shape: bf16[32,32], index: 3, kind: input, shape index: {}]   ;;  %s1897_s4 = inlined_call_operand.vmem [shape: f32[1,32], index: 4, kind: input, shape index: {}]   ;;  %s1898_s5 = inlined_call_operand.vmem [shape: f32[1,32], index: 5, kind: input, shape index: {}]   ;;  %s1899_s6 = inlined_call_operand.vmem [shape: f32[1,32], index: 6, kind: input, shape index: {}]   ;;  %s1900_s7 = inlined_call_operand.vmem [shape: bf16[32,64], index: 7, kind: input, shape index: {}]   ;;  %s1901_s8 = inlined_call_operand.vmem [shape: f32[1,64], index: 8, kind: input, shape index: {}]   ;;  %s1902_s9 = inlined_call_operand.vmem [shape: bf16[64,32], index: 9, kind: input, shape index: {}]   ;;  %s1903_s10 = inlined_call_operand.vmem [shape: f32[1,32], index: 10, kind: input, shape index: {}]   ;;  %s1904_s11 = inlined_call_operand.vmem [shape: f32[1,32], index: 11, kind: input, shape index: {}]   ;;  %s1905_s12 = inlined_call_operand.vmem [shape: f32[1,32], index: 12, kind: input, shape index: {}]   ;;  %s1906_s13 = inlined_call_operand.vmem [shape: f32[4,2,32], index: 13, kind: output, shape index: {}]  }
   0x1 LB: > { %s1416_s26 = sadd.s32 4294967295, %s1629_s25   ;;  %p1420_p0 = scmp.ge.s32.totalorder %s1629_s25, 1  ;;  %s1629_s25 = sphi %s1717_s25, %s23_s25  }
   0x2   : > { %p386_p1 = scmp.lt.s32.totalorder %s1629_s25, 5 }
   0x4   : > { %p387_p2 = pnand %p1420_p0, %p386_p1 }
   0x5   : > { %p428_p3 = scmp.lt.s32.totalorder (!%p387_p2), %s1416_s26, 3  ;;  %s1633_s20 = smov (!%p387_p2), 120  }
   0x6   : > { %390 = sbr.rel (%p387_p2) target bundleno = 2934 (0xb76), region = 72  ;;  %s1634_s21 = smov (!%p387_p2), 96  }
   0x7   : > { %s1635_s22 = smov (!%p387_p2), 80   ;;  %s1636_s23 = smov (!%p387_p2), 88  }
   0x8   : > { %s1637_s24 = smov (!%p387_p2), 112   ;;  %s1638_s27 = smov (!%p387_p2), 56  }
   0x9   : > { %s1639_s28 = smov (!%p387_p2), 64   ;;  %s1640_s29 = smov (!%p387_p2), 48  }
   0xa   : > { %s1641_s30 = smov (!%p387_p2), 72   ;;  %s1642_s15 = smov (!%p387_p2), 104  }
   0xb   : > { %v1593_v0 = vld [vmem:[%s1894_s1 + $0x8] sm:$0xff]   ;;  %v1631_v1 = vmov 0.0   ;;  %v1594_v2 = vld [vmem:[%s1894_s1] sm:$0xff]   ;;  %vm1632_vm0 = vmmov 0   ;;  %s1908_s26 = smov (!%p428_p3, %s1416_s26), 3  ;;  %vm462_vm1 = vcmask 261120  }
   0xc   : > { %1489 = vmatprep.subr.bf16.mxu1 %v1631_v1  ;;  %1503 = vmatprep.subr.mxu0 %v1631_v1  ;;  %s1421_s14 = sshll.u32 %s1908_s26, 1  ;;  %v1423_v5 = vld [vmem:[%s1895_s2] ss:$0 sm:$0xff]  ;;  %vm510_vm2 = vcmask 64512   ;;  %vm557_vm3 = vcmask 9216   ;;  %vm576_vm4 = vcmask 1041408  }
   0xd   : > { %1490 = vmatpush3.bf16.msra.mxu1 %v1593_v0  ;;  %1493 = vmatprep.mubr.msk.bf16.mxu1 %vm1632_vm0, %v1631_v1  ;;  %s431_s17 = scalar_lea.vmem %s1893_s0, %s1421_s14  ;;  %vm572_vm5 = vcmask 15360   ;;  %s1643_s16 = smov 40   ;;  %vm1076_vm6 = vcmask 130048   ;;  %vm1078_vm7 = vcmask 195584   ;;  %vm1150_vm8 = vcmask 254976  }
   0xe   : > { %1491 = vmatprep.subr.bf16.mxu1 %v1631_v1  ;;  %1505 = vmatprep.mubr.msk.f32.mxu0 %vm1632_vm0, %v1631_v1  ;;  %v1747_v3 = vld [vmem:[%s431_s17] sm:$0x3]  ;;  %s1644_s17 = smov 16   ;;  %s1645_s18 = smov 8   ;;  %vm1280_vm9 = vcmask 523264  }
   0xf   : > { %v443_v4 = vpack.c.bf16 %v1747_v3, %v1747_v3 }
  0x11   : > { %1492 = vmatpush3.bf16.msra.mxu1 %v1594_v2 }
  0x12   : > { %1497 = vmatprep.subr.bf16.mxu1 %v1631_v1 }
  0x14   : > { %1494 = vmatmul.mubr.msk.bf16.vlgmr.msra.gmra.mxu1 %vm462_vm1, %v443_v4 }
  0x15   : > { %1499 = vmatprep.mubr.msk.bf16.mxu1 %vm1632_vm0, %v1631_v1 }
  0xd4   : > { %v500_v6 = vpop.f32.mrf.mxu1 }
  0xd5   : > { %v1757_v7 = vadd.f32 %v1423_v5, %v500_v6 }
  0xd6   : > { %v1495_v8 = vpop.f32.mrf.mxu1 }
  0xd7   : > { %v1761_v9 = vpack.c.bf16 %v1757_v7, %v1757_v7 }
  0xd8   : > { %v503_v10 = vpop.f32.mrf.mxu1 }
  0xd9   : > { %649 = vrot.lane.b32.xlu1 %v1761_v9, %s1633_s20  ;;  %508 = vrot.lane.b32.xlu0 %v1761_v9, %s1634_s21 }
  0xda   : > { %v1496_v11 = vpop.f32.mrf.mxu1 }
  0xdd   : > { %789 = vrot.lane.b32.xlu1 %v1761_v9, %s1635_s22  ;;  %651 = vrot.lane.b32.xlu0 %v1761_v9, %s1636_s23  ;;  %s1646_s23 = smov 24  }
  0xe1   : > { %787 = vrot.lane.b32.xlu0 %v1761_v9, %s1637_s24  ;;  %s435_s24 = scalar_lea.vmem %s1906_s13, %s1421_s14 }
 0x14b   : > { %v509_v12 = vpop.permute.xlu0 %508  ;;  %v650_v15 = vpop.permute.xlu1 %649 }
 0x14c   : > { %v515_v13 = vsel %vm510_vm2, %v509_v12, 0 }
 0x14d   : > { %1498 = vmatpush3.bf16.xpose.msra.mxu1 %v515_v13 }
 0x14e   : > { %1508 = vmatprep.subr.bf16.mxu1 %v1631_v1 }
 0x14f   : > { %v652_v14 = vpop.permute.xlu0 %651  ;;  %v790_v17 = vpop.permute.xlu1 %789 }
 0x150   : > { %v657_v16 = vsel %vm510_vm2, %v652_v14, 0  ;;  %v795_v18 = vsel %vm510_vm2, %v790_v17, 0 }
 0x153   : > { %v788_v19 = vpop.permute.xlu0 %787 }
 0x154   : > { %1500 = vmatmul.mubr.msk.bf16.vlgmr.msra.gmra.mxu1 %vm510_vm2, %v1761_v9 }
 0x155   : > { %1509 = vmatpush3.bf16.xpose.msra.mxu1 %v657_v16  ;;  %1510 = vmatprep.mubr.msk.bf16.mxu1 %vm1632_vm0, %v1631_v1 }
 0x156   : > { %1519 = vmatprep.subr.bf16.mxu1 %v1631_v1 }
 0x15c   : > { %1511 = vmatmul.mubr.msk.bf16.vlgmr.msra.gmra.mxu1 %vm510_vm2, %v650_v15 }
 0x15d   : > { %1520 = vmatpush3.bf16.xpose.msra.mxu1 %v795_v18  ;;  %1521 = vmatprep.mubr.msk.bf16.mxu1 %vm1632_vm0, %v1631_v1 }
 0x15e   : > { %1536 = vmatprep.subr.mxu1 %v1631_v1 }
 0x164   : > { %1522 = vmatmul.mubr.msk.bf16.vlgmr.msra.gmra.mxu1 %vm510_vm2, %v788_v19 }
 0x165   : > { %1538 = vmatprep.mubr.msk.f32.mxu1 %vm1632_vm0, %v1631_v1 }
 0x214   : > { %v551_v20 = vpop.f32.mrf.mxu1 }
 0x215   : > { %v558_v21 = vsel %vm557_vm3, %v551_v20, -inf }
 0x216   : > { %559 = vmax.xlane.f32.xlu1 %v558_v21  ;;  %v1501_v22 = vpop.f32.mrf.mxu1 }
 0x218   : > { %v554_v23 = vpop.f32.mrf.mxu1 }
 0x219   : > { %v1595_v23 = vld [vmem:[%s1896_s3 + $0x8] sm:$0xff]  }
 0x21a   : > { %v1502_v24 = vpop.f32.mrf.mxu1 }
 0x21b   : > { %v1596_v24 = vld [vmem:[%s1896_s3] sm:$0xff]  }
 0x21c   : > { %v693_v25 = vpop.f32.mrf.mxu1 }
 0x21d   : > { %v699_v26 = vsel %vm557_vm3, %v693_v25, -inf }
 0x21e   : > { %700 = vmax.xlane.f32.xlu0 %v699_v26  ;;  %v1512_v27 = vpop.f32.mrf.mxu1 }
 0x220   : > { %v696_v28 = vpop.f32.mrf.mxu1 }
 0x222   : > { %v1513_v29 = vpop.f32.mrf.mxu1 }
 0x224   : > { %v831_v30 = vpop.f32.mrf.mxu1 }
 0x225   : > { %v837_v31 = vsel %vm557_vm3, %v831_v30, -inf }
 0x226   : > { %838 = vmax.xlane.f32.xlu0 %v837_v31  ;;  %v1523_v32 = vpop.f32.mrf.mxu1 }
 0x227   : > { %710 = vrot.lane.b32.xlu1 %v1757_v7, %s1638_s27 }
 0x228   : > { %v834_v33 = vpop.f32.mrf.mxu1 }
 0x22a   : > { %v1524_v34 = vpop.f32.mrf.mxu1 }
 0x22b   : > { %v1439_v34 = vld [vmem:[%s1897_s4] ss:$0 sm:$0xff] }
 0x23c   : > { %570 = vrot.lane.b32.xlu0 %v1757_v7, %s1639_s28 }
 0x29f   : > { %v560_v35 = vpop.xlane.xlu1 %559 }
 0x2a0   : > { %v561_v36 = vsub.f32 %v551_v20, %v560_v35 }
 0x2a2   : > { %v562_v37 = vmul.f32 1.442695, %v561_v36 }
 0x2a3   : > { %v711_v51 = vpop.permute.xlu1 %710 }
 0x2a4   : > { %1603 = vpow2.f32 %v562_v37 }
 0x2a7   : > { %v701_v38 = vpop.xlane.xlu0 %700 }
 0x2a8   : > { %v702_v39 = vsub.f32 %v693_v25, %v701_v38 }
 0x2aa   : > { %v703_v40 = vmul.f32 1.442695, %v702_v39 }
 0x2ac   : > { %1605 = vpow2.f32 %v703_v40 }
 0x2af   : > { %v839_v41 = vpop.xlane.xlu0 %838 }
 0x2b0   : > { %v840_v47 = vsub.f32 %v831_v30, %v839_v41 }
 0x2b1   : > { %v1604_v42 = vpop.eup %1603 }
 0x2b2   : > { %v564_v43 = vsel %vm557_vm3, %v1604_v42, 0.0  ;;  %v841_v48 = vmul.f32 1.442695, %v840_v47  ;;  %v1597_v47 = vld [vmem:[%s1900_s7 + $0x8] sm:$0xff]  }
 0x2b3   : > { %565 = vadd.xlane.f32.xlu1 %v564_v43  ;;  %v571_v44 = vpop.permute.xlu0 %570 }
 0x2b4   : > { %1504 = vmatpush3.msk.msra.mxu0 %vm576_vm4, %v571_v44  ;;  %1607 = vpow2.f32 %v841_v48  ;;  %v1599_v48 = vld [vmem:[%s1902_s9 + $0x18] sm:$0xff]  }
 0x2b5   : > { %1514 = vmatprep.subr.mxu0 %v1631_v1 }
 0x2b9   : > { %v1606_v45 = vpop.eup %1605 }
 0x2ba   : > { %v705_v46 = vsel %vm557_vm3, %v1606_v45, 0.0 }
 0x2bb   : > { %706 = vadd.xlane.f32.xlu0 %v705_v46 }
 0x2c1   : > { %v1608_v49 = vpop.eup %1607 }
 0x2c2   : > { %v843_v50 = vsel %vm557_vm3, %v1608_v49, 0.0 }
 0x2c4   : > { %848 = vrot.lane.b32.xlu1 %v1757_v7, %s1640_s29 }
 0x2d1   : > { %927 = vrot.lane.b32.xlu0 %v1761_v9, %s1641_s30 }
 0x2e8   : > { %844 = vadd.xlane.f32.xlu1 %v843_v50 }
 0x2f9   : > { %925 = vrot.lane.b32.xlu1 %v1761_v9, %s1642_s15 }
 0x33c   : > { %v566_v52 = vpop.xlane.xlu1 %565 }
 0x33d   : > { %1609 = vrcp.f32 %v566_v52 }
 0x340   : > { %v849_v58 = vpop.permute.xlu1 %848 }
 0x344   : > { %v707_v53 = vpop.xlane.xlu0 %706 }
 0x345   : > { %1611 = vrcp.f32 %v707_v53 }
 0x348   : > { %v928_v61 = vpop.permute.xlu0 %927 }
 0x349   : > { %v933_v63 = vsel %vm510_vm2, %v928_v61, 0  ;;  %v1602_v61 = vld [vmem:[%s1902_s9] sm:$0xff]  }
 0x34a   : > { %v1610_v54 = vpop.eup %1609 }
 0x34b   : > { %v568_v55 = vmul.f32 %v1610_v54, %v1604_v42  ;;  %v1443_v54 = vld [vmem:[%s1898_s5] ss:$0 sm:$0xff] }
 0x34d   : > { %1506 = vmatmul.mubr.msk.f32.vlgmr.msra.gmra.mxu0 %vm572_vm5, %v568_v55 }
 0x34e   : > { %1515 = vmatpush3.msk.msra.mxu0 %vm576_vm4, %v711_v51  ;;  %1516 = vmatprep.mubr.msk.f32.mxu0 %vm1632_vm0, %v1631_v1 }
 0x34f   : > { %1525 = vmatprep.subr.mxu0 %v1631_v1 }
 0x352   : > { %v1612_v56 = vpop.eup %1611 }
 0x353   : > { %v709_v57 = vmul.f32 %v1612_v56, %v1606_v45  ;;  %v1444_v56 = vld [vmem:[%s1899_s6] ss:$0 sm:$0xff] }
 0x355   : > { %1517 = vmatmul.mubr.msk.f32.vlgmr.msra.gmra.mxu0 %vm572_vm5, %v709_v57 }
 0x356   : > { %1526 = vmatpush3.msk.msra.mxu0 %vm576_vm4, %v849_v58  ;;  %1527 = vmatprep.mubr.msk.f32.mxu0 %vm1632_vm0, %v1631_v1 }
 0x357   : > { %1530 = vmatprep.subr.bf16.mxu0 %v1631_v1 }
 0x371   : > { %v845_v59 = vpop.xlane.xlu1 %844 }
 0x372   : > { %1613 = vrcp.f32 %v845_v59 }
 0x375   : > { %v926_v0 = vpop.permute.xlu1 %925 }
 0x37f   : > { %v1614_v60 = vpop.eup %1613 }
 0x380   : > { %v847_v62 = vmul.f32 %v1614_v60, %v1608_v49  ;;  %v1600_v49 = vld [vmem:[%s1902_s9 + $0x10] sm:$0xff]   ;;  %v1601_v60 = vld [vmem:[%s1902_s9 + $0x8] sm:$0xff]  }
 0x382   : > { %1528 = vmatmul.mubr.msk.f32.vlgmr.msra.gmra.mxu0 %vm572_vm5, %v847_v62  ;;  %v1445_v62 = vld [vmem:[%s1901_s8] ss:$0 sm:$0xff] }
 0x383   : > { %1531 = vmatpush3.bf16.xpose.msra.mxu0 %v933_v63  ;;  %1532 = vmatprep.mubr.msk.bf16.mxu0 %vm1632_vm0, %v1631_v1 }
 0x384   : > { %1541 = vmatprep.subr.bf16.mxu0 %v1631_v1 }
 0x38a   : > { %1533 = vmatmul.mubr.msk.bf16.vlgmr.msra.gmra.mxu0 %vm510_vm2, %v926_v0 }
 0x38b   : > { %1545 = vmatprep.mubr.msk.bf16.mxu0 %vm1632_vm0, %v1631_v1  ;;  %1542 = vmatpush3.bf16.msra.mxu0 %v1595_v23 }
 0x38c   : > { %1543 = vmatprep.subr.bf16.mxu0 %v1631_v1 }
 0x38f   : > { %1544 = vmatpush3.bf16.msra.mxu0 %v1596_v24  ;;  %v1455_v24 = vld [vmem:[%s1904_s11] ss:$0 sm:$0xff] }
 0x390   : > { %1557 = vmatprep.subr.bf16.mxu0 %v1631_v1 }
 0x40d   : > { %v645_v2 = vpop.f32.mrf.mxu0 }
 0x40f   : > { %v1507_v4 = vpop.f32.mrf.mxu0 }
 0x415   : > { %v783_v5 = vpop.f32.mrf.mxu0 }
 0x417   : > { %v1518_v6 = vpop.f32.mrf.mxu0 }
 0x442   : > { %v921_v8 = vpop.f32.mrf.mxu0 }
 0x444   : > { %v1529_v9 = vpop.f32.mrf.mxu0 }
 0x44a   : > { %v969_v10 = vpop.f32.mrf.mxu0 }
 0x44b   : > { %v975_v11 = vsel %vm557_vm3, %v969_v10, -inf }
 0x44c   : > { %976 = vmax.xlane.f32.xlu0 %v975_v11  ;;  %v1534_v12 = vpop.f32.mrf.mxu0 }
 0x44e   : > { %v972_v13 = vpop.f32.mrf.mxu0 }
 0x450   : > { %v1535_v14 = vpop.f32.mrf.mxu0 }
 0x462   : > { %986 = vrot.lane.b32.xlu0 %v1757_v7, %s1643_s16 }
 0x466   : > { %1068 = vrot.lane.b32.xlu0 %v921_v8, %s1644_s17 }
 0x4d5   : > { %v977_v15 = vpop.xlane.xlu0 %976 }
 0x4d6   : > { %v978_v16 = vsub.f32 %v969_v10, %v977_v15 }
 0x4d8   : > { %v979_v17 = vmul.f32 1.442695, %v978_v16 }
 0x4d9   : > { %v987_v18 = vpop.permute.xlu0 %986 }
 0x4da   : > { %1615 = vpow2.f32 %v979_v17  ;;  %1537 = vmatpush3.msk.msra.mxu1 %vm576_vm4, %v987_v18 }
 0x4db   : > { %1549 = vmatprep.subr.bf16.mxu1 %v1631_v1 }
 0x4dd   : > { %v1069_v29 = vpop.permute.xlu0 %1068 }
 0x4e7   : > { %v1616_v19 = vpop.eup %1615 }
 0x4e8   : > { %v981_v20 = vsel %vm557_vm3, %v1616_v19, 0.0 }
 0x4e9   : > { %982 = vadd.xlane.f32.xlu1 %v981_v20 }
 0x4fa   : > { %1064 = vrot.lane.b32.xlu1 %v783_v5, %s1645_s18 }
 0x572   : > { %v983_v21 = vpop.xlane.xlu1 %982 }
 0x573   : > { %1617 = vrcp.f32 %v983_v21 }
 0x576   : > { %v1065_v27 = vpop.permute.xlu1 %1064 }
 0x577   : > { %v1075_v28 = vsel %vm510_vm2, %v645_v2, %v1065_v27 }
 0x578   : > { %v1077_v30 = vsel %vm1076_vm6, %v1075_v28, %v1069_v29 }
 0x580   : > { %v1618_v7 = vpop.eup %1617 }
 0x581   : > { %v985_v22 = vmul.f32 %v1618_v7, %v1616_v19 }
 0x583   : > { %1539 = vmatmul.mubr.msk.f32.vlgmr.msra.gmra.mxu1 %vm572_vm5, %v985_v22 }
 0x584   : > { %1553 = vmatprep.mubr.msk.bf16.mxu1 %vm1632_vm0, %v1631_v1  ;;  %1550 = vmatpush3.bf16.msra.mxu1 %v1597_v47 }
 0x585   : > { %1551 = vmatprep.subr.bf16.mxu1 %v1631_v1 }
 0x643   : > { %v1059_v25 = vpop.f32.mrf.mxu1 }
 0x644   : > { %1072 = vrot.lane.b32.xlu1 %v1059_v25, %s1646_s23 }
 0x645   : > { %v1540_v26 = vpop.f32.mrf.mxu1 }
 0x646   : > { %v1456_v26 = vld [vmem:[%s1905_s12] ss:$0 sm:$0xff] }
 0x6b6   : > { %v1073_v31 = vpop.permute.xlu1 %1072 }
 0x6b7   : > { %v1079_v32 = vsel %vm1078_vm7, %v1077_v30, %v1073_v31 }
 0x6b8   : > { %v1085_v33 = vpack.c.bf16 %v1079_v32, %v1079_v32 }
 0x6ba   : > { %1546 = vmatmul.mubr.msk.bf16.vlgmr.msra.gmra.mxu0 %vm462_vm1, %v1085_v33 }
 0x6bb   : > { %1565 = vmatprep.mubr.msk.bf16.mxu0 %vm1632_vm0, %v1631_v1  ;;  %1558 = vmatpush3.bf16.msra.mxu0 %v1599_v48 }
 0x6bc   : > { %1559 = vmatprep.subr.bf16.mxu0 %v1631_v1 }
 0x6bf   : > { %1560 = vmatpush3.bf16.msra.mxu0 %v1600_v49 }
 0x6c0   : > { %1561 = vmatprep.subr.bf16.mxu0 %v1631_v1 }
 0x6c3   : > { %1562 = vmatpush3.bf16.msra.mxu0 %v1601_v60 }
 0x6c4   : > { %1563 = vmatprep.subr.bf16.mxu0 %v1631_v1  ;;  %v1454_v1 = vld [vmem:[%s1903_s10] ss:$0 sm:$0xff] }
 0x6c7   : > { %1564 = vmatpush3.bf16.msra.mxu0 %v1602_v61 }
 0x77a   : > { %v1141_v35 = vpop.f32.mrf.mxu0 }
 0x77b   : > { %v1142_v36 = vadd.f32 %v1439_v34, %v1141_v35 }
 0x77c   : > { %v1547_v37 = vpop.f32.mrf.mxu0 }
 0x77d   : > { %v1147_v38 = vadd.f32 %v1142_v36, %v1747_v3  ;;  %v1598_v3 = vld [vmem:[%s1900_s7] sm:$0xff]  }
 0x77e   : > { %v1144_v39 = vpop.f32.mrf.mxu0  ;;  %1552 = vmatpush3.bf16.msra.mxu1 %v1598_v3 }
 0x77f   : > { %v1151_v40 = vsel %vm1150_vm8, %v1147_v38, 0.0 }
 0x780   : > { %1152 = vadd.xlane.f32.xlu0 %v1151_v40  ;;  %v1548_v41 = vpop.f32.mrf.mxu0 }
 0x809   : > { %v1153_v42 = vpop.xlane.xlu0 %1152 }
 0x80a   : > { %v1155_v43 = vmul.f32 0.03125, %v1153_v42 }
 0x80c   : > { %v1156_v44 = vsub.f32 %v1147_v38, %v1155_v43 }
 0x80e   : > { %v1157_v45 = vmul.f32 %v1156_v44, %v1156_v44 }
 0x810   : > { %v1158_v46 = vsel %vm1150_vm8, %v1157_v45, 0.0 }
 0x811   : > { %1159 = vadd.xlane.f32.xlu1 %v1158_v46 }
 0x89a   : > { %v1160_v50 = vpop.xlane.xlu1 %1159 }
 0x89b   : > { %v1161_v51 = vmul.f32 0.03125, %v1160_v50 }
 0x89d   : > { %v1162_v52 = vadd.f32 1e-05, %v1161_v51 }
 0x89f   : > { %1619 = vrsqrt.f32 %v1162_v52 }
 0x8ac   : > { %v1620_v53 = vpop.eup %1619 }
 0x8ad   : > { %v1164_v55 = vmul.f32 %v1620_v53, %v1156_v44 }
 0x8af   : > { %v1171_v57 = vmul.f32 %v1443_v54, %v1164_v55 }
 0x8b1   : > { %v1178_v58 = vadd.f32 %v1444_v56, %v1171_v57 }
 0x8b3   : > { %v1179_v59 = vpack.c.bf16 %v1178_v58, %v1178_v58 }
 0x8b5   : > { %1554 = vmatmul.mubr.msk.bf16.vlgmr.msra.gmra.mxu1 %vm462_vm1, %v1179_v59 }
 0x975   : > { %v1240_v63 = vpop.f32.mrf.mxu1 }
 0x976   : > { %v1241_v0 = vadd.f32 %v1445_v62, %v1240_v63 }
 0x977   : > { %v1555_v2 = vpop.f32.mrf.mxu1 }
 0x978   : > { %v1246_v4 = vmax.f32 %v1241_v0, 0.0 }
 0x979   : > { %v1243_v5 = vpop.f32.mrf.mxu1 }
 0x97a   : > { %v1247_v6 = vpack.c.bf16 %v1246_v4, %v1246_v4 }
 0x97b   : > { %v1556_v8 = vpop.f32.mrf.mxu1 }
 0x97c   : > { %1566 = vmatmul.mubr.msk.bf16.vlgmr.msra.gmra.mxu0 %vm1280_vm9, %v1247_v6 }
 0xa3c   : > { %v1318_v9 = vpop.f32.mrf.mxu0 }
 0xa3d   : > { %v1324_v10 = vadd.f32 %v1318_v9, %v1178_v58 }
 0xa3e   : > { %v1567_v11 = vpop.f32.mrf.mxu0 }
 0xa3f   : > { %v1332_v12 = vadd.f32 %v1454_v1, %v1324_v10 }
 0xa40   : > { %v1321_v13 = vpop.f32.mrf.mxu0 }
 0xa41   : > { %v1335_v14 = vsel %vm1150_vm8, %v1332_v12, 0.0 }
 0xa42   : > { %1336 = vadd.xlane.f32.xlu0 %v1335_v14  ;;  %v1568_v15 = vpop.f32.mrf.mxu0 }
 0xacb   : > { %v1337_v16 = vpop.xlane.xlu0 %1336 }
 0xacc   : > { %v1338_v17 = vmul.f32 0.03125, %v1337_v16 }
 0xace   : > { %v1339_v18 = vsub.f32 %v1332_v12, %v1338_v17 }
 0xad0   : > { %v1340_v19 = vmul.f32 %v1339_v18, %v1339_v18 }
 0xad2   : > { %v1341_v20 = vsel %vm1150_vm8, %v1340_v19, 0.0 }
 0xad3   : > { %1342 = vadd.xlane.f32.xlu0 %v1341_v20 }
 0xb5c   : > { %v1343_v21 = vpop.xlane.xlu0 %1342 }
 0xb5d   : > { %v1344_v7 = vmul.f32 0.03125, %v1343_v21 }
 0xb5f   : > { %v1345_v22 = vadd.f32 1e-05, %v1344_v7 }
 0xb61   : > { %1621 = vrsqrt.f32 %v1345_v22 }
 0xb6e   : > { %v1622_v23 = vpop.eup %1621 }
 0xb6f   : > { %v1347_v25 = vmul.f32 %v1622_v23, %v1339_v18 }
 0xb71   : > { %v1354_v27 = vmul.f32 %v1455_v24, %v1347_v25 }
 0xb73   : > { %v1361_v28 = vadd.f32 %v1456_v26, %v1354_v27 }
 0xb75   : > { %1362 = vst.msk [vmem:[%s435_s24] sm:$0x3] %vm1150_vm8, %v1361_v28 }
 0xb76 PF: > { %s23_s25 = sadd.s32 1, %s1629_s25  }
 0xb77   : > { %p20_p4 = scmp.ge.s32.totalorder %s23_s25, 6  }
 0xb79   :  { %22 = sbr.rel (!%p20_p4) target bundleno = 1 (0x1), region = 102 }

// kernel: video_encoder_forward.5
= control target key start
LH: loop header
LB: loop body
LE: loop exit
PB: predicated region body
PF: predicated region fallthrough
CT: control target
= control target key end

     0   :  { %s2147_s0 = inlined_call_operand.vmem [shape: f32[4,2,32], index: 0, kind: input, shape index: {}]   ;;  %s2148_s1 = inlined_call_operand.vmem [shape: bf16[32,96], index: 1, kind: input, shape index: {}]   ;;  %s2149_s2 = inlined_call_operand.vmem [shape: f32[1,96], index: 2, kind: input, shape index: {}]   ;;  %s2150_s3 = inlined_call_operand.vmem [shape: bf16[32,32], index: 3, kind: input, shape index: {}]   ;;  %s2151_s4 = inlined_call_operand.vmem [shape: f32[1,32], index: 4, kind: input, shape index: {}]   ;;  %s2152_s5 = inlined_call_operand.vmem [shape: f32[1,32], index: 5, kind: input, shape index: {}]   ;;  %s2153_s6 = inlined_call_operand.vmem [shape: f32[1,32], index: 6, kind: input, shape index: {}]   ;;  %s2154_s7 = inlined_call_operand.vmem [shape: bf16[32,64], index: 7, kind: input, shape index: {}]   ;;  %s2155_s8 = inlined_call_operand.vmem [shape: f32[1,64], index: 8, kind: input, shape index: {}]   ;;  %s2156_s9 = inlined_call_operand.vmem [shape: bf16[64,32], index: 9, kind: input, shape index: {}]   ;;  %s2157_s10 = inlined_call_operand.vmem [shape: f32[1,32], index: 10, kind: input, shape index: {}]   ;;  %s2158_s11 = inlined_call_operand.vmem [shape: f32[1,32], index: 11, kind: input, shape index: {}]   ;;  %s2159_s12 = inlined_call_operand.vmem [shape: f32[1,32], index: 12, kind: input, shape index: {}]   ;;  %s2160_s13 = inlined_call_operand.vmem [shape: bf16[32,64], index: 13, kind: input, shape index: {}]   ;;  %s2161_s14 = inlined_call_operand.vmem [shape: f32[1,64], index: 14, kind: input, shape index: {}]   ;;  %s2162_s15 = inlined_call_operand.vmem [shape: f32[2,32], index: 15, kind: output, shape index: {0}]   ;;  %s2163_s16 = inlined_call_operand.hbm [shape: f32[2,32], index: 16, kind: output, shape index: {1}]  }
   0x1   :  { %2164 = sst [smem:[#allocation6_spill]] %s2147_s0 }
   0x2   :  { %22 = vsyncpa [#allocation4], 0  ;;  %s1947_s21 = smov 0  }
   0x3 LB: > { %s1953_s22 = sadd.s32 4294967295, %s1839_s21   ;;  %p1571_p0 = scmp.ge.s32.totalorder %s1839_s21, 1  ;;  %s1839_s21 = sphi %s1947_s21, %s28_s21  }
   0x4   : > { %p455_p1 = scmp.lt.s32.totalorder %s1839_s21, 5 }
   0x6   : > { %p456_p2 = pnand %p1571_p0, %p455_p1 }
   0x7   : > { %p499_p3 = scmp.lt.s32.totalorder (!%p456_p2), %s1953_s22, 3  ;;  %s2165_s0 = sld [smem:[#allocation6_spill]] (!%p456_p2) }
   0x8   : > { %459 = sbr.rel (%p456_p2) target bundleno = 3281 (0xcd1), region = 80  ;;  %s1843_s20 = smov (!%p456_p2), 120  }
   0x9   : > { %s1844_s23 = smov (!%p456_p2), 96   ;;  %s1845_s24 = smov (!%p456_p2), 80  }
   0xa   : > { %s1846_s25 = smov (!%p456_p2), 88   ;;  %s1847_s26 = smov (!%p456_p2), 112  }
   0xb   : > { %s1850_s29 = smov (!%p456_p2), 48   ;;  %s1851_s30 = smov (!%p456_p2), 72  }
   0xc   : > { %s1854_s18 = smov (!%p456_p2), 16   ;;  %s1855_s19 = smov (!%p456_p2), 8  }
   0xd   : > { %v1773_v0 = vld [vmem:[%s2148_s1 + $0x8] sm:$0xff]   ;;  %v1841_v1 = vmov 0.0   ;;  %v1774_v2 = vld [vmem:[%s2148_s1] sm:$0xff]   ;;  %vm1842_vm0 = vmmov 0   ;;  %s500_s27 = scalar_select %p499_p3, %s1953_s22, 3  ;;  %vm529_vm1 = vcmask 261120  }
   0xe   : > { %1650 = vmatprep.subr.bf16.mxu1 %v1841_v1  ;;  %1664 = vmatprep.subr.mxu0 %v1841_v1  ;;  %v1573_v5 = vld [vmem:[%s2149_s2] ss:$0 sm:$0xff]  ;;  %vm577_vm2 = vcmask 64512   ;;  %vm624_vm3 = vcmask 9216   ;;  %vm643_vm4 = vcmask 1041408   ;;  %vm639_vm5 = vcmask 15360  }
   0xf   : > { %1651 = vmatpush3.bf16.msra.mxu1 %v1773_v0  ;;  %1654 = vmatprep.mubr.msk.bf16.mxu1 %vm1842_vm0, %v1841_v1  ;;  %s1572_s28 = sshll.u32 %s500_s27, 1  ;;  %s1848_s27 = smov 56   ;;  %vm1143_vm6 = vcmask 130048   ;;  %vm1145_vm7 = vcmask 195584   ;;  %vm1217_vm8 = vcmask 254976   ;;  %vm1347_vm9 = vcmask 523264  }
  0x10   : > { %1652 = vmatprep.subr.bf16.mxu1 %v1841_v1  ;;  %1666 = vmatprep.mubr.msk.f32.mxu0 %vm1842_vm0, %v1841_v1  ;;  %s502_s17 = scalar_lea.vmem %s2165_s0, %s1572_s28  ;;  %s1849_s28 = smov 64  }
  0x11   : > { %v1976_v3 = vld [vmem:[%s502_s17] sm:$0x3]  ;;  %s1852_s0 = smov 104   ;;  %s1853_s17 = smov 40  }
  0x12   : > { %v510_v4 = vpack.c.bf16 %v1976_v3, %v1976_v3  ;;  %p1607_p4 = scmp.ne.s32.totalorder %s1953_s22, 0 }
  0x13   : > { %1653 = vmatpush3.bf16.msra.mxu1 %v1774_v2 }
  0x14   : > { %1658 = vmatprep.subr.bf16.mxu1 %v1841_v1 }
  0x16   : > { %1655 = vmatmul.mubr.msk.bf16.vlgmr.msra.gmra.mxu1 %vm529_vm1, %v510_v4 }
  0x17   : > { %1660 = vmatprep.mubr.msk.bf16.mxu1 %vm1842_vm0, %v1841_v1 }
  0xd6   : > { %v567_v6 = vpop.f32.mrf.mxu1 }
  0xd7   : > { %v1986_v7 = vadd.f32 %v1573_v5, %v567_v6 }
  0xd8   : > { %v1656_v8 = vpop.f32.mrf.mxu1 }
  0xd9   : > { %v1990_v9 = vpack.c.bf16 %v1986_v7, %v1986_v7 }
  0xda   : > { %v570_v10 = vpop.f32.mrf.mxu1 }
  0xdb   : > { %716 = vrot.lane.b32.xlu1 %v1990_v9, %s1843_s20  ;;  %575 = vrot.lane.b32.xlu0 %v1990_v9, %s1844_s23 }
  0xdc   : > { %v1657_v11 = vpop.f32.mrf.mxu1 }
  0xdf   : > { %856 = vrot.lane.b32.xlu1 %v1990_v9, %s1845_s24  ;;  %718 = vrot.lane.b32.xlu0 %v1990_v9, %s1846_s25 }
  0xe3   : > { %854 = vrot.lane.b32.xlu0 %v1990_v9, %s1847_s26  ;;  %s1856_s26 = smov 24  }
 0x14d   : > { %v576_v12 = vpop.permute.xlu0 %575  ;;  %v717_v15 = vpop.permute.xlu1 %716 }
 0x14e   : > { %v582_v13 = vsel %vm577_vm2, %v576_v12, 0 }
 0x14f   : > { %1659 = vmatpush3.bf16.xpose.msra.mxu1 %v582_v13 }
 0x150   : > { %1669 = vmatprep.subr.bf16.mxu1 %v1841_v1 }
 0x151   : > { %v719_v14 = vpop.permute.xlu0 %718  ;;  %v857_v17 = vpop.permute.xlu1 %856 }
 0x152   : > { %v724_v16 = vsel %vm577_vm2, %v719_v14, 0  ;;  %v862_v18 = vsel %vm577_vm2, %v857_v17, 0 }
 0x155   : > { %v855_v19 = vpop.permute.xlu0 %854 }
 0x156   : > { %1661 = vmatmul.mubr.msk.bf16.vlgmr.msra.gmra.mxu1 %vm577_vm2, %v1990_v9 }
 0x157   : > { %1670 = vmatpush3.bf16.xpose.msra.mxu1 %v724_v16  ;;  %1671 = vmatprep.mubr.msk.bf16.mxu1 %vm1842_vm0, %v1841_v1 }
 0x158   : > { %1680 = vmatprep.subr.bf16.mxu1 %v1841_v1 }
 0x15e   : > { %1672 = vmatmul.mubr.msk.bf16.vlgmr.msra.gmra.mxu1 %vm577_vm2, %v717_v15 }
 0x15f   : > { %1681 = vmatpush3.bf16.xpose.msra.mxu1 %v862_v18  ;;  %1682 = vmatprep.mubr.msk.bf16.mxu1 %vm1842_vm0, %v1841_v1 }
 0x160   : > { %1697 = vmatprep.subr.mxu1 %v1841_v1 }
 0x166   : > { %1683 = vmatmul.mubr.msk.bf16.vlgmr.msra.gmra.mxu1 %vm577_vm2, %v855_v19 }
 0x167   : > { %1699 = vmatprep.mubr.msk.f32.mxu1 %vm1842_vm0, %v1841_v1 }
 0x216   : > { %v618_v20 = vpop.f32.mrf.mxu1 }
 0x217   : > { %v625_v21 = vsel %vm624_vm3, %v618_v20, -inf }
 0x218   : > { %626 = vmax.xlane.f32.xlu1 %v625_v21  ;;  %v1662_v22 = vpop.f32.mrf.mxu1 }
 0x21a   : > { %v621_v23 = vpop.f32.mrf.mxu1 }
 0x21b   : > { %v1775_v23 = vld [vmem:[%s2150_s3 + $0x8] sm:$0xff]  }
 0x21c   : > { %v1663_v24 = vpop.f32.mrf.mxu1 }
 0x21d   : > { %v1776_v24 = vld [vmem:[%s2150_s3] sm:$0xff]  }
 0x21e   : > { %v760_v25 = vpop.f32.mrf.mxu1 }
 0x21f   : > { %v766_v26 = vsel %vm624_vm3, %v760_v25, -inf }
 0x220   : > { %767 = vmax.xlane.f32.xlu0 %v766_v26  ;;  %v1673_v27 = vpop.f32.mrf.mxu1 }
 0x222   : > { %v763_v28 = vpop.f32.mrf.mxu1 }
 0x224   : > { %v1674_v29 = vpop.f32.mrf.mxu1 }
 0x226   : > { %v898_v30 = vpop.f32.mrf.mxu1 }
 0x227   : > { %v904_v31 = vsel %vm624_vm3, %v898_v30, -inf }
 0x228   : > { %905 = vmax.xlane.f32.xlu0 %v904_v31  ;;  %v1684_v32 = vpop.f32.mrf.mxu1 }
 0x229   : > { %777 = vrot.lane.b32.xlu1 %v1986_v7, %s1848_s27 }
 0x22a   : > { %v901_v33 = vpop.f32.mrf.mxu1 }
 0x22c   : > { %v1685_v34 = vpop.f32.mrf.mxu1 }
 0x22d   : > { %v1589_v34 = vld [vmem:[%s2151_s4] ss:$0 sm:$0xff] }
 0x23e   : > { %637 = vrot.lane.b32.xlu0 %v1986_v7, %s1849_s28 }
 0x2a1   : > { %v627_v35 = vpop.xlane.xlu1 %626 }
 0x2a2   : > { %v628_v36 = vsub.f32 %v618_v20, %v627_v35 }
 0x2a4   : > { %v629_v37 = vmul.f32 1.442695, %v628_v36 }
 0x2a5   : > { %v778_v51 = vpop.permute.xlu1 %777 }
 0x2a6   : > { %1783 = vpow2.f32 %v629_v37 }
 0x2a9   : > { %v768_v38 = vpop.xlane.xlu0 %767 }
 0x2aa   : > { %v769_v39 = vsub.f32 %v760_v25, %v768_v38 }
 0x2ac   : > { %v770_v40 = vmul.f32 1.442695, %v769_v39 }
 0x2ae   : > { %1785 = vpow2.f32 %v770_v40 }
 0x2b1   : > { %v906_v41 = vpop.xlane.xlu0 %905 }
 0x2b2   : > { %v907_v47 = vsub.f32 %v898_v30, %v906_v41 }
 0x2b3   : > { %v1784_v42 = vpop.eup %1783 }
 0x2b4   : > { %v631_v43 = vsel %vm624_vm3, %v1784_v42, 0.0  ;;  %v908_v48 = vmul.f32 1.442695, %v907_v47  ;;  %v1777_v47 = vld [vmem:[%s2154_s7 + $0x8] sm:$0xff]  }
 0x2b5   : > { %632 = vadd.xlane.f32.xlu1 %v631_v43  ;;  %v638_v44 = vpop.permute.xlu0 %637 }
 0x2b6   : > { %1665 = vmatpush3.msk.msra.mxu0 %vm643_vm4, %v638_v44  ;;  %1787 = vpow2.f32 %v908_v48  ;;  %v1779_v48 = vld [vmem:[%s2156_s9 + $0x18] sm:$0xff]  }
 0x2b7   : > { %1675 = vmatprep.subr.mxu0 %v1841_v1 }
 0x2bb   : > { %v1786_v45 = vpop.eup %1785 }
 0x2bc   : > { %v772_v46 = vsel %vm624_vm3, %v1786_v45, 0.0 }
 0x2bd   : > { %773 = vadd.xlane.f32.xlu0 %v772_v46 }
 0x2c3   : > { %v1788_v49 = vpop.eup %1787 }
 0x2c4   : > { %v910_v50 = vsel %vm624_vm3, %v1788_v49, 0.0 }
 0x2c6   : > { %915 = vrot.lane.b32.xlu1 %v1986_v7, %s1850_s29 }
 0x2d3   : > { %994 = vrot.lane.b32.xlu0 %v1990_v9, %s1851_s30 }
 0x2ea   : > { %911 = vadd.xlane.f32.xlu1 %v910_v50 }
 0x2fb   : > { %992 = vrot.lane.b32.xlu1 %v1990_v9, %s1852_s0 }
 0x33e   : > { %v633_v52 = vpop.xlane.xlu1 %632 }
 0x33f   : > { %1789 = vrcp.f32 %v633_v52 }
 0x342   : > { %v916_v58 = vpop.permute.xlu1 %915 }
 0x346   : > { %v774_v53 = vpop.xlane.xlu0 %773 }
 0x347   : > { %1791 = vrcp.f32 %v774_v53 }
 0x34a   : > { %v995_v61 = vpop.permute.xlu0 %994 }
 0x34b   : > { %v1000_v63 = vsel %vm577_vm2, %v995_v61, 0  ;;  %v1782_v61 = vld [vmem:[%s2156_s9] sm:$0xff]  }
 0x34c   : > { %v1790_v54 = vpop.eup %1789 }
 0x34d   : > { %v635_v55 = vmul.f32 %v1790_v54, %v1784_v42  ;;  %v1593_v54 = vld [vmem:[%s2152_s5] ss:$0 sm:$0xff] }
 0x34f   : > { %1667 = vmatmul.mubr.msk.f32.vlgmr.msra.gmra.mxu0 %vm639_vm5, %v635_v55 }
 0x350   : > { %1676 = vmatpush3.msk.msra.mxu0 %vm643_vm4, %v778_v51  ;;  %1677 = vmatprep.mubr.msk.f32.mxu0 %vm1842_vm0, %v1841_v1 }
 0x351   : > { %1686 = vmatprep.subr.mxu0 %v1841_v1 }
 0x354   : > { %v1792_v56 = vpop.eup %1791 }
 0x355   : > { %v776_v57 = vmul.f32 %v1792_v56, %v1786_v45  ;;  %v1594_v56 = vld [vmem:[%s2153_s6] ss:$0 sm:$0xff] }
 0x357   : > { %1678 = vmatmul.mubr.msk.f32.vlgmr.msra.gmra.mxu0 %vm639_vm5, %v776_v57 }
 0x358   : > { %1687 = vmatpush3.msk.msra.mxu0 %vm643_vm4, %v916_v58  ;;  %1688 = vmatprep.mubr.msk.f32.mxu0 %vm1842_vm0, %v1841_v1 }
 0x359   : > { %1691 = vmatprep.subr.bf16.mxu0 %v1841_v1 }
 0x373   : > { %v912_v59 = vpop.xlane.xlu1 %911 }
 0x374   : > { %1793 = vrcp.f32 %v912_v59 }
 0x377   : > { %v993_v0 = vpop.permute.xlu1 %992 }
 0x381   : > { %v1794_v60 = vpop.eup %1793 }
 0x382   : > { %v914_v62 = vmul.f32 %v1794_v60, %v1788_v49  ;;  %v1780_v49 = vld [vmem:[%s2156_s9 + $0x10] sm:$0xff]   ;;  %v1781_v60 = vld [vmem:[%s2156_s9 + $0x8] sm:$0xff]  }
 0x384   : > { %1689 = vmatmul.mubr.msk.f32.vlgmr.msra.gmra.mxu0 %vm639_vm5, %v914_v62  ;;  %v1595_v62 = vld [vmem:[%s2155_s8] ss:$0 sm:$0xff] }
 0x385   : > { %1692 = vmatpush3.bf16.xpose.msra.mxu0 %v1000_v63  ;;  %1693 = vmatprep.mubr.msk.bf16.mxu0 %vm1842_vm0, %v1841_v1 }
 0x386   : > { %1702 = vmatprep.subr.bf16.mxu0 %v1841_v1 }
 0x38c   : > { %1694 = vmatmul.mubr.msk.bf16.vlgmr.msra.gmra.mxu0 %vm577_vm2, %v993_v0 }
 0x38d   : > { %1706 = vmatprep.mubr.msk.bf16.mxu0 %vm1842_vm0, %v1841_v1  ;;  %1703 = vmatpush3.bf16.msra.mxu0 %v1775_v23 }
 0x38e   : > { %1704 = vmatprep.subr.bf16.mxu0 %v1841_v1 }
 0x391   : > { %1705 = vmatpush3.bf16.msra.mxu0 %v1776_v24  ;;  %v1605_v24 = vld [vmem:[%s2158_s11] ss:$0 sm:$0xff] }
 0x392   : > { %1718 = vmatprep.subr.bf16.mxu0 %v1841_v1 }
 0x40f   : > { %v712_v2 = vpop.f32.mrf.mxu0 }
 0x411   : > { %v1668_v4 = vpop.f32.mrf.mxu0 }
 0x417   : > { %v850_v5 = vpop.f32.mrf.mxu0 }
 0x419   : > { %v1679_v6 = vpop.f32.mrf.mxu0 }
 0x444   : > { %v988_v8 = vpop.f32.mrf.mxu0 }
 0x446   : > { %v1690_v9 = vpop.f32.mrf.mxu0 }
 0x44c   : > { %v1036_v10 = vpop.f32.mrf.mxu0 }
 0x44d   : > { %v1042_v11 = vsel %vm624_vm3, %v1036_v10, -inf }
 0x44e   : > { %1043 = vmax.xlane.f32.xlu0 %v1042_v11  ;;  %v1695_v12 = vpop.f32.mrf.mxu0 }
 0x450   : > { %v1039_v13 = vpop.f32.mrf.mxu0 }
 0x452   : > { %v1696_v14 = vpop.f32.mrf.mxu0 }
 0x464   : > { %1053 = vrot.lane.b32.xlu0 %v1986_v7, %s1853_s17 }
 0x468   : > { %1135 = vrot.lane.b32.xlu0 %v988_v8, %s1854_s18 }
 0x4d7   : > { %v1044_v15 = vpop.xlane.xlu0 %1043 }
 0x4d8   : > { %v1045_v16 = vsub.f32 %v1036_v10, %v1044_v15 }
 0x4da   : > { %v1046_v17 = vmul.f32 1.442695, %v1045_v16 }
 0x4db   : > { %v1054_v18 = vpop.permute.xlu0 %1053 }
 0x4dc   : > { %1795 = vpow2.f32 %v1046_v17  ;;  %1698 = vmatpush3.msk.msra.mxu1 %vm643_vm4, %v1054_v18 }
 0x4dd   : > { %1710 = vmatprep.subr.bf16.mxu1 %v1841_v1 }
 0x4df   : > { %v1136_v29 = vpop.permute.xlu0 %1135 }
 0x4e9   : > { %v1796_v19 = vpop.eup %1795 }
 0x4ea   : > { %v1048_v20 = vsel %vm624_vm3, %v1796_v19, 0.0 }
 0x4eb   : > { %1049 = vadd.xlane.f32.xlu1 %v1048_v20 }
 0x4fc   : > { %1131 = vrot.lane.b32.xlu1 %v850_v5, %s1855_s19 }
 0x574   : > { %v1050_v21 = vpop.xlane.xlu1 %1049 }
 0x575   : > { %1797 = vrcp.f32 %v1050_v21 }
 0x578   : > { %v1132_v27 = vpop.permute.xlu1 %1131 }
 0x579   : > { %v1142_v28 = vsel %vm577_vm2, %v712_v2, %v1132_v27 }
 0x57a   : > { %v1144_v30 = vsel %vm1143_vm6, %v1142_v28, %v1136_v29 }
 0x582   : > { %v1798_v7 = vpop.eup %1797 }
 0x583   : > { %v1052_v22 = vmul.f32 %v1798_v7, %v1796_v19 }
 0x585   : > { %1700 = vmatmul.mubr.msk.f32.vlgmr.msra.gmra.mxu1 %vm639_vm5, %v1052_v22 }
 0x586   : > { %1714 = vmatprep.mubr.msk.bf16.mxu1 %vm1842_vm0, %v1841_v1  ;;  %1711 = vmatpush3.bf16.msra.mxu1 %v1777_v47 }
 0x587   : > { %1712 = vmatprep.subr.bf16.mxu1 %v1841_v1 }
 0x645   : > { %v1126_v25 = vpop.f32.mrf.mxu1 }
 0x646   : > { %1139 = vrot.lane.b32.xlu1 %v1126_v25, %s1856_s26 }
 0x647   : > { %v1701_v26 = vpop.f32.mrf.mxu1 }
 0x648   : > { %v1606_v26 = vld [vmem:[%s2159_s12] ss:$0 sm:$0xff] }
 0x6b8   : > { %v1140_v31 = vpop.permute.xlu1 %1139 }
 0x6b9   : > { %v1146_v32 = vsel %vm1145_vm7, %v1144_v30, %v1140_v31 }
 0x6ba   : > { %v1152_v33 = vpack.c.bf16 %v1146_v32, %v1146_v32 }
 0x6bc   : > { %1707 = vmatmul.mubr.msk.bf16.vlgmr.msra.gmra.mxu0 %vm529_vm1, %v1152_v33 }
 0x6bd   : > { %1726 = vmatprep.mubr.msk.bf16.mxu0 %vm1842_vm0, %v1841_v1  ;;  %1719 = vmatpush3.bf16.msra.mxu0 %v1779_v48 }
 0x6be   : > { %1720 = vmatprep.subr.bf16.mxu0 %v1841_v1 }
 0x6c1   : > { %1721 = vmatpush3.bf16.msra.mxu0 %v1780_v49 }
 0x6c2   : > { %1722 = vmatprep.subr.bf16.mxu0 %v1841_v1 }
 0x6c5   : > { %1723 = vmatpush3.bf16.msra.mxu0 %v1781_v60 }
 0x6c6   : > { %1724 = vmatprep.subr.bf16.mxu0 %v1841_v1  ;;  %v1604_v1 = vld [vmem:[%s2157_s10] ss:$0 sm:$0xff] }
 0x6c9   : > { %1725 = vmatpush3.bf16.msra.mxu0 %v1782_v61 }
 0x77c   : > { %v1208_v35 = vpop.f32.mrf.mxu0 }
 0x77d   : > { %v1209_v36 = vadd.f32 %v1589_v34, %v1208_v35 }
 0x77e   : > { %v1708_v37 = vpop.f32.mrf.mxu0 }
 0x77f   : > { %v1214_v38 = vadd.f32 %v1209_v36, %v1976_v3  ;;  %v1778_v3 = vld [vmem:[%s2154_s7] sm:$0xff]  }
 0x780   : > { %v1211_v39 = vpop.f32.mrf.mxu0  ;;  %1713 = vmatpush3.bf16.msra.mxu1 %v1778_v3 }
 0x781   : > { %v1218_v40 = vsel %vm1217_vm8, %v1214_v38, 0.0 }
 0x782   : > { %1219 = vadd.xlane.f32.xlu0 %v1218_v40  ;;  %v1709_v41 = vpop.f32.mrf.mxu0 }
 0x80b   : > { %v1220_v42 = vpop.xlane.xlu0 %1219 }
 0x80c   : > { %v1222_v43 = vmul.f32 0.03125, %v1220_v42 }
 0x80e   : > { %v1223_v44 = vsub.f32 %v1214_v38, %v1222_v43 }
 0x810   : > { %v1224_v45 = vmul.f32 %v1223_v44, %v1223_v44 }
 0x812   : > { %v1225_v46 = vsel %vm1217_vm8, %v1224_v45, 0.0 }
 0x813   : > { %1226 = vadd.xlane.f32.xlu1 %v1225_v46 }
 0x89c   : > { %v1227_v50 = vpop.xlane.xlu1 %1226 }
 0x89d   : > { %v1228_v51 = vmul.f32 0.03125, %v1227_v50 }
 0x89f   : > { %v1229_v52 = vadd.f32 1e-05, %v1228_v51 }
 0x8a1   : > { %1799 = vrsqrt.f32 %v1229_v52 }
 0x8ae   : > { %v1800_v53 = vpop.eup %1799 }
 0x8af   : > { %v1231_v55 = vmul.f32 %v1800_v53, %v1223_v44 }
 0x8b1   : > { %v1238_v57 = vmul.f32 %v1593_v54, %v1231_v55 }
 0x8b3   : > { %v1245_v58 = vadd.f32 %v1594_v56, %v1238_v57 }
 0x8b5   : > { %v1246_v59 = vpack.c.bf16 %v1245_v58, %v1245_v58 }
 0x8b7   : > { %1715 = vmatmul.mubr.msk.bf16.vlgmr.msra.gmra.mxu1 %vm529_vm1, %v1246_v59 }
 0x977   : > { %v1307_v63 = vpop.f32.mrf.mxu1 }
 0x978   : > { %v1308_v0 = vadd.f32 %v1595_v62, %v1307_v63 }
 0x979   : > { %v1716_v2 = vpop.f32.mrf.mxu1 }
 0x97a   : > { %v1313_v4 = vmax.f32 %v1308_v0, 0.0 }
 0x97b   : > { %v1310_v5 = vpop.f32.mrf.mxu1 }
 0x97c   : > { %v1314_v6 = vpack.c.bf16 %v1313_v4, %v1313_v4 }
 0x97d   : > { %v1717_v8 = vpop.f32.mrf.mxu1 }
 0x97e   : > { %1727 = vmatmul.mubr.msk.bf16.vlgmr.msra.gmra.mxu0 %vm1347_vm9, %v1314_v6 }
 0xa3e   : > { %v1385_v9 = vpop.f32.mrf.mxu0 }
 0xa3f   : > { %v1391_v10 = vadd.f32 %v1385_v9, %v1245_v58 }
 0xa40   : > { %v1728_v11 = vpop.f32.mrf.mxu0 }
 0xa41   : > { %v1399_v12 = vadd.f32 %v1604_v1, %v1391_v10 }
 0xa42   : > { %v1388_v13 = vpop.f32.mrf.mxu0 }
 0xa43   : > { %v1402_v14 = vsel %vm1217_vm8, %v1399_v12, 0.0 }
 0xa44   : > { %1403 = vadd.xlane.f32.xlu0 %v1402_v14  ;;  %v1729_v15 = vpop.f32.mrf.mxu0 }
 0xacd   : > { %v1404_v16 = vpop.xlane.xlu0 %1403 }
 0xace   : > { %v1405_v17 = vmul.f32 0.03125, %v1404_v16 }
 0xad0   : > { %v1406_v18 = vsub.f32 %v1399_v12, %v1405_v17 }
 0xad2   : > { %v1407_v19 = vmul.f32 %v1406_v18, %v1406_v18 }
 0xad4   : > { %v1408_v20 = vsel %vm1217_vm8, %v1407_v19, 0.0 }
 0xad5   : > { %1409 = vadd.xlane.f32.xlu0 %v1408_v20 }
 0xb5e   : > { %v1410_v21 = vpop.xlane.xlu0 %1409 }
 0xb5f   : > { %v1411_v7 = vmul.f32 0.03125, %v1410_v21 }
 0xb61   : > { %v1412_v22 = vadd.f32 1e-05, %v1411_v7 }
 0xb63   : > { %1801 = vrsqrt.f32 %v1412_v22 }
 0xb70   : > { %v1802_v23 = vpop.eup %1801 }
 0xb71   : > { %v1414_v25 = vmul.f32 %v1802_v23, %v1406_v18  ;;  %1432 = sbr.rel (%p1607_p4) target bundleno = 2936 (0xb78), region = 84 }
 0xb73   : > { %v1421_v27 = vmul.f32 %v1605_v24, %v1414_v25 }
 0xb75   : > { %v1428_v28 = vadd.f32 %v1606_v26, %v1421_v27 }
 0xb76   : > { %v1857_v29 = vmov 0.0  }
 0xb77   : > { %1433 = vst.msk [vmem:[#allocation2] sm:$0x3] %vm1217_vm8, %v1857_v29 }
 0xb78 PF: > { %v1435_v31 = vmul.f32 0.25, %v1428_v28  ;;  %p1608_p5 = scmp.ne.s32.totalorder %s1953_s22, 3 }
 0xb79   : > { %s1860_s20 = smov (!%p1608_p5), 96  }
 0xb7d   : > { %1441 = sbr.rel (%p1608_p5) target bundleno = 3266 (0xcc2), region = 88 }
 0xb7e   : > { %v1434_v30 = vld [vmem:[#allocation2] sm:$0x3] }
 0xb7f   : > { %v1436_v32 = vadd.f32 %v1435_v31, %v1434_v30 }
 0xb81   : > { %1437 = vst.msk [vmem:[#allocation2] sm:$0x3] %vm1217_vm8, %v1436_v32 }
 0xb82   : > { %v1803_v33 = vld [vmem:[%s2160_s13 + $0x8] sm:$0xff]   ;;  %v1858_v34 = vmov 0.0   ;;  %v1804_v35 = vld [vmem:[%s2160_s13] sm:$0xff]   ;;  %vm1859_vm10 = vmmov 0  }
 0xb83   : > { %1730 = vmatprep.subr.bf16.mxu0 %v1858_v34  ;;  %1734 = vmatprep.mubr.msk.bf16.mxu0 %vm1859_vm10, %v1858_v34  ;;  %v1609_v38 = vld [vmem:[%s2161_s14] ss:$0 sm:$0xff] }
 0xb84   : > { %1731 = vmatpush3.bf16.msra.mxu0 %v1803_v33 }
 0xb85   : > { %1732 = vmatprep.subr.bf16.mxu0 %v1858_v34 }
 0xb88   : > { %v1442_v36 = vld [vmem:[#allocation2] sm:$0x3]  ;;  %1733 = vmatpush3.bf16.msra.mxu0 %v1804_v35 }
 0xb89   : > { %v1448_v37 = vpack.c.bf16 %v1442_v36, %v1442_v36 }
 0xb8b   : > { %1735 = vmatmul.mubr.msk.bf16.vlgmr.msra.gmra.mxu0 %vm529_vm1, %v1448_v37 }
 0xc4b   : > { %v1504_v39 = vpop.f32.mrf.mxu0 }
 0xc4c   : > { %v1505_v40 = vadd.f32 %v1609_v38, %v1504_v39 }
 0xc4d   : > { %v1736_v41 = vpop.f32.mrf.mxu0 }
 0xc4e   : > { %1510 = vst.msk [vmem:[%s2162_s15] sm:$0x3] %vm1217_vm8, %v1505_v40  ;;  %1512 = vrot.lane.b32.xlu0 %v1505_v40, %s1860_s20 }
 0xc4f   : > { %v1507_v42 = vpop.f32.mrf.mxu0 }
 0xc51   : > { %v1737_v43 = vpop.f32.mrf.mxu0 }
 0xcc0   : > { %v1513_v44 = vpop.permute.xlu0 %1512 }
 0xcc1   : > { %1515 = vst.msk [vmem:[#allocation3] sm:$0x3] %vm1217_vm8, %v1513_v44 }
 0xcc2 PF: > { %p1742_p6 = scmp.eq.s32.totalorder %s1953_s22, 3  ;;  %s1861_s23 = smov [#allocation3]  }
 0xcc3   : > { %s1526_s24 = sshll.u32 %s1861_s23, 4  ;;  %s1527_s24 = int_to_ptr.vmem [resolvable:$true] %s1526_s24 }
 0xcc4   : > { %s1805_s25 = scalar_lea.vmem %s1527_s24, 32  ;;  %p1812_p10 = scmp.lt.s32.totalorder %s1527_s24, %s1527_s24 }
 0xcc5   : > { %p1806_p7 = scmp.ne.s32.totalorder %s1527_s24, %s1805_s25  ;;  %p1813_p11 = scmp.lt.s32.totalorder %s1805_s25, %s1805_s25 }
 0xcc7   : > { %p1807_p8 = pnand %p1806_p7, %p1742_p6  ;;  %p1814_p12 = por %p1813_p11, %p1812_p10 }
 0xcc9   : > { %p1808_p9 = pneg %p1807_p8 }
 0xccb   : > { %p1815_p13 = pnand %p1814_p12, %p1808_p9 }
 0xccd   : > { %1818 = shalt.err (!%p1815_p13)
}
 0xcce   : > { %1739 = dma.vmem_to_hbm [thread:$0]  (%p1742_p6), %s1527_s24, 32, %s2163_s16, [#allocation4]  }
 0xccf   : > { %1834 = dma.done.wait (%p1742_p6), [#allocation4], 32  }
 0xcd0   : > { %1836 = vsyncadd (%p1742_p6), [#allocation4], 4294967264 }
 0xcd1 PF: > { %s28_s21 = sadd.s32 1, %s1839_s21  }
 0xcd2   : > { %p25_p0 = scmp.ge.s32.totalorder %s28_s21, 6  }
 0xcd4   :  { %27 = sbr.rel (!%p25_p0) target bundleno = 3 (0x3), region = 123 }
 0xcd9   :  { %1542 = vsyncpa [#allocation4], 1 }
 0xcda   :  { %1544 = vsyncpa [#allocation4 + $0x1], 1 }

// kernel: video_encoder_forward.3
= control target key start
LH: loop header
LB: loop body
LE: loop exit
PB: predicated region body
PF: predicated region fallthrough
CT: control target
= control target key end

     0   :  { %s2313_s18 = smov 0   ;;  %s2315_s19 = smov 0   ;;  %s2672_s0 = inlined_call_operand.vmem [shape: f32[2,4,32,16], index: 0, kind: input, shape index: {}]   ;;  %s2673_s1 = inlined_call_operand.vmem [shape: f32[16,96], index: 1, kind: input, shape index: {}]   ;;  %s2674_s2 = inlined_call_operand.vmem [shape: bf16[32,96], index: 2, kind: input, shape index: {}]   ;;  %s2675_s3 = inlined_call_operand.vmem [shape: bf16[32,32], index: 3, kind: input, shape index: {}]   ;;  %s2676_s4 = inlined_call_operand.vmem [shape: f32[1,32], index: 4, kind: input, shape index: {}]   ;;  %s2677_s5 = inlined_call_operand.vmem [shape: f32[4,2,32], index: 5, kind: output, shape index: {}]  }
   0x1   :  { %s2317_s20 = smov 0  }
   0x2 LB: > { %s1906_s21 = sadd.s32 4294967295, %s2265_s20   ;;  %s2330_s22 = sadd.s32 1, %s2265_s20   ;;  %s2265_s20 = sphi %s2317_s20, %s2680_s20   ;;  %s2261_s19 = sphi %s2315_s19, %s2679_s19   ;;  %s2257_s18 = sphi %s2313_s18, %s2678_s18  }
   0x3   : > { %s19_s23 = ssub.s32 %s2265_s20, %s2330_s22  ;;  %s22_s24 = sadd.s32 1, %s2261_s19 }
   0x4   : > { %p20_p0 = scmp.eq.s32.totalorder %s19_s23, 0  ;;  %p29_p1 = scmp.ne.s32.totalorder %s2261_s19, %s2257_s18 }
   0x5   : > { %p30_p2 = scmp.eq.s32.totalorder %s2265_s20, 0  ;;  %p1909_p4 = scmp.ge.s32.totalorder %s2265_s20, 4 }
   0x6   : > { %s2339_s25 = scalar_select %p20_p0, %s2261_s19, %s22_s24  }
   0x7   : > { %p31_p3 = por %p30_p2, %p29_p1  ;;  %177 = sbr.rel (%p1909_p4) target bundleno = 20 (0x14), region = 32 }
   0xc   : > { %180 = sbr.rel (!%p31_p3) target bundleno = 20 (0x14), region = 36  ;;  %s182_s26 = sand.u32 (%p31_p3), 1, %s2261_s19  }
   0xd   : > { %s1946_s27 = sshll.u32 (%p31_p3), %s2265_s20, 5  ;;  %s1910_s28 = sshll.u32 (%p31_p3), %s182_s26, 6 }
   0xe   : > { %s187_s6 = scalar_lea.vmem (%p31_p3), %s2672_s0, %s1946_s27  ;;  %s184_s7 = scalar_lea.vmem (%p31_p3), [#allocation2], %s1910_s28 }
   0xf   : > { %v230_v0 = vld [vmem:[%s187_s6] sm:$0xff] (%p31_p3)  ;;  %v232_v1 = vld [vmem:[%s187_s6 + $0x8] sm:$0xff] (%p31_p3)  ;;  %v234_v2 = vld [vmem:[%s187_s6 + $0x10] sm:$0xff] (%p31_p3) }
  0x10   : > { %231 = vst [vmem:[%s184_s7] sm:$0xff] (%p31_p3), %v230_v0  ;;  %233 = vst [vmem:[%s184_s7 + $0x8] sm:$0xff] (%p31_p3), %v232_v1  ;;  %v236_v3 = vld [vmem:[%s187_s6 + $0x18] sm:$0xff] (%p31_p3)  ;;  %v238_v4 = vld [vmem:[%s187_s6 + $0x80] sm:$0xff] (%p31_p3) }
  0x11   : > { %235 = vst [vmem:[%s184_s7 + $0x10] sm:$0xff] %v234_v2  ;;  %v240_v5 = vld [vmem:[%s187_s6 + $0x88] sm:$0xff]  ;;  %237 = vst [vmem:[%s184_s7 + $0x18] sm:$0xff] %v236_v3  ;;  %v242_v6 = vld [vmem:[%s187_s6 + $0x90] sm:$0xff] }
  0x12   : > { %239 = vst [vmem:[%s184_s7 + $0x20] sm:$0xff] %v238_v4  ;;  %241 = vst [vmem:[%s184_s7 + $0x28] sm:$0xff] %v240_v5  ;;  %v244_v7 = vld [vmem:[%s187_s6 + $0x98] sm:$0xff] }
  0x13   : > { %243 = vst [vmem:[%s184_s7 + $0x30] sm:$0xff] %v242_v6  ;;  %245 = vst [vmem:[%s184_s7 + $0x38] sm:$0xff] %v244_v7 }
  0x14 PF: > { %p1913_p5 = scmp.ge.s32.totalorder %s2265_s20, 1  ;;  %p250_p6 = scmp.lt.s32.totalorder %s2265_s20, 5 }
  0x16   : > { %p251_p7 = pnand %p1913_p5, %p250_p6 }
  0x17   : > { %s257_s8 = sand.u32 (!%p251_p7), 1, %s2257_s18   ;;  %s2269_s23 = smov (!%p251_p7), 120  }
  0x18   : > { %254 = sbr.rel (%p251_p7) target bundleno = 3174 (0xc66), region = 74  ;;  %s1914_s11 = sshll.u32 (!%p251_p7), %s257_s8, 6 }
  0x19   : > { %s2363_s14 = scalar_lea.vmem (!%p251_p7), [#allocation2], %s1914_s11  ;;  %s2270_s24 = smov (!%p251_p7), 96  }
  0x1a   : > { %s2271_s26 = smov (!%p251_p7), 88   ;;  %s2272_s27 = smov (!%p251_p7), 80  }
  0x1b   : > { %s2273_s28 = smov (!%p251_p7), 112   ;;  %s2274_s29 = smov (!%p251_p7), 64  }
  0x1c   : > { %s2275_s30 = smov (!%p251_p7), 56   ;;  %s2276_s6 = smov (!%p251_p7), 48  }
  0x1d   : > { %v2353_v8 = vld [vmem:[%s2674_s2 + $0x8] sm:$0xff]   ;;  %v2267_v9 = vmov 0.0   ;;  %v2361_v10 = vld [vmem:[%s2674_s2] sm:$0xff]   ;;  %v296_v13 = vld [vmem:[%s2363_s14 + $0x10] sm:$0xff]  ;;  %vm2268_vm0 = vmmov 0   ;;  %vm328_vm1 = vcmask 261120  }
  0x1e   : > { %1996 = vmatprep.subr.bf16.mxu1 %v2267_v9  ;;  %2010 = vmatprep.subr.mxu0 %v2267_v9  ;;  %v294_v11 = vld [vmem:[%s2363_s14] sm:$0xff]  ;;  %v295_v12 = vld [vmem:[%s2363_s14 + $0x8] sm:$0xff]  ;;  %v297_v15 = vld [vmem:[%s2363_s14 + $0x18] sm:$0xff]  ;;  %vm377_vm2 = vcmask 64512   ;;  %vm425_vm3 = vcmask 130048   ;;  %s2277_s7 = smov 72  }
  0x1f   : > { %1997 = vmatpush3.bf16.msra.mxu1 %v2353_v8  ;;  %2000 = vmatprep.mubr.msk.bf16.mxu1 %vm2268_vm0, %v2267_v9  ;;  %v298_v14 = vpack.c.bf16 %v295_v12, %v294_v11  ;;  %v299_v16 = vpack.c.bf16 %v297_v15, %v296_v13  ;;  %v2382_v19 = vld [vmem:[%s2673_s1] sm:$0xff]  ;;  %v2387_v21 = vld [vmem:[%s2673_s1 + $0x8] sm:$0xff]  ;;  %s2278_s8 = smov 104   ;;  %s2279_s9 = smov 40   ;;  %vm1039_vm4 = vcmask 195584   ;;  %vm1776_vm5 = vcmask 1040384  }
  0x20   : > { %1998 = vmatprep.subr.bf16.mxu1 %v2267_v9  ;;  %2014 = vmatprep.mubr.msk.f32.mxu0 %vm2268_vm0, %v2267_v9  ;;  %s2280_s10 = smov 8   ;;  %s2281_s11 = smov 16   ;;  %vm1845_vm6 = vcmask 254976  }
  0x21   : > { %300 = vxpose.xlu0.c.b16.start [1/2] (short) (narrow) %v298_v14, 16  ;;  %s2282_s12 = smov 24   ;;  %p283_p8 = scmp.lt.s32.totalorder %s1906_s21, 3 }
  0x23   : > { %1999 = vmatpush3.bf16.msra.mxu1 %v2361_v10  ;;  %s2682_s21 = smov (!%p283_p8, %s1906_s21), 3 }
  0x24   : > { %2004 = vmatprep.subr.bf16.mxu1 %v2267_v9  ;;  %s1915_s17 = sshll.u32 %s2682_s21, 1 }
  0x25   : > { %301 = vxpose.xlu0.c.b16.end [2/2] (short) (narrow) %v299_v16, 16 }
  0x83   : > { %v308_v17 = vpop.trf.xlu0 }
  0x84   : > { %2001 = vmatmul.mubr.msk.bf16.vlgmr.msra.gmra.mxu1 %vm328_vm1, %v308_v17 }
  0x85   : > { %2006 = vmatprep.mubr.msk.bf16.mxu1 %vm2268_vm0, %v2267_v9 }
 0x144   : > { %v366_v18 = vpop.f32.mrf.mxu1 }
 0x145   : > { %v2390_v23 = vadd.f32 %v366_v18, %v2382_v19 }
 0x146   : > { %v2002_v20 = vpop.f32.mrf.mxu1 }
 0x148   : > { %v369_v22 = vpop.f32.mrf.mxu1 }
 0x149   : > { %v2393_v24 = vadd.f32 %v369_v22, %v2387_v21 }
 0x14a   : > { %v2003_v25 = vpop.f32.mrf.mxu1 }
 0x14b   : > { %v2397_v26 = vpack.c.bf16 %v2393_v24, %v2390_v23 }
 0x14d   : > { %539 = vrot.lane.b32.xlu0 %v2397_v26, %s2269_s23  ;;  %375 = vrot.lane.b32.xlu1 %v2397_v26, %s2270_s24 }
 0x151   : > { %541 = vrot.lane.b32.xlu1 %v2397_v26, %s2271_s26 }
 0x155   : > { %703 = vrot.lane.b32.xlu1 %v2397_v26, %s2272_s27 }
 0x159   : > { %701 = vrot.lane.b32.xlu1 %v2397_v26, %s2273_s28 }
 0x1bf   : > { %v376_v27 = vpop.permute.xlu1 %375  ;;  %v540_v32 = vpop.permute.xlu0 %539 }
 0x1c0   : > { %v382_v28 = vsel %vm377_vm2, %v376_v27, 0  ;;  %v1927_v27 = vld [vmem:[%s2363_s14 + $0x20] sm:$0xff] }
 0x1c1   : > { %2005 = vmatpush3.bf16.xpose.msra.mxu1 %v382_v28  ;;  %v1928_v28 = vld [vmem:[%s2363_s14 + $0x28] sm:$0xff] }
 0x1c2   : > { %2017 = vmatprep.subr.bf16.mxu1 %v2267_v9 }
 0x1c3   : > { %v542_v29 = vpop.permute.xlu1 %541 }
 0x1c4   : > { %v547_v30 = vsel %vm377_vm2, %v542_v29, 0  ;;  %v1046_v29 = vpack.c.bf16 %v1928_v28, %v1927_v27 }
 0x1c7   : > { %v704_v31 = vpop.permute.xlu1 %703 }
 0x1c8   : > { %2007 = vmatmul.mubr.msk.bf16.vlgmr.msra.gmra.mxu1 %vm377_vm2, %v2397_v26  ;;  %v709_v33 = vsel %vm377_vm2, %v704_v31, 0  ;;  %v1930_v31 = vld [vmem:[%s2363_s14 + $0x38] sm:$0xff] }
 0x1c9   : > { %2018 = vmatpush3.bf16.xpose.msra.mxu1 %v547_v30  ;;  %2019 = vmatprep.mubr.msk.bf16.mxu1 %vm2268_vm0, %v2267_v9  ;;  %v1929_v30 = vld [vmem:[%s2363_s14 + $0x30] sm:$0xff] }
 0x1ca   : > { %2030 = vmatprep.subr.bf16.mxu1 %v2267_v9 }
 0x1cb   : > { %v702_v34 = vpop.permute.xlu1 %701 }
 0x1d0   : > { %2020 = vmatmul.mubr.msk.bf16.vlgmr.msra.gmra.mxu1 %vm377_vm2, %v540_v32  ;;  %v1047_v32 = vpack.c.bf16 %v1930_v31, %v1929_v30 }
 0x1d1   : > { %2031 = vmatpush3.bf16.xpose.msra.mxu1 %v709_v33  ;;  %2032 = vmatprep.mubr.msk.bf16.mxu1 %vm2268_vm0, %v2267_v9 }
 0x1d2   : > { %2049 = vmatprep.subr.mxu1 %v2267_v9 }
 0x1d8   : > { %2033 = vmatmul.mubr.msk.bf16.vlgmr.msra.gmra.mxu1 %vm377_vm2, %v702_v34 }
 0x1d9   : > { %2053 = vmatprep.mubr.msk.f32.mxu1 %vm2268_vm0, %v2267_v9 }
 0x288   : > { %v418_v35 = vpop.f32.mrf.mxu1 }
 0x289   : > { %v426_v36 = vsel %vm425_vm3, %v418_v35, -inf }
 0x28a   : > { %427 = vmax.xlane.f32.xlu1 %v426_v36  ;;  %v2008_v37 = vpop.f32.mrf.mxu1 }
 0x28c   : > { %v421_v38 = vpop.f32.mrf.mxu1 }
 0x28d   : > { %v429_v39 = vsel %vm425_vm3, %v421_v38, -inf }
 0x28e   : > { %430 = vmax.xlane.f32.xlu0 %v429_v39  ;;  %v2009_v40 = vpop.f32.mrf.mxu1 }
 0x290   : > { %v583_v41 = vpop.f32.mrf.mxu1 }
 0x291   : > { %v590_v42 = vsel %vm425_vm3, %v583_v41, -inf }
 0x292   : > { %591 = vmax.xlane.f32.xlu0 %v590_v42  ;;  %v2021_v43 = vpop.f32.mrf.mxu1 }
 0x294   : > { %v586_v44 = vpop.f32.mrf.mxu1 }
 0x295   : > { %v593_v45 = vsel %vm425_vm3, %v586_v44, -inf }
 0x296   : > { %594 = vmax.xlane.f32.xlu0 %v593_v45  ;;  %v2022_v46 = vpop.f32.mrf.mxu1 }
 0x298   : > { %v745_v47 = vpop.f32.mrf.mxu1 }
 0x299   : > { %v752_v48 = vsel %vm425_vm3, %v745_v47, -inf }
 0x29a   : > { %753 = vmax.xlane.f32.xlu1 %v752_v48  ;;  %v2034_v49 = vpop.f32.mrf.mxu1 }
 0x29c   : > { %v748_v50 = vpop.f32.mrf.mxu1 }
 0x29d   : > { %v755_v51 = vsel %vm425_vm3, %v748_v50, -inf }
 0x29e   : > { %756 = vmax.xlane.f32.xlu0 %v755_v51  ;;  %v2035_v52 = vpop.f32.mrf.mxu1 }
 0x313   : > { %v428_v53 = vpop.xlane.xlu1 %427 }
 0x314   : > { %v432_v54 = vsub.f32 %v418_v35, %v428_v53 }
 0x316   : > { %v434_v55 = vmul.f32 1.442695, %v432_v54 }
 0x317   : > { %v431_v56 = vpop.xlane.xlu0 %430 }
 0x318   : > { %2179 = vpow2.f32 %v434_v55  ;;  %v433_v57 = vsub.f32 %v421_v38, %v431_v56 }
 0x31a   : > { %v436_v58 = vmul.f32 1.442695, %v433_v57 }
 0x31b   : > { %v592_v59 = vpop.xlane.xlu0 %591 }
 0x31c   : > { %2181 = vpow2.f32 %v436_v58  ;;  %v596_v60 = vsub.f32 %v583_v41, %v592_v59 }
 0x31e   : > { %v598_v61 = vmul.f32 1.442695, %v596_v60 }
 0x31f   : > { %v595_v62 = vpop.xlane.xlu0 %594 }
 0x320   : > { %2183 = vpow2.f32 %v598_v61  ;;  %v597_v63 = vsub.f32 %v586_v44, %v595_v62 }
 0x322   : > { %v600_v0 = vmul.f32 1.442695, %v597_v63 }
 0x323   : > { %v754_v1 = vpop.xlane.xlu1 %753 }
 0x324   : > { %2185 = vpow2.f32 %v600_v0  ;;  %v758_v2 = vsub.f32 %v745_v47, %v754_v1 }
 0x325   : > { %v2180_v3 = vpop.eup %2179 }
 0x326   : > { %v760_v4 = vmul.f32 1.442695, %v758_v2  ;;  %v438_v5 = vsel %vm425_vm3, %v2180_v3, 0.0 }
 0x327   : > { %439 = vadd.xlane.f32.xlu1 %v438_v5  ;;  %v757_v6 = vpop.xlane.xlu0 %756 }
 0x328   : > { %2187 = vpow2.f32 %v760_v4  ;;  %v759_v7 = vsub.f32 %v748_v50, %v757_v6 }
 0x329   : > { %v2182_v11 = vpop.eup %2181 }
 0x32a   : > { %v762_v12 = vmul.f32 1.442695, %v759_v7  ;;  %v441_v13 = vsel %vm425_vm3, %v2182_v11, 0.0 }
 0x32b   : > { %442 = vadd.xlane.f32.xlu0 %v441_v13 }
 0x32c   : > { %2189 = vpow2.f32 %v762_v12 }
 0x32d   : > { %v2184_v14 = vpop.eup %2183 }
 0x32e   : > { %v602_v15 = vsel %vm425_vm3, %v2184_v14, 0.0 }
 0x32f   : > { %603 = vadd.xlane.f32.xlu1 %v602_v15 }
 0x331   : > { %v2186_v16 = vpop.eup %2185 }
 0x332   : > { %v605_v17 = vsel %vm425_vm3, %v2186_v16, 0.0 }
 0x333   : > { %606 = vadd.xlane.f32.xlu0 %v605_v17 }
 0x335   : > { %v2435_v18 = vpop.eup %2187 }
 0x336   : > { %v764_v20 = vsel %vm425_vm3, %v2435_v18, 0.0 }
 0x337   : > { %765 = vadd.xlane.f32.xlu1 %v764_v20 }
 0x339   : > { %v2439_v22 = vpop.eup %2189 }
 0x33a   : > { %v767_v25 = vsel %vm425_vm3, %v2439_v22, 0.0 }
 0x33b   : > { %768 = vadd.xlane.f32.xlu0 %v767_v25 }
 0x348   : > { %462 = vrot.lane.b32.xlu1 %v2393_v24, %s2274_s29 }
 0x34c   : > { %624 = vrot.lane.b32.xlu1 %v2393_v24, %s2275_s30 }
 0x350   : > { %622 = vrot.lane.b32.xlu1 %v2390_v23, %s2275_s30 }
 0x351   : > { %460 = vrot.lane.b32.xlu0 %v2390_v23, %s2274_s29 }
 0x354   : > { %786 = vrot.lane.b32.xlu1 %v2393_v24, %s2276_s6 }
 0x355   : > { %784 = vrot.lane.b32.xlu0 %v2390_v23, %s2276_s6 }
 0x358   : > { %865 = vrot.lane.b32.xlu1 %v2397_v26, %s2277_s7 }
 0x359   : > { %863 = vrot.lane.b32.xlu0 %v2397_v26, %s2278_s8 }
 0x37b   : > { %1048 = vxpose.xlu1.c.b16.start [1/2] (short) (narrow) %v1046_v29, 16 }
 0x37f   : > { %1049 = vxpose.xlu1.c.b16.end [2/2] (short) (narrow) %v1047_v32, 16 }
 0x3b0   : > { %v440_v33 = vpop.xlane.xlu1 %439 }
 0x3b1   : > { %2191 = vrcp.f32 %v440_v33 }
 0x3b4   : > { %v443_v34 = vpop.xlane.xlu0 %442 }
 0x3b5   : > { %2193 = vrcp.f32 %v443_v34 }
 0x3b8   : > { %v604_v35 = vpop.xlane.xlu1 %603 }
 0x3b9   : > { %2195 = vrcp.f32 %v604_v35 }
 0x3bc   : > { %v607_v36 = vpop.xlane.xlu0 %606 }
 0x3bd   : > { %2197 = vrcp.f32 %v607_v36 }
 0x3be   : > { %v2192_v37 = vpop.eup %2191 }
 0x3bf   : > { %v445_v39 = vmul.f32 %v2192_v37, %v2180_v3 }
 0x3c0   : > { %v766_v38 = vpop.xlane.xlu1 %765 }
 0x3c1   : > { %2199 = vrcp.f32 %v766_v38  ;;  %v448_v43 = vsel %vm425_vm3, %v445_v39, 0.0 }
 0x3c2   : > { %v2194_v26 = vpop.eup %2193 }
 0x3c3   : > { %v447_v40 = vmul.f32 %v2194_v26, %v2182_v11 }
 0x3c4   : > { %v463_v41 = vpop.permute.xlu1 %462  ;;  %v769_v42 = vpop.xlane.xlu0 %768 }
 0x3c5   : > { %2201 = vrcp.f32 %v769_v42  ;;  %2011 = vmatpush3.msra.mxu0 %v463_v41  ;;  %v449_v44 = vsel %vm425_vm3, %v447_v40, 0.0 }
 0x3c6   : > { %v2196_v45 = vpop.eup %2195  ;;  %2012 = vmatprep.subr.mxu0 %v2267_v9  ;;  %v450_v46 = vadd.f32 %v449_v44, %v448_v43 }
 0x3c7   : > { %v609_v49 = vmul.f32 %v2196_v45, %v2184_v14 }
 0x3c8   : > { %v461_v47 = vpop.permute.xlu0 %460  ;;  %v451_v48 = vrot.slane %v450_v46, 4  ;;  %v625_v62 = vpop.permute.xlu1 %624 }
 0x3c9   : > { %2013 = vmatpush3.msra.mxu0 %v461_v47  ;;  %v612_v54 = vsel %vm425_vm3, %v609_v49, 0.0 }
 0x3ca   : > { %v2198_v50 = vpop.eup %2197  ;;  %2023 = vmatprep.subr.mxu0 %v2267_v9  ;;  %v452_v51 = vadd.f32 %v451_v48, %v450_v46 }
 0x3cb   : > { %v611_v52 = vmul.f32 %v2198_v50, %v2186_v16 }
 0x3cc   : > { %v453_v53 = vrot.slane %v452_v51, 2  ;;  %v623_v12 = vpop.permute.xlu1 %622  ;;  %v785_v25 = vpop.permute.xlu0 %784 }
 0x3cd   : > { %v613_v55 = vsel %vm425_vm3, %v611_v52, 0.0 }
 0x3ce   : > { %v2200_v56 = vpop.eup %2199  ;;  %v614_v57 = vadd.f32 %v613_v55, %v612_v54  ;;  %v454_v58 = vadd.f32 %v453_v53, %v452_v51 }
 0x3cf   : > { %v771_v61 = vmul.f32 %v2200_v56, %v2435_v18 }
 0x3d0   : > { %v455_v59 = vrot.slane %v454_v58, 1  ;;  %v615_v60 = vrot.slane %v614_v57, 4  ;;  %v787_v20 = vpop.permute.xlu1 %786  ;;  %v864_v32 = vpop.permute.xlu0 %863 }
 0x3d1   : > { %v774_v5 = vsel %vm425_vm3, %v771_v61, 0.0 }
 0x3d2   : > { %v2202_v63 = vpop.eup %2201  ;;  %v456_v0 = vadd.f32 %v455_v59, %v454_v58  ;;  %v616_v1 = vadd.f32 %v615_v60, %v614_v57 }
 0x3d3   : > { %v773_v2 = vmul.f32 %v2202_v63, %v2439_v22 }
 0x3d4   : > { %v457_v3 = vmul.f32 0.0625, %v456_v0  ;;  %v617_v4 = vrot.slane %v616_v1, 2  ;;  %v866_v29 = vpop.permute.xlu1 %865 }
 0x3d5   : > { %v775_v6 = vsel %vm425_vm3, %v773_v2, 0.0  ;;  %v871_v31 = vsel %vm377_vm2, %v866_v29, 0 }
 0x3d6   : > { %v776_v7 = vadd.f32 %v775_v6, %v774_v5  ;;  %2015 = vmatmul.mubr.msk.f32.vlgmr.msra.gmra.mxu0 %vm425_vm3, %v457_v3  ;;  %v618_v11 = vadd.f32 %v617_v4, %v616_v1 }
 0x3d7   : > { %2024 = vmatpush3.msra.mxu0 %v625_v62  ;;  %2027 = vmatprep.mubr.msk.f32.mxu0 %vm2268_vm0, %v2267_v9 }
 0x3d8   : > { %2025 = vmatprep.subr.mxu0 %v2267_v9  ;;  %v619_v13 = vrot.slane %v618_v11, 1  ;;  %v777_v14 = vrot.slane %v776_v7, 4 }
 0x3d9   : > { %2026 = vmatpush3.msra.mxu0 %v623_v12 }
 0x3da   : > { %2036 = vmatprep.subr.mxu0 %v2267_v9  ;;  %v620_v15 = vadd.f32 %v619_v13, %v618_v11  ;;  %v778_v16 = vadd.f32 %v777_v14, %v776_v7 }
 0x3dc   : > { %v621_v17 = vmul.f32 0.0625, %v620_v15  ;;  %v779_v18 = vrot.slane %v778_v16, 2 }
 0x3dd   : > { %v1056_v33 = vpop.trf.xlu1 }
 0x3de   : > { %2028 = vmatmul.mubr.msk.f32.vlgmr.msra.gmra.mxu0 %vm425_vm3, %v621_v17  ;;  %v780_v22 = vadd.f32 %v779_v18, %v778_v16 }
 0x3df   : > { %2037 = vmatpush3.msra.mxu0 %v787_v20  ;;  %2040 = vmatprep.mubr.msk.f32.mxu0 %vm2268_vm0, %v2267_v9 }
 0x3e0   : > { %2038 = vmatprep.subr.mxu0 %v2267_v9  ;;  %v781_v27 = vrot.slane %v780_v22, 1 }
 0x3e1   : > { %2039 = vmatpush3.msra.mxu0 %v785_v25 }
 0x3e2   : > { %2043 = vmatprep.subr.bf16.mxu0 %v2267_v9  ;;  %v782_v28 = vadd.f32 %v781_v27, %v780_v22 }
 0x3e4   : > { %v783_v30 = vmul.f32 0.0625, %v782_v28 }
 0x3e6   : > { %2041 = vmatmul.mubr.msk.f32.vlgmr.msra.gmra.mxu0 %vm425_vm3, %v783_v30 }
 0x3e7   : > { %2044 = vmatpush3.bf16.xpose.msra.mxu0 %v871_v31  ;;  %2045 = vmatprep.mubr.msk.bf16.mxu0 %vm2268_vm0, %v2267_v9 }
 0x3e8   : > { %2056 = vmatprep.subr.bf16.mxu0 %v2267_v9 }
 0x3ee   : > { %2046 = vmatmul.mubr.msk.bf16.vlgmr.msra.gmra.mxu0 %vm377_vm2, %v864_v32 }
 0x3ef   : > { %2057 = vmatpush3.bf16.msra.mxu0 %v2353_v8  ;;  %2060 = vmatprep.mubr.msk.bf16.mxu0 %vm2268_vm0, %v2267_v9 }
 0x3f0   : > { %2058 = vmatprep.subr.bf16.mxu0 %v2267_v9 }
 0x3f3   : > { %2059 = vmatpush3.bf16.msra.mxu0 %v2361_v10 }
 0x3f4   : > { %2070 = vmatprep.subr.mxu0 %v2267_v9 }
 0x3f6   : > { %2061 = vmatmul.mubr.msk.bf16.vlgmr.msra.gmra.mxu0 %vm328_vm1, %v1056_v33 }
 0x3f7   : > { %2074 = vmatprep.mubr.msk.f32.mxu0 %vm2268_vm0, %v2267_v9 }
 0x496   : > { %v2498_v34 = vpop.f32.mrf.mxu0 }
 0x498   : > { %v2016_v35 = vpop.f32.mrf.mxu0 }
 0x49e   : > { %v2500_v36 = vpop.f32.mrf.mxu0 }
 0x4a0   : > { %v2029_v8 = vpop.f32.mrf.mxu0 }
 0x4a6   : > { %v2502_v37 = vpop.f32.mrf.mxu0 }
 0x4a8   : > { %v2042_v38 = vpop.f32.mrf.mxu0 }
 0x4ae   : > { %v907_v39 = vpop.f32.mrf.mxu0 }
 0x4af   : > { %v914_v10 = vsel %vm425_vm3, %v907_v39, -inf }
 0x4b0   : > { %915 = vmax.xlane.f32.xlu0 %v914_v10  ;;  %v2047_v26 = vpop.f32.mrf.mxu0 }
 0x4b2   : > { %v910_v40 = vpop.f32.mrf.mxu0 }
 0x4b3   : > { %v917_v41 = vsel %vm425_vm3, %v910_v40, -inf }
 0x4b4   : > { %918 = vmax.xlane.f32.xlu0 %v917_v41  ;;  %v2048_v42 = vpop.f32.mrf.mxu0 }
 0x4b6   : > { %v1101_v43 = vpop.f32.mrf.mxu0 }
 0x4b7   : > { %v2509_v57 = vadd.f32 %v1101_v43, %v2382_v19 }
 0x4b8   : > { %v2062_v44 = vpop.f32.mrf.mxu0 }
 0x4ba   : > { %v1104_v45 = vpop.f32.mrf.mxu0 }
 0x4bb   : > { %v2512_v58 = vadd.f32 %v1104_v45, %v2387_v21 }
 0x4bc   : > { %v2063_v46 = vpop.f32.mrf.mxu0 }
 0x4bd   : > { %v2520_v59 = vpack.c.bf16 %v2512_v58, %v2509_v57 }
 0x539   : > { %v916_v47 = vpop.xlane.xlu0 %915 }
 0x53a   : > { %v920_v48 = vsub.f32 %v907_v39, %v916_v47 }
 0x53c   : > { %v922_v49 = vmul.f32 1.442695, %v920_v48 }
 0x53d   : > { %v919_v50 = vpop.xlane.xlu0 %918 }
 0x53e   : > { %2203 = vpow2.f32 %v922_v49  ;;  %v921_v51 = vsub.f32 %v910_v40, %v919_v50 }
 0x540   : > { %v924_v52 = vmul.f32 1.442695, %v921_v51 }
 0x542   : > { %2205 = vpow2.f32 %v924_v52 }
 0x54b   : > { %v2204_v53 = vpop.eup %2203 }
 0x54c   : > { %v926_v54 = vsel %vm425_vm3, %v2204_v53, 0.0 }
 0x54d   : > { %927 = vadd.xlane.f32.xlu0 %v926_v54 }
 0x54f   : > { %v2206_v55 = vpop.eup %2205 }
 0x550   : > { %v929_v56 = vsel %vm425_vm3, %v2206_v55, 0.0 }
 0x551   : > { %930 = vadd.xlane.f32.xlu1 %v929_v56 }
 0x562   : > { %946 = vrot.lane.b32.xlu1 %v2390_v23, %s2279_s9 }
 0x563   : > { %948 = vrot.lane.b32.xlu0 %v2393_v24, %s2279_s9 }
 0x566   : > { %1272 = vrot.lane.b32.xlu1 %v2520_v59, %s2269_s23 }
 0x567   : > { %1110 = vrot.lane.b32.xlu0 %v2520_v59, %s2270_s24 }
 0x56a   : > { %1434 = vrot.lane.b32.xlu1 %v2520_v59, %s2273_s28 }
 0x56b   : > { %1274 = vrot.lane.b32.xlu0 %v2520_v59, %s2271_s26 }
 0x56f   : > { %1436 = vrot.lane.b32.xlu0 %v2520_v59, %s2272_s27  ;;  %s286_s27 = scalar_lea.vmem %s2677_s5, %s1915_s17 }
 0x5d6   : > { %v928_v19 = vpop.xlane.xlu0 %927 }
 0x5d7   : > { %2207 = vrcp.f32 %v928_v19 }
 0x5da   : > { %v931_v21 = vpop.xlane.xlu1 %930  ;;  %v949_v23 = vpop.permute.xlu0 %948 }
 0x5db   : > { %2209 = vrcp.f32 %v931_v21  ;;  %2050 = vmatpush3.msra.mxu1 %v949_v23 }
 0x5dc   : > { %2051 = vmatprep.subr.mxu1 %v2267_v9 }
 0x5de   : > { %v947_v24 = vpop.permute.xlu1 %946  ;;  %v1111_v13 = vpop.permute.xlu0 %1110 }
 0x5df   : > { %2052 = vmatpush3.msra.mxu1 %v947_v24  ;;  %v1116_v14 = vsel %vm377_vm2, %v1111_v13, 0 }
 0x5e0   : > { %2064 = vmatprep.subr.bf16.mxu1 %v2267_v9 }
 0x5e2   : > { %v1275_v15 = vpop.permute.xlu0 %1274  ;;  %v1273_v18 = vpop.permute.xlu1 %1272 }
 0x5e3   : > { %v1280_v16 = vsel %vm377_vm2, %v1275_v15, 0 }
 0x5e4   : > { %v2208_v60 = vpop.eup %2207 }
 0x5e5   : > { %v933_v61 = vmul.f32 %v2208_v60, %v2204_v53 }
 0x5e6   : > { %v1437_v17 = vpop.permute.xlu0 %1436  ;;  %v1435_v22 = vpop.permute.xlu1 %1434 }
 0x5e7   : > { %v936_v0 = vsel %vm425_vm3, %v933_v61, 0.0  ;;  %v1442_v20 = vsel %vm377_vm2, %v1437_v17, 0 }
 0x5e8   : > { %v2210_v62 = vpop.eup %2209 }
 0x5e9   : > { %v935_v63 = vmul.f32 %v2210_v62, %v2206_v55 }
 0x5eb   : > { %v937_v1 = vsel %vm425_vm3, %v935_v63, 0.0 }
 0x5ec   : > { %v938_v2 = vadd.f32 %v937_v1, %v936_v0 }
 0x5ee   : > { %v939_v3 = vrot.slane %v938_v2, 4 }
 0x5f0   : > { %v940_v4 = vadd.f32 %v939_v3, %v938_v2 }
 0x5f2   : > { %v941_v5 = vrot.slane %v940_v4, 2 }
 0x5f4   : > { %v942_v6 = vadd.f32 %v941_v5, %v940_v4 }
 0x5f6   : > { %v943_v7 = vrot.slane %v942_v6, 1 }
 0x5f8   : > { %v944_v11 = vadd.f32 %v943_v7, %v942_v6 }
 0x5fa   : > { %v945_v12 = vmul.f32 0.0625, %v944_v11 }
 0x5fc   : > { %2054 = vmatmul.mubr.msk.f32.vlgmr.msra.gmra.mxu1 %vm425_vm3, %v945_v12 }
 0x5fd   : > { %2065 = vmatpush3.bf16.xpose.msra.mxu1 %v1116_v14  ;;  %2066 = vmatprep.mubr.msk.bf16.mxu1 %vm2268_vm0, %v2267_v9 }
 0x5fe   : > { %2077 = vmatprep.subr.bf16.mxu1 %v2267_v9 }
 0x604   : > { %2067 = vmatmul.mubr.msk.bf16.vlgmr.msra.gmra.mxu1 %vm377_vm2, %v2520_v59 }
 0x605   : > { %2078 = vmatpush3.bf16.xpose.msra.mxu1 %v1280_v16  ;;  %2079 = vmatprep.mubr.msk.bf16.mxu1 %vm2268_vm0, %v2267_v9 }
 0x606   : > { %2090 = vmatprep.subr.bf16.mxu1 %v2267_v9 }
 0x60c   : > { %2080 = vmatmul.mubr.msk.bf16.vlgmr.msra.gmra.mxu1 %vm377_vm2, %v1273_v18 }
 0x60d   : > { %2091 = vmatpush3.bf16.xpose.msra.mxu1 %v1442_v20  ;;  %2092 = vmatprep.mubr.msk.bf16.mxu1 %vm2268_vm0, %v2267_v9 }
 0x60e   : > { %2109 = vmatprep.subr.mxu1 %v2267_v9 }
 0x614   : > { %2093 = vmatmul.mubr.msk.bf16.vlgmr.msra.gmra.mxu1 %vm377_vm2, %v1435_v22 }
 0x615   : > { %2113 = vmatprep.mubr.msk.f32.mxu1 %vm2268_vm0, %v2267_v9 }
 0x6bc   : > { %v2555_v25 = vpop.f32.mrf.mxu1 }
 0x6be   : > { %v2055_v27 = vpop.f32.mrf.mxu1 }
 0x6c4   : > { %v1152_v28 = vpop.f32.mrf.mxu1 }
 0x6c5   : > { %v1159_v29 = vsel %vm425_vm3, %v1152_v28, -inf }
 0x6c6   : > { %1160 = vmax.xlane.f32.xlu0 %v1159_v29  ;;  %v2068_v30 = vpop.f32.mrf.mxu1 }
 0x6c8   : > { %v1155_v31 = vpop.f32.mrf.mxu1 }
 0x6c9   : > { %v1162_v32 = vsel %vm425_vm3, %v1155_v31, -inf }
 0x6ca   : > { %1163 = vmax.xlane.f32.xlu1 %v1162_v32  ;;  %v2069_v33 = vpop.f32.mrf.mxu1 }
 0x6cc   : > { %v1316_v35 = vpop.f32.mrf.mxu1 }
 0x6cd   : > { %v1323_v8 = vsel %vm425_vm3, %v1316_v35, -inf }
 0x6ce   : > { %1324 = vmax.xlane.f32.xlu0 %v1323_v8  ;;  %v2081_v38 = vpop.f32.mrf.mxu1 }
 0x6d0   : > { %v1319_v39 = vpop.f32.mrf.mxu1 }
 0x6d1   : > { %v1326_v10 = vsel %vm425_vm3, %v1319_v39, -inf }
 0x6d2   : > { %1327 = vmax.xlane.f32.xlu0 %v1326_v10  ;;  %v2082_v26 = vpop.f32.mrf.mxu1 }
 0x6d4   : > { %v1478_v40 = vpop.f32.mrf.mxu1 }
 0x6d5   : > { %v1485_v41 = vsel %vm425_vm3, %v1478_v40, -inf }
 0x6d6   : > { %1486 = vmax.xlane.f32.xlu0 %v1485_v41  ;;  %v2094_v42 = vpop.f32.mrf.mxu1 }
 0x6d8   : > { %v1481_v43 = vpop.f32.mrf.mxu1 }
 0x6d9   : > { %v1488_v44 = vsel %vm425_vm3, %v1481_v43, -inf }
 0x6da   : > { %1489 = vmax.xlane.f32.xlu1 %v1488_v44  ;;  %v2095_v45 = vpop.f32.mrf.mxu1 }
 0x74f   : > { %v1161_v46 = vpop.xlane.xlu0 %1160 }
 0x750   : > { %v1165_v47 = vsub.f32 %v1152_v28, %v1161_v46 }
 0x752   : > { %v1167_v48 = vmul.f32 1.442695, %v1165_v47 }
 0x753   : > { %v1164_v49 = vpop.xlane.xlu1 %1163 }
 0x754   : > { %2211 = vpow2.f32 %v1167_v48  ;;  %v1166_v50 = vsub.f32 %v1155_v31, %v1164_v49 }
 0x756   : > { %v1169_v51 = vmul.f32 1.442695, %v1166_v50 }
 0x757   : > { %v1325_v52 = vpop.xlane.xlu0 %1324 }
 0x758   : > { %2213 = vpow2.f32 %v1169_v51  ;;  %v1329_v53 = vsub.f32 %v1316_v35, %v1325_v52 }
 0x75a   : > { %v1331_v54 = vmul.f32 1.442695, %v1329_v53 }
 0x75b   : > { %v1328_v55 = vpop.xlane.xlu0 %1327 }
 0x75c   : > { %2215 = vpow2.f32 %v1331_v54  ;;  %v1330_v56 = vsub.f32 %v1319_v39, %v1328_v55 }
 0x75e   : > { %v1333_v19 = vmul.f32 1.442695, %v1330_v56 }
 0x75f   : > { %v1487_v21 = vpop.xlane.xlu0 %1486 }
 0x760   : > { %2217 = vpow2.f32 %v1333_v19  ;;  %v1491_v23 = vsub.f32 %v1478_v40, %v1487_v21 }
 0x761   : > { %v2212_v24 = vpop.eup %2211 }
 0x762   : > { %v1493_v60 = vmul.f32 1.442695, %v1491_v23  ;;  %v1171_v61 = vsel %vm425_vm3, %v2212_v24, 0.0 }
 0x763   : > { %1172 = vadd.xlane.f32.xlu0 %v1171_v61  ;;  %v1490_v6 = vpop.xlane.xlu1 %1489 }
 0x764   : > { %2219 = vpow2.f32 %v1493_v60  ;;  %v1492_v7 = vsub.f32 %v1481_v43, %v1490_v6 }
 0x765   : > { %v2214_v62 = vpop.eup %2213 }
 0x766   : > { %v1174_v63 = vsel %vm425_vm3, %v2214_v62, 0.0  ;;  %v1495_v11 = vmul.f32 1.442695, %v1492_v7 }
 0x767   : > { %1175 = vadd.xlane.f32.xlu1 %v1174_v63 }
 0x768   : > { %2221 = vpow2.f32 %v1495_v11 }
 0x769   : > { %v2216_v0 = vpop.eup %2215 }
 0x76a   : > { %v1335_v1 = vsel %vm425_vm3, %v2216_v0, 0.0 }
 0x76b   : > { %1336 = vadd.xlane.f32.xlu0 %v1335_v1 }
 0x76d   : > { %v2218_v2 = vpop.eup %2217 }
 0x76e   : > { %v1338_v3 = vsel %vm425_vm3, %v2218_v2, 0.0 }
 0x76f   : > { %1339 = vadd.xlane.f32.xlu1 %v1338_v3 }
 0x771   : > { %v2567_v4 = vpop.eup %2219 }
 0x772   : > { %v1497_v5 = vsel %vm425_vm3, %v2567_v4, 0.0 }
 0x773   : > { %1498 = vadd.xlane.f32.xlu0 %v1497_v5 }
 0x775   : > { %v2579_v12 = vpop.eup %2221 }
 0x776   : > { %v1500_v13 = vsel %vm425_vm3, %v2579_v12, 0.0 }
 0x780   : > { %1193 = vrot.lane.b32.xlu1 %v2509_v57, %s2274_s29 }
 0x789   : > { %1195 = vrot.lane.b32.xlu0 %v2512_v58, %s2274_s29 }
 0x78d   : > { %1519 = vrot.lane.b32.xlu0 %v2512_v58, %s2276_s6 }
 0x791   : > { %1598 = vrot.lane.b32.xlu0 %v2520_v59, %s2277_s7 }
 0x7a4   : > { %1501 = vadd.xlane.f32.xlu1 %v1500_v13 }
 0x7b5   : > { %1357 = vrot.lane.b32.xlu1 %v2512_v58, %s2275_s30 }
 0x7b9   : > { %1355 = vrot.lane.b32.xlu1 %v2509_v57, %s2275_s30 }
 0x7bd   : > { %1517 = vrot.lane.b32.xlu1 %v2509_v57, %s2276_s6 }
 0x7c1   : > { %1596 = vrot.lane.b32.xlu1 %v2520_v59, %s2278_s8 }
 0x7ec   : > { %v1173_v14 = vpop.xlane.xlu0 %1172 }
 0x7ed   : > { %2223 = vrcp.f32 %v1173_v14 }
 0x7f0   : > { %v1176_v15 = vpop.xlane.xlu1 %1175 }
 0x7f1   : > { %2225 = vrcp.f32 %v1176_v15 }
 0x7f4   : > { %v1337_v16 = vpop.xlane.xlu0 %1336 }
 0x7f8   : > { %v1340_v18 = vpop.xlane.xlu1 %1339 }
 0x7f9   : > { %2227 = vrcp.f32 %v1340_v18 }
 0x7fa   : > { %v2224_v17 = vpop.eup %2223  ;;  %2229 = vrcp.f32 %v1337_v16 }
 0x7fb   : > { %v1178_v22 = vmul.f32 %v2224_v17, %v2212_v24 }
 0x7fc   : > { %v1499_v20 = vpop.xlane.xlu0 %1498  ;;  %v1194_v59 = vpop.permute.xlu1 %1193 }
 0x7fd   : > { %v1181_v30 = vsel %vm425_vm3, %v1178_v22, 0.0  ;;  %2231 = vrcp.f32 %v1499_v20 }
 0x7fe   : > { %v2226_v27 = vpop.eup %2225 }
 0x7ff   : > { %v1180_v28 = vmul.f32 %v2226_v27, %v2214_v62 }
 0x800   : > { %v1196_v29 = vpop.permute.xlu0 %1195 }
 0x801   : > { %v1182_v31 = vsel %vm425_vm3, %v1180_v28, 0.0  ;;  %2071 = vmatpush3.msra.mxu0 %v1196_v29 }
 0x802   : > { %v1183_v32 = vadd.f32 %v1182_v31, %v1181_v30  ;;  %2072 = vmatprep.subr.mxu0 %v2267_v9 }
 0x803   : > { %2073 = vmatpush3.msra.mxu0 %v1194_v59 }
 0x804   : > { %v1184_v33 = vrot.slane %v1183_v32, 4  ;;  %2083 = vmatprep.subr.mxu0 %v2267_v9  ;;  %v1520_v21 = vpop.permute.xlu0 %1519 }
 0x806   : > { %v1185_v35 = vadd.f32 %v1184_v33, %v1183_v32  ;;  %v2228_v26 = vpop.eup %2227 }
 0x807   : > { %v2230_v41 = vpop.eup %2229  ;;  %v1344_v42 = vmul.f32 %v2228_v26, %v2218_v2 }
 0x808   : > { %v1186_v8 = vrot.slane %v1185_v35, 2  ;;  %v1342_v43 = vmul.f32 %v2230_v41, %v2216_v0  ;;  %v1599_v11 = vpop.permute.xlu0 %1598 }
 0x809   : > { %v1346_v44 = vsel %vm425_vm3, %v1344_v42, 0.0 }
 0x80a   : > { %v1187_v38 = vadd.f32 %v1186_v8, %v1185_v35  ;;  %v1345_v45 = vsel %vm425_vm3, %v1342_v43, 0.0  ;;  %v2232_v19 = vpop.eup %2231 }
 0x80b   : > { %v1347_v46 = vadd.f32 %v1346_v44, %v1345_v45  ;;  %v1504_v24 = vmul.f32 %v2232_v19, %v2567_v4  ;;  %v1604_v4 = vsel %vm377_vm2, %v1599_v11, 0  ;;  %v2178_v19 = vld [vmem:[%s2675_s3] sm:$0xff]  }
 0x80c   : > { %v1188_v39 = vrot.slane %v1187_v38, 1 }
 0x80d   : > { %v1348_v47 = vrot.slane %v1347_v46, 4  ;;  %v1507_v62 = vsel %vm425_vm3, %v1504_v24, 0.0 }
 0x80e   : > { %v1189_v10 = vadd.f32 %v1188_v39, %v1187_v38 }
 0x80f   : > { %v1349_v48 = vadd.f32 %v1348_v47, %v1347_v46 }
 0x810   : > { %v1190_v40 = vmul.f32 0.0625, %v1189_v10 }
 0x811   : > { %v1350_v49 = vrot.slane %v1349_v48, 2 }
 0x812   : > { %2075 = vmatmul.mubr.msk.f32.vlgmr.msra.gmra.mxu0 %vm425_vm3, %v1190_v40 }
 0x813   : > { %2087 = vmatprep.mubr.msk.f32.mxu0 %vm2268_vm0, %v2267_v9  ;;  %v1351_v50 = vadd.f32 %v1350_v49, %v1349_v48 }
 0x815   : > { %v1352_v52 = vrot.slane %v1351_v50, 1 }
 0x817   : > { %v1353_v54 = vadd.f32 %v1352_v52, %v1351_v50 }
 0x819   : > { %v1354_v56 = vmul.f32 0.0625, %v1353_v54 }
 0x82d   : > { %v1502_v51 = vpop.xlane.xlu1 %1501 }
 0x82e   : > { %2233 = vrcp.f32 %v1502_v51 }
 0x831   : > { %v1358_v53 = vpop.permute.xlu1 %1357 }
 0x832   : > { %2084 = vmatpush3.msra.mxu0 %v1358_v53 }
 0x833   : > { %2085 = vmatprep.subr.mxu0 %v2267_v9 }
 0x835   : > { %v1356_v55 = vpop.permute.xlu1 %1355 }
 0x836   : > { %2086 = vmatpush3.msra.mxu0 %v1356_v55 }
 0x837   : > { %2088 = vmatmul.mubr.msk.f32.vlgmr.msra.gmra.mxu0 %vm425_vm3, %v1354_v56  ;;  %2096 = vmatprep.subr.mxu0 %v2267_v9  ;;  %v2177_v56 = vld [vmem:[%s2675_s3 + $0x8] sm:$0xff]  }
 0x838   : > { %2097 = vmatpush3.msra.mxu0 %v1520_v21  ;;  %2100 = vmatprep.mubr.msk.f32.mxu0 %vm2268_vm0, %v2267_v9 }
 0x839   : > { %2098 = vmatprep.subr.mxu0 %v2267_v9  ;;  %v1518_v23 = vpop.permute.xlu1 %1517 }
 0x83a   : > { %2099 = vmatpush3.msra.mxu0 %v1518_v23 }
 0x83b   : > { %v2234_v60 = vpop.eup %2233  ;;  %2103 = vmatprep.subr.bf16.mxu0 %v2267_v9 }
 0x83c   : > { %v1506_v61 = vmul.f32 %v2234_v60, %v2579_v12 }
 0x83d   : > { %v1597_v12 = vpop.permute.xlu1 %1596 }
 0x83e   : > { %v1508_v63 = vsel %vm425_vm3, %v1506_v61, 0.0 }
 0x83f   : > { %v1509_v0 = vadd.f32 %v1508_v63, %v1507_v62 }
 0x841   : > { %v1510_v1 = vrot.slane %v1509_v0, 4 }
 0x843   : > { %v1511_v2 = vadd.f32 %v1510_v1, %v1509_v0 }
 0x845   : > { %v1512_v3 = vrot.slane %v1511_v2, 2 }
 0x847   : > { %v1513_v5 = vadd.f32 %v1512_v3, %v1511_v2 }
 0x849   : > { %v1514_v6 = vrot.slane %v1513_v5, 1 }
 0x84b   : > { %v1515_v7 = vadd.f32 %v1514_v6, %v1513_v5 }
 0x84d   : > { %v1516_v13 = vmul.f32 0.0625, %v1515_v7 }
 0x84f   : > { %2101 = vmatmul.mubr.msk.f32.vlgmr.msra.gmra.mxu0 %vm425_vm3, %v1516_v13 }
 0x850   : > { %2104 = vmatpush3.bf16.xpose.msra.mxu0 %v1604_v4  ;;  %2105 = vmatprep.mubr.msk.bf16.mxu0 %vm2268_vm0, %v2267_v9 }
 0x851   : > { %2116 = vmatprep.subr.bf16.mxu0 %v2267_v9 }
 0x857   : > { %2106 = vmatmul.mubr.msk.bf16.vlgmr.msra.gmra.mxu0 %vm377_vm2, %v1597_v12 }
 0x858   : > { %2120 = vmatprep.mubr.msk.bf16.mxu0 %vm2268_vm0, %v2267_v9  ;;  %2117 = vmatpush3.bf16.msra.mxu0 %v2177_v56 }
 0x859   : > { %2118 = vmatprep.subr.bf16.mxu0 %v2267_v9 }
 0x85c   : > { %2119 = vmatpush3.bf16.msra.mxu0 %v2178_v19 }
 0x8d2   : > { %v2619_v14 = vpop.f32.mrf.mxu0 }
 0x8d4   : > { %v2076_v15 = vpop.f32.mrf.mxu0 }
 0x8f7   : > { %v1430_v16 = vpop.f32.mrf.mxu0 }
 0x8f8   : > { %v2165_v32 = vpack.i.bf16 %v2500_v36, %v1430_v16 }
 0x8f9   : > { %v2089_v17 = vpop.f32.mrf.mxu0 }
 0x90f   : > { %v1592_v18 = vpop.f32.mrf.mxu0 }
 0x910   : > { %v2170_v59 = vpack.i.bf16 %v2502_v37, %v1592_v18 }
 0x911   : > { %v2102_v20 = vpop.f32.mrf.mxu0 }
 0x917   : > { %v1640_v22 = vpop.f32.mrf.mxu0 }
 0x918   : > { %v1647_v27 = vsel %vm425_vm3, %v1640_v22, -inf }
 0x919   : > { %1648 = vmax.xlane.f32.xlu0 %v1647_v27  ;;  %v2107_v28 = vpop.f32.mrf.mxu0 }
 0x91b   : > { %v1643_v29 = vpop.f32.mrf.mxu0 }
 0x91c   : > { %v1650_v30 = vsel %vm425_vm3, %v1643_v29, -inf }
 0x91d   : > { %1651 = vmax.xlane.f32.xlu1 %v1650_v30  ;;  %v2108_v31 = vpop.f32.mrf.mxu0 }
 0x92e   : > { %1679 = vrot.lane.b32.xlu1 %v2509_v57, %s2279_s9 }
 0x932   : > { %2166 = vrot.lane.b32.xlu1 %v2165_v32, %s2280_s10 }
 0x936   : > { %2171 = vrot.lane.b32.xlu1 %v2170_v59, %s2281_s11 }
 0x93a   : > { %1034 = vrot.lane.b32.xlu1 %v2555_v25, %s2282_s12 }
 0x9a2   : > { %v1649_v33 = vpop.xlane.xlu0 %1648 }
 0x9a3   : > { %v1653_v35 = vsub.f32 %v1640_v22, %v1649_v33 }
 0x9a5   : > { %v1655_v8 = vmul.f32 1.442695, %v1653_v35 }
 0x9a6   : > { %v1652_v38 = vpop.xlane.xlu1 %1651 }
 0x9a7   : > { %2235 = vpow2.f32 %v1655_v8  ;;  %v1654_v39 = vsub.f32 %v1643_v29, %v1652_v38 }
 0x9a9   : > { %v1657_v10 = vmul.f32 1.442695, %v1654_v39 }
 0x9aa   : > { %v1680_v42 = vpop.permute.xlu1 %1679 }
 0x9ab   : > { %2237 = vpow2.f32 %v1657_v10 }
 0x9ae   : > { %v2167_v24 = vpop.permute.xlu1 %2166 }
 0x9af   : > { %v2169_v61 = vunpack.i.h.bf16 %v2167_v24  ;;  %v2168_v62 = vunpack.i.l.bf16 %v2167_v24 }
 0x9b1   : > { %v1770_v1 = vsel %vm377_vm2, %v2619_v14, %v2168_v62 }
 0x9b2   : > { %v2172_v60 = vpop.permute.xlu1 %2171 }
 0x9b3   : > { %v2174_v63 = vunpack.i.h.bf16 %v2172_v60  ;;  %v2173_v0 = vunpack.i.l.bf16 %v2172_v60 }
 0x9b4   : > { %v2236_v57 = vpop.eup %2235 }
 0x9b5   : > { %v1659_v36 = vsel %vm425_vm3, %v2236_v57, 0.0  ;;  %v1771_v5 = vsel %vm425_vm3, %v1770_v1, %v2173_v0 }
 0x9b6   : > { %1660 = vadd.xlane.f32.xlu0 %v1659_v36  ;;  %v1035_v2 = vpop.permute.xlu1 %1034 }
 0x9b8   : > { %v2238_v26 = vpop.eup %2237 }
 0x9b9   : > { %v1662_v37 = vsel %vm425_vm3, %v2238_v26, 0.0 }
 0x9ba   : > { %1663 = vadd.xlane.f32.xlu0 %v1662_v37 }
 0x9d0   : > { %1681 = vrot.lane.b32.xlu0 %v2512_v58, %s2279_s9 }
 0xa3f   : > { %v1661_v25 = vpop.xlane.xlu0 %1660 }
 0xa40   : > { %2239 = vrcp.f32 %v1661_v25 }
 0xa43   : > { %v1664_v40 = vpop.xlane.xlu0 %1663 }
 0xa44   : > { %2241 = vrcp.f32 %v1664_v40 }
 0xa47   : > { %v1682_v41 = vpop.permute.xlu0 %1681 }
 0xa48   : > { %2110 = vmatpush3.msra.mxu1 %v1682_v41 }
 0xa49   : > { %2111 = vmatprep.subr.mxu1 %v2267_v9  ;;  %v1037_v9 = vsel %vm377_vm2, %v2498_v34, %v2169_v61  ;;  %v1940_v34 = vld [vmem:[%s2676_s4] ss:$0 sm:$0xff] }
 0xa4a   : > { %2112 = vmatpush3.msra.mxu1 %v1680_v42  ;;  %v1038_v3 = vsel %vm425_vm3, %v1037_v9, %v2174_v63 }
 0xa4b   : > { %v1040_v13 = vsel %vm1039_vm4, %v1038_v3, %v1035_v2 }
 0xa4d   : > { %v2240_v43 = vpop.eup %2239 }
 0xa4e   : > { %v1666_v44 = vmul.f32 %v2240_v43, %v2236_v57 }
 0xa50   : > { %v1669_v47 = vsel %vm425_vm3, %v1666_v44, 0.0 }
 0xa51   : > { %v2242_v45 = vpop.eup %2241 }
 0xa52   : > { %v1668_v46 = vmul.f32 %v2242_v45, %v2238_v26 }
 0xa54   : > { %v1670_v48 = vsel %vm425_vm3, %v1668_v46, 0.0 }
 0xa55   : > { %v1671_v49 = vadd.f32 %v1670_v48, %v1669_v47 }
 0xa57   : > { %v1672_v58 = vrot.slane %v1671_v49, 4 }
 0xa59   : > { %v1673_v50 = vadd.f32 %v1672_v58, %v1671_v49 }
 0xa5b   : > { %v1674_v51 = vrot.slane %v1673_v50, 2 }
 0xa5d   : > { %v1675_v52 = vadd.f32 %v1674_v51, %v1673_v50 }
 0xa5f   : > { %v1676_v53 = vrot.slane %v1675_v52, 1 }
 0xa61   : > { %v1677_v54 = vadd.f32 %v1676_v53, %v1675_v52 }
 0xa63   : > { %v1678_v55 = vmul.f32 0.0625, %v1677_v54 }
 0xa65   : > { %2114 = vmatmul.mubr.msk.f32.vlgmr.msra.gmra.mxu1 %vm425_vm3, %v1678_v55 }
 0xb25   : > { %v1754_v21 = vpop.f32.mrf.mxu1 }
 0xb26   : > { %1767 = vrot.lane.b32.xlu0 %v1754_v21, %s2282_s12 }
 0xb27   : > { %v2115_v23 = vpop.f32.mrf.mxu1 }
 0xb98   : > { %v1768_v6 = vpop.permute.xlu0 %1767 }
 0xb99   : > { %v1772_v7 = vsel %vm1039_vm4, %v1771_v5, %v1768_v6 }
 0xb9a   : > { %v1774_v11 = vrot.slane %v1772_v7, 7 }
 0xb9c   : > { %v1777_v4 = vsel %vm1776_vm5, %v1040_v13, %v1774_v11 }
 0xb9d   : > { %v1783_v12 = vpack.c.bf16 %v1777_v4, %v1777_v4 }
 0xb9f   : > { %2121 = vmatmul.mubr.msk.bf16.vlgmr.msra.gmra.mxu0 %vm328_vm1, %v1783_v12 }
 0xc5f   : > { %v1839_v14 = vpop.f32.mrf.mxu0 }
 0xc60   : > { %v1840_v15 = vadd.f32 %v1940_v34, %v1839_v14 }
 0xc61   : > { %v2122_v16 = vpop.f32.mrf.mxu0 }
 0xc62   : > { %1846 = vst.msk [vmem:[%s286_s27] sm:$0x3] %vm1845_vm6, %v1840_v15 }
 0xc63   : > { %v1842_v17 = vpop.f32.mrf.mxu0 }
 0xc65   : > { %v2123_v18 = vpop.f32.mrf.mxu0 }
 0xc66 PF: > { %p12_p9 = scmp.ge.s32.totalorder %s2330_s22, 6   ;;  %s2678_s18 = smov %s2261_s19 }
 0xc67   : > { %s2679_s19 = smov %s2339_s25  ;;  %s2680_s20 = smov %s2330_s22 }
 0xc68   :  { %14 = sbr.rel (!%p12_p9) target bundleno = 2 (0x2), region = 114 }

</bundles_post_ra>
